<compile_context>
chip_gen: v7x
topology: tpu7x:2x2x1
jax: 0.10.0
libtpu: 0.0.40
codegen_flags: <defaults>
</compile_context>

<pallas_src>
import functools

import jax
import jax.numpy as jnp
from jax.experimental import pallas as pl
from jax.experimental.pallas import tpu as pltpu

# ---- synthetic "bert-base"-like config (small, deterministic) --------------
B, S, H = 2, 8, 128          # batch, seq, hidden
NUM_HEADS, HEAD_DIM = 2, 64  # H == NUM_HEADS * HEAD_DIM
INTER = 256                  # FFN intermediate size
NUM_LAYERS = 2
VOCAB, MAX_POS, N_TYPES = 64, 16, 2
EPS = 1e-12                  # BERT LayerNorm eps
N = B * S                    # fused token count


# ---------------------------- in-kernel helpers ------------------------------
def _gelu(x):
    # tanh approximation of GELU (BERT uses erf-GELU; difference < 1e-3)
    c = jnp.float32(0.7978845608028654)  # sqrt(2/pi)
    return 0.5 * x * (1.0 + jnp.tanh(c * (x + 0.044715 * x * x * x)))


def _layernorm(x, g, b):
    mu = jnp.mean(x, axis=-1, keepdims=True)
    var = jnp.mean((x - mu) ** 2, axis=-1, keepdims=True)
    return (x - mu) * jax.lax.rsqrt(var + EPS) * g + b


# ------------------------------- fused kernel --------------------------------
def fused_bert_kernel(
    pos1_ref, pos2_ref,                       # scalar prefetch (SMEM, int32[B])
    x_ref, bias_ref, eg_ref, eb_ref,          # emb (N,H) f32, mask bias (B,S) f32, emb-LN
    wq_ref, bq_ref, wk_ref, bk_ref, wv_ref, bv_ref,   # (L,NH,H,HD) bf16 / (L,NH,1,HD) f32
    wo_ref, bo_ref, g1_ref, be1_ref,          # (L,NH,HD,H) bf16 / (L,1,H) f32
    w1_ref, b1_ref, w2_ref, b2_ref, g2_ref, be2_ref,  # FFN + LN2
    out_ref,                                  # (B, 2H) f32
    xs_ref,                                   # VMEM scratch (N, H) f32
):
    scale = jnp.float32(1.0 / float(HEAD_DIM) ** 0.5)
    bias3 = bias_ref[...][:, None, :]          # (B, 1, S) broadcast over heads & query rows

    # --- embedding LayerNorm (f32) ---
    x = _layernorm(x_ref[...], eg_ref[...], eb_ref[...])        # (N, H) f32

    # --- encoder layers, fully unrolled (weights indexed statically) ---
    for l in range(NUM_LAYERS):
        xb = x.astype(jnp.bfloat16)
        attn = jnp.zeros((N, H), jnp.float32)
        for h in range(NUM_HEADS):
            # per-head projections on the fused (B*S, H) slab; no lane slicing
            qh = jnp.dot(xb, wq_ref[l, h],
                         preferred_element_type=jnp.float32) + bq_ref[l, h]
            kh = jnp.dot(xb, wk_ref[l, h],
                         preferred_element_type=jnp.float32) + bk_ref[l, h]
            vh = jnp.dot(xb, wv_ref[l, h],
                         preferred_element_type=jnp.float32) + bv_ref[l, h]
            q3 = qh.reshape(B, S, HEAD_DIM).astype(jnp.bfloat16)
            k3 = kh.reshape(B, S, HEAD_DIM).astype(jnp.bfloat16)
            v3 = vh.reshape(B, S, HEAD_DIM).astype(jnp.bfloat16)

            # scores: batched contraction on last dims (no explicit .T)
            s = jnp.einsum('bqd,bkd->bqk', q3, k3,
                           preferred_element_type=jnp.float32) * scale + bias3
            s = s - jnp.max(s, axis=-1, keepdims=True)
            p = jnp.exp(s)                                        # f32 softmax
            p = p * pl.reciprocal(jnp.sum(p, axis=-1, keepdims=True), approx=True)

            ctx3 = jnp.einsum('bqk,bkd->bqd', p.astype(jnp.bfloat16), v3,
                              preferred_element_type=jnp.float32)  # (B, S, HD)
            ctx = ctx3.reshape(N, HEAD_DIM).astype(jnp.bfloat16)

            # head concat folded into the output projection (sum over heads)
            attn = attn + jnp.dot(ctx, wo_ref[l, h],
                                  preferred_element_type=jnp.float32)
        attn = attn + bo_ref[l]
        x1 = _layernorm(x + attn, g1_ref[l], be1_ref[l])

        h1 = _gelu(jnp.dot(x1.astype(jnp.bfloat16), w1_ref[l],
                           preferred_element_type=jnp.float32) + b1_ref[l])
        ffn = jnp.dot(h1.astype(jnp.bfloat16), w2_ref[l],
                      preferred_element_type=jnp.float32) + b2_ref[l]
        x = _layernorm(x1 + ffn, g2_ref[l], be2_ref[l])

    # --- entity-position gather + concat: out[b] = [x[b*S+pos1[b]], x[b*S+pos2[b]]] ---
    xs_ref[...] = x
    for b in range(B):
        h_row = xs_ref[pl.ds(b * S + pos1_ref[b], 1), :]          # (1, H)
        t_row = xs_ref[pl.ds(b * S + pos2_ref[b], 1), :]          # (1, H)
        out_ref[pl.ds(b, 1), pl.ds(0, H)] = h_row
        out_ref[pl.ds(b, 1), pl.ds(H, H)] = t_row


# ------------------------------ wrapper ---------------------------------------
def run_fused_bert(x_emb, bias, emb_g, emb_b, packed, pos1, pos2):
    tensor_inputs = (x_emb, bias, emb_g, emb_b) + tuple(packed)

    def full_block(arr):
        nd = arr.ndim
        # index_map receives (grid_idx, pos1_ref, pos2_ref) with scalar prefetch
        return pl.BlockSpec(arr.shape, lambda i, p1, p2, nd=nd: (0,) * nd)

    in_specs = [full_block(a) for a in tensor_inputs]
    return pl.pallas_call(
        fused_bert_kernel,
        out_shape=jax.ShapeDtypeStruct((B, 2 * H), jnp.float32),
        grid_spec=pltpu.PrefetchScalarGridSpec(
            num_scalar_prefetch=2,
            grid=(1,),
            in_specs=in_specs,
            out_specs=pl.BlockSpec((B, 2 * H), lambda i, p1, p2: (0, 0)),
            scratch_shapes=[pltpu.VMEM((N, H), jnp.float32)],
        ),
        compiler_params=pltpu.CompilerParams(
            dimension_semantics=("arbitrary",)),
    )(pos1, pos2, *tensor_inputs)


# --------------------------- parameter packing ---------------------------------
def pack_layer_params(layers):
    """Stack per-layer params on a leading axis; split attention weights per head."""
    def split_out(w):   # (H, H) -> (NH, H, HD)   (split output columns per head)
        return w.reshape(H, NUM_HEADS, HEAD_DIM).transpose(1, 0, 2)

    def split_bias(b):  # (1, H) -> (NH, 1, HD)
        return b.reshape(NUM_HEADS, HEAD_DIM)[:, None, :]

    def split_in(w):    # (H, H) -> (NH, HD, H)   (split input rows per head)
        return w.reshape(NUM_HEADS, HEAD_DIM, H)

    bf16 = jnp.bfloat16
    wq = jnp.stack([split_out(lp[0]) for lp in layers]).astype(bf16)
    bq = jnp.stack([split_bias(lp[1]) for lp in layers])
    wk = jnp.stack([split_out(lp[2]) for lp in layers]).astype(bf16)
    bk = jnp.stack([split_bias(lp[3]) for lp in layers])
    wv = jnp.stack([split_out(lp[4]) for lp in layers]).astype(bf16)
    bv = jnp.stack([split_bias(lp[5]) for lp in layers])
    wo = jnp.stack([split_in(lp[6]) for lp in layers]).astype(bf16)
    bo = jnp.stack([lp[7] for lp in layers])
    g1 = jnp.stack([lp[8] for lp in layers])
    be1 = jnp.stack([lp[9] for lp in layers])
    w1 = jnp.stack([lp[10] for lp in layers]).astype(bf16)
    b1 = jnp.stack([lp[11] for lp in layers])
    w2 = jnp.stack([lp[12] for lp in layers]).astype(bf16)
    b2 = jnp.stack([lp[13] for lp in layers])
    g2 = jnp.stack([lp[14] for lp in layers])
    be2 = jnp.stack([lp[15] for lp in layers])
    return (wq, bq, wk, bk, wv, bv, wo, bo, g1, be1, w1, b1, w2, b2, g2, be2)


# --------------------------- parameter init -----------------------------------
def init_params(key):
    keys = iter(jax.random.split(key, 64))

    def dense(fan_in, fan_out):
        w = jax.random.normal(next(keys), (fan_in, fan_out), jnp.float32) * 0.02
        b = jnp.zeros((1, fan_out), jnp.float32)
        return w, b

    params = {
        "word_emb": jax.random.normal(next(keys), (VOCAB, H), jnp.float32) * 0.02,
        "pos_emb": jax.random.normal(next(keys), (MAX_POS, H), jnp.float32) * 0.02,
        "type_emb": jax.random.normal(next(keys), (N_TYPES, H), jnp.float32) * 0.02,
        "emb_ln_g": jnp.ones((1, H), jnp.float32),
        "emb_ln_b": jnp.zeros((1, H), jnp.float32),
        "layers": [],
    }
    for _ in range(NUM_LAYERS):
        wq, bq = dense(H, H)
        wk, bk = dense(H, H)
        wv, bv = dense(H, H)
        wo, bo = dense(H, H)
        g1, be1 = jnp.ones((1, H), jnp.float32), jnp.zeros((1, H), jnp.float32)
        w1, b1 = dense(H, INTER)
        w2, b2 = dense(INTER, H)
        g2, be2 = jnp.ones((1, H), jnp.float32), jnp.zeros((1, H), jnp.float32)
        params["layers"].append(
            (wq, bq, wk, bk, wv, bv, wo, bo, g1, be1, w1, b1, w2, b2, g2, be2))
    return params


# ------------------------------ forward ----------------------------------------
@functools.partial(jax.jit, static_argnums=())
def feature_extractor(params, ids, mask, pos1, pos2):
    # --- embeddings (table gather in plain JAX, everything else in Pallas) ---
    # token_type_ids assumed all-zero (matches reference call signature).
    emb = (params["word_emb"][ids]
           + params["pos_emb"][jnp.arange(S)][None, :, :]
           + params["type_emb"][0][None, None, :])
    x_emb = emb.reshape(N, H).astype(jnp.float32)                 # fused (B*S, H) slab

    # BERT extended attention mask: (1 - mask) * -10000  -> (B, S) additive bias
    bias = (1.0 - mask.astype(jnp.float32)) * -10000.0

    packed = pack_layer_params(params["layers"])
    return run_fused_bert(x_emb, bias, params["emb_ln_g"], params["emb_ln_b"],
                          packed, pos1.astype(jnp.int32), pos2.astype(jnp.int32))


# -------------------------------- main ------------------------------------------
if __name__ == "__main__":
    key = jax.random.PRNGKey(0)
    kp, kid, kpos = jax.random.split(key, 3)

    params = init_params(kp)

    ids = jax.random.randint(kid, (B, S), 0, VOCAB, dtype=jnp.int32)
    mask = jnp.concatenate(
        [jnp.ones((B, S - 2), jnp.int32), jnp.zeros((B, 2), jnp.int32)], axis=-1)
    pos1 = jnp.array([1, 2], dtype=jnp.int32)
    pos2 = jnp.array([3, 4], dtype=jnp.int32)

    out = feature_extractor(params, ids, mask, pos1, pos2)
    out = jax.block_until_ready(out)
    assert out.shape == (B, 2 * H), out.shape
    print("KERNEL_OK")
</pallas_src>

<mosaic_0001>
module attributes {stable_mosaic.version = 11 : i64} {
  func.func @fused_bert_kernel(%arg0: i32, %arg1: memref<2xi32, #tpu.memory_space<smem>>, %arg2: memref<2xi32, #tpu.memory_space<smem>>, %arg3: memref<16x128xf32, #tpu.memory_space<vmem>>, %arg4: memref<2x8xf32, #tpu.memory_space<vmem>>, %arg5: memref<1x128xf32, #tpu.memory_space<vmem>>, %arg6: memref<1x128xf32, #tpu.memory_space<vmem>>, %arg7: memref<2x2x128x64xbf16, #tpu.memory_space<vmem>>, %arg8: memref<2x2x1x64xf32, #tpu.memory_space<vmem>>, %arg9: memref<2x2x128x64xbf16, #tpu.memory_space<vmem>>, %arg10: memref<2x2x1x64xf32, #tpu.memory_space<vmem>>, %arg11: memref<2x2x128x64xbf16, #tpu.memory_space<vmem>>, %arg12: memref<2x2x1x64xf32, #tpu.memory_space<vmem>>, %arg13: memref<2x2x64x128xbf16, #tpu.memory_space<vmem>>, %arg14: memref<2x1x128xf32, #tpu.memory_space<vmem>>, %arg15: memref<2x1x128xf32, #tpu.memory_space<vmem>>, %arg16: memref<2x1x128xf32, #tpu.memory_space<vmem>>, %arg17: memref<2x128x256xbf16, #tpu.memory_space<vmem>>, %arg18: memref<2x1x256xf32, #tpu.memory_space<vmem>>, %arg19: memref<2x256x128xbf16, #tpu.memory_space<vmem>>, %arg20: memref<2x1x128xf32, #tpu.memory_space<vmem>>, %arg21: memref<2x1x128xf32, #tpu.memory_space<vmem>>, %arg22: memref<2x1x128xf32, #tpu.memory_space<vmem>>, %arg23: memref<2x256xf32, #tpu.memory_space<vmem>>, %arg24: memref<16x128xf32, #tpu.memory_space<vmem>>) attributes {dimension_semantics = [#tpu.dimension_semantics<arbitrary>], iteration_bounds = array<i64: 1>, scalar_prefetch = 2 : i64, scratch_operands = 1 : i64, tpu.core_type = #tpu.core_type<tc>, window_params = [{pipeline_mode = #tpu.pipeline_mode<synchronous>, transform_indices = @transform_0, window_bounds = array<i64: 16, 128>}, {pipeline_mode = #tpu.pipeline_mode<synchronous>, transform_indices = @transform_1, window_bounds = array<i64: 2, 8>}, {pipeline_mode = #tpu.pipeline_mode<synchronous>, transform_indices = @transform_2, window_bounds = array<i64: 1, 128>}, {pipeline_mode = #tpu.pipeline_mode<synchronous>, transform_indices = @transform_3, window_bounds = array<i64: 1, 128>}, {pipeline_mode = #tpu.pipeline_mode<synchronous>, transform_indices = @transform_4, window_bounds = array<i64: 2, 2, 128, 64>}, {pipeline_mode = #tpu.pipeline_mode<synchronous>, transform_indices = @transform_5, window_bounds = array<i64: 2, 2, 1, 64>}, {pipeline_mode = #tpu.pipeline_mode<synchronous>, transform_indices = @transform_6, window_bounds = array<i64: 2, 2, 128, 64>}, {pipeline_mode = #tpu.pipeline_mode<synchronous>, transform_indices = @transform_7, window_bounds = array<i64: 2, 2, 1, 64>}, {pipeline_mode = #tpu.pipeline_mode<synchronous>, transform_indices = @transform_8, window_bounds = array<i64: 2, 2, 128, 64>}, {pipeline_mode = #tpu.pipeline_mode<synchronous>, transform_indices = @transform_9, window_bounds = array<i64: 2, 2, 1, 64>}, {pipeline_mode = #tpu.pipeline_mode<synchronous>, transform_indices = @transform_10, window_bounds = array<i64: 2, 2, 64, 128>}, {pipeline_mode = #tpu.pipeline_mode<synchronous>, transform_indices = @transform_11, window_bounds = array<i64: 2, 1, 128>}, {pipeline_mode = #tpu.pipeline_mode<synchronous>, transform_indices = @transform_12, window_bounds = array<i64: 2, 1, 128>}, {pipeline_mode = #tpu.pipeline_mode<synchronous>, transform_indices = @transform_13, window_bounds = array<i64: 2, 1, 128>}, {pipeline_mode = #tpu.pipeline_mode<synchronous>, transform_indices = @transform_14, window_bounds = array<i64: 2, 128, 256>}, {pipeline_mode = #tpu.pipeline_mode<synchronous>, transform_indices = @transform_15, window_bounds = array<i64: 2, 1, 256>}, {pipeline_mode = #tpu.pipeline_mode<synchronous>, transform_indices = @transform_16, window_bounds = array<i64: 2, 256, 128>}, {pipeline_mode = #tpu.pipeline_mode<synchronous>, transform_indices = @transform_17, window_bounds = array<i64: 2, 1, 128>}, {pipeline_mode = #tpu.pipeline_mode<synchronous>, transform_indices = @transform_18, window_bounds = array<i64: 2, 1, 128>}, {pipeline_mode = #tpu.pipeline_mode<synchronous>, transform_indices = @transform_19, window_bounds = array<i64: 2, 1, 128>}, {pipeline_mode = #tpu.pipeline_mode<synchronous>, transform_indices = @transform_20, window_bounds = array<i64: 2, 256>}]} {
    %c0 = arith.constant 0 : index
    %c0_0 = arith.constant 0 : index
    %0 = vector.load %arg4[%c0, %c0_0] : memref<2x8xf32, #tpu.memory_space<vmem>>, vector<2x8xf32>
    %1 = vector.shape_cast %0 : vector<2x8xf32> to vector<2x1x8xf32>
    %c0_1 = arith.constant 0 : index
    %c0_2 = arith.constant 0 : index
    %2 = vector.load %arg3[%c0_1, %c0_2] : memref<16x128xf32, #tpu.memory_space<vmem>>, vector<16x128xf32>
    %c0_3 = arith.constant 0 : index
    %c0_4 = arith.constant 0 : index
    %3 = vector.load %arg5[%c0_3, %c0_4] : memref<1x128xf32, #tpu.memory_space<vmem>>, vector<1x128xf32>
    %c0_5 = arith.constant 0 : index
    %c0_6 = arith.constant 0 : index
    %4 = vector.load %arg6[%c0_5, %c0_6] : memref<1x128xf32, #tpu.memory_space<vmem>>, vector<1x128xf32>
    %cst = arith.constant dense<0.000000e+00> : vector<16xf32>
    %5 = vector.multi_reduction <add>, %2, %cst [1] : vector<16x128xf32> to vector<16xf32>
    %6 = vector.shape_cast %5 : vector<16xf32> to vector<16x1xf32>
    %cst_7 = arith.constant 1.280000e+02 : f32
    %7 = vector.broadcast %cst_7 : f32 to vector<16x1xf32>
    %8 = arith.divf %6, %7 : vector<16x1xf32>
    %9 = vector.broadcast %8 : vector<16x1xf32> to vector<16x128xf32>
    %10 = arith.subf %2, %9 : vector<16x128xf32>
    %11 = arith.mulf %10, %10 : vector<16x128xf32>
    %cst_8 = arith.constant dense<0.000000e+00> : vector<16xf32>
    %12 = vector.multi_reduction <add>, %11, %cst_8 [1] : vector<16x128xf32> to vector<16xf32>
    %13 = vector.shape_cast %12 : vector<16xf32> to vector<16x1xf32>
    %cst_9 = arith.constant 1.280000e+02 : f32
    %14 = vector.broadcast %cst_9 : f32 to vector<16x1xf32>
    %15 = arith.divf %13, %14 : vector<16x1xf32>
    %16 = vector.broadcast %8 : vector<16x1xf32> to vector<16x128xf32>
    %17 = arith.subf %2, %16 : vector<16x128xf32>
    %cst_10 = arith.constant 9.99999996E-13 : f32
    %18 = vector.broadcast %cst_10 : f32 to vector<16x1xf32>
    %19 = arith.addf %15, %18 : vector<16x1xf32>
    %20 = math.rsqrt %19 : vector<16x1xf32>
    %21 = vector.broadcast %20 : vector<16x1xf32> to vector<16x128xf32>
    %22 = arith.mulf %17, %21 : vector<16x128xf32>
    %23 = vector.broadcast %3 : vector<1x128xf32> to vector<16x128xf32>
    %24 = arith.mulf %22, %23 : vector<16x128xf32>
    %25 = vector.broadcast %4 : vector<1x128xf32> to vector<16x128xf32>
    %26 = arith.addf %24, %25 : vector<16x128xf32>
    %27 = arith.truncf %26 : vector<16x128xf32> to vector<16x128xbf16>
    %cst_11 = arith.constant 0.000000e+00 : f32
    %28 = vector.broadcast %cst_11 : f32 to vector<16x128xf32>
    %c0_12 = arith.constant 0 : index
    %c0_13 = arith.constant 0 : index
    %c0_14 = arith.constant 0 : index
    %c0_15 = arith.constant 0 : index
    %29 = vector.load %arg7[%c0_12, %c0_13, %c0_14, %c0_15] : memref<2x2x128x64xbf16, #tpu.memory_space<vmem>>, vector<1x1x128x64xbf16>
    %30 = vector.shape_cast %29 : vector<1x1x128x64xbf16> to vector<128x64xbf16>
    %cst_16 = arith.constant dense<0.000000e+00> : vector<16x64xf32>
    %31 = tpu.matmul %27, %30, %cst_16 {dimension_numbers = #tpu.dot_dimension_numbers<[1], [0], [0], [1], [0, 0, 1, 1], [], []>} : vector<16x128xbf16>, vector<128x64xbf16>, vector<16x64xf32> -> vector<16x64xf32>
    %c0_17 = arith.constant 0 : index
    %c0_18 = arith.constant 0 : index
    %c0_19 = arith.constant 0 : index
    %c0_20 = arith.constant 0 : index
    %32 = vector.load %arg8[%c0_17, %c0_18, %c0_19, %c0_20] : memref<2x2x1x64xf32, #tpu.memory_space<vmem>>, vector<1x1x1x64xf32>
    %33 = vector.shape_cast %32 : vector<1x1x1x64xf32> to vector<1x64xf32>
    %34 = vector.broadcast %33 : vector<1x64xf32> to vector<16x64xf32>
    %35 = arith.addf %31, %34 : vector<16x64xf32>
    %c0_21 = arith.constant 0 : index
    %c0_22 = arith.constant 0 : index
    %c0_23 = arith.constant 0 : index
    %c0_24 = arith.constant 0 : index
    %36 = vector.load %arg9[%c0_21, %c0_22, %c0_23, %c0_24] : memref<2x2x128x64xbf16, #tpu.memory_space<vmem>>, vector<1x1x128x64xbf16>
    %37 = vector.shape_cast %36 : vector<1x1x128x64xbf16> to vector<128x64xbf16>
    %cst_25 = arith.constant dense<0.000000e+00> : vector<16x64xf32>
    %38 = tpu.matmul %27, %37, %cst_25 {dimension_numbers = #tpu.dot_dimension_numbers<[1], [0], [0], [1], [0, 0, 1, 1], [], []>} : vector<16x128xbf16>, vector<128x64xbf16>, vector<16x64xf32> -> vector<16x64xf32>
    %c0_26 = arith.constant 0 : index
    %c0_27 = arith.constant 0 : index
    %c0_28 = arith.constant 0 : index
    %c0_29 = arith.constant 0 : index
    %39 = vector.load %arg10[%c0_26, %c0_27, %c0_28, %c0_29] : memref<2x2x1x64xf32, #tpu.memory_space<vmem>>, vector<1x1x1x64xf32>
    %40 = vector.shape_cast %39 : vector<1x1x1x64xf32> to vector<1x64xf32>
    %41 = vector.broadcast %40 : vector<1x64xf32> to vector<16x64xf32>
    %42 = arith.addf %38, %41 : vector<16x64xf32>
    %c0_30 = arith.constant 0 : index
    %c0_31 = arith.constant 0 : index
    %c0_32 = arith.constant 0 : index
    %c0_33 = arith.constant 0 : index
    %43 = vector.load %arg11[%c0_30, %c0_31, %c0_32, %c0_33] : memref<2x2x128x64xbf16, #tpu.memory_space<vmem>>, vector<1x1x128x64xbf16>
    %44 = vector.shape_cast %43 : vector<1x1x128x64xbf16> to vector<128x64xbf16>
    %cst_34 = arith.constant dense<0.000000e+00> : vector<16x64xf32>
    %45 = tpu.matmul %27, %44, %cst_34 {dimension_numbers = #tpu.dot_dimension_numbers<[1], [0], [0], [1], [0, 0, 1, 1], [], []>} : vector<16x128xbf16>, vector<128x64xbf16>, vector<16x64xf32> -> vector<16x64xf32>
    %c0_35 = arith.constant 0 : index
    %c0_36 = arith.constant 0 : index
    %c0_37 = arith.constant 0 : index
    %c0_38 = arith.constant 0 : index
    %46 = vector.load %arg12[%c0_35, %c0_36, %c0_37, %c0_38] : memref<2x2x1x64xf32, #tpu.memory_space<vmem>>, vector<1x1x1x64xf32>
    %47 = vector.shape_cast %46 : vector<1x1x1x64xf32> to vector<1x64xf32>
    %48 = vector.broadcast %47 : vector<1x64xf32> to vector<16x64xf32>
    %49 = arith.addf %45, %48 : vector<16x64xf32>
    %50 = vector.shape_cast %35 : vector<16x64xf32> to vector<2x8x64xf32>
    %51 = arith.truncf %50 : vector<2x8x64xf32> to vector<2x8x64xbf16>
    %52 = vector.shape_cast %42 : vector<16x64xf32> to vector<2x8x64xf32>
    %53 = arith.truncf %52 : vector<2x8x64xf32> to vector<2x8x64xbf16>
    %54 = vector.shape_cast %49 : vector<16x64xf32> to vector<2x8x64xf32>
    %55 = arith.truncf %54 : vector<2x8x64xf32> to vector<2x8x64xbf16>
    "tpu.trace_start"() <{level = 10 : i32, message = "bqd,bkd->bqk"}> : () -> ()
    %cst_39 = arith.constant dense<0.000000e+00> : vector<2x8x8xf32>
    %56 = tpu.matmul %51, %53, %cst_39 {dimension_numbers = #tpu.dot_dimension_numbers<[2], [2], [1], [1], [0, 0, 0, 1, 1, 1], [0], [0]>} : vector<2x8x64xbf16>, vector<2x8x64xbf16>, vector<2x8x8xf32> -> vector<2x8x8xf32>
    "tpu.trace_stop"() : () -> ()
    %cst_40 = arith.constant 1.250000e-01 : f32
    %57 = vector.broadcast %cst_40 : f32 to vector<2x8x8xf32>
    %58 = arith.mulf %56, %57 : vector<2x8x8xf32>
    %59 = vector.broadcast %1 : vector<2x1x8xf32> to vector<2x8x8xf32>
    %60 = arith.addf %58, %59 : vector<2x8x8xf32>
    %cst_41 = arith.constant dense<0xFF800000> : vector<2x8xf32>
    %61 = vector.multi_reduction <maximumf>, %60, %cst_41 [2] : vector<2x8x8xf32> to vector<2x8xf32>
    %62 = vector.shape_cast %61 : vector<2x8xf32> to vector<2x8x1xf32>
    %63 = vector.broadcast %62 : vector<2x8x1xf32> to vector<2x8x8xf32>
    %64 = arith.subf %60, %63 : vector<2x8x8xf32>
    %65 = math.exp %64 : vector<2x8x8xf32>
    %cst_42 = arith.constant dense<0.000000e+00> : vector<2x8xf32>
    %66 = vector.multi_reduction <add>, %65, %cst_42 [2] : vector<2x8x8xf32> to vector<2x8xf32>
    %67 = vector.shape_cast %66 : vector<2x8xf32> to vector<2x8x1xf32>
    %68 = tpu.reciprocal %67 {approx = true} : vector<2x8x1xf32> -> vector<2x8x1xf32>
    %69 = vector.broadcast %68 : vector<2x8x1xf32> to vector<2x8x8xf32>
    %70 = arith.mulf %65, %69 : vector<2x8x8xf32>
    %71 = arith.truncf %70 : vector<2x8x8xf32> to vector<2x8x8xbf16>
    "tpu.trace_start"() <{level = 10 : i32, message = "bqk,bkd->bqd"}> : () -> ()
    %cst_43 = arith.constant dense<0.000000e+00> : vector<2x8x64xf32>
    %72 = tpu.matmul %71, %55, %cst_43 {dimension_numbers = #tpu.dot_dimension_numbers<[2], [1], [1], [2], [0, 0, 0, 1, 1, 2], [0], [0]>} : vector<2x8x8xbf16>, vector<2x8x64xbf16>, vector<2x8x64xf32> -> vector<2x8x64xf32>
    "tpu.trace_stop"() : () -> ()
    %73 = vector.shape_cast %72 : vector<2x8x64xf32> to vector<16x64xf32>
    %74 = arith.truncf %73 : vector<16x64xf32> to vector<16x64xbf16>
    %c0_44 = arith.constant 0 : index
    %c0_45 = arith.constant 0 : index
    %c0_46 = arith.constant 0 : index
    %c0_47 = arith.constant 0 : index
    %75 = vector.load %arg13[%c0_44, %c0_45, %c0_46, %c0_47] : memref<2x2x64x128xbf16, #tpu.memory_space<vmem>>, vector<1x1x64x128xbf16>
    %76 = vector.shape_cast %75 : vector<1x1x64x128xbf16> to vector<64x128xbf16>
    %cst_48 = arith.constant dense<0.000000e+00> : vector<16x128xf32>
    %77 = tpu.matmul %74, %76, %cst_48 {dimension_numbers = #tpu.dot_dimension_numbers<[1], [0], [0], [1], [0, 0, 1, 1], [], []>} : vector<16x64xbf16>, vector<64x128xbf16>, vector<16x128xf32> -> vector<16x128xf32>
    %78 = arith.addf %28, %77 : vector<16x128xf32>
    %c0_49 = arith.constant 0 : index
    %c1 = arith.constant 1 : index
    %c0_50 = arith.constant 0 : index
    %c0_51 = arith.constant 0 : index
    %79 = vector.load %arg7[%c0_49, %c1, %c0_50, %c0_51] : memref<2x2x128x64xbf16, #tpu.memory_space<vmem>>, vector<1x1x128x64xbf16>
    %80 = vector.shape_cast %79 : vector<1x1x128x64xbf16> to vector<128x64xbf16>
    %cst_52 = arith.constant dense<0.000000e+00> : vector<16x64xf32>
    %81 = tpu.matmul %27, %80, %cst_52 {dimension_numbers = #tpu.dot_dimension_numbers<[1], [0], [0], [1], [0, 0, 1, 1], [], []>} : vector<16x128xbf16>, vector<128x64xbf16>, vector<16x64xf32> -> vector<16x64xf32>
    %c0_53 = arith.constant 0 : index
    %c1_54 = arith.constant 1 : index
    %c0_55 = arith.constant 0 : index
    %c0_56 = arith.constant 0 : index
    %82 = vector.load %arg8[%c0_53, %c1_54, %c0_55, %c0_56] : memref<2x2x1x64xf32, #tpu.memory_space<vmem>>, vector<1x1x1x64xf32>
    %83 = vector.shape_cast %82 : vector<1x1x1x64xf32> to vector<1x64xf32>
    %84 = vector.broadcast %83 : vector<1x64xf32> to vector<16x64xf32>
    %85 = arith.addf %81, %84 : vector<16x64xf32>
    %c0_57 = arith.constant 0 : index
    %c1_58 = arith.constant 1 : index
    %c0_59 = arith.constant 0 : index
    %c0_60 = arith.constant 0 : index
    %86 = vector.load %arg9[%c0_57, %c1_58, %c0_59, %c0_60] : memref<2x2x128x64xbf16, #tpu.memory_space<vmem>>, vector<1x1x128x64xbf16>
    %87 = vector.shape_cast %86 : vector<1x1x128x64xbf16> to vector<128x64xbf16>
    %cst_61 = arith.constant dense<0.000000e+00> : vector<16x64xf32>
    %88 = tpu.matmul %27, %87, %cst_61 {dimension_numbers = #tpu.dot_dimension_numbers<[1], [0], [0], [1], [0, 0, 1, 1], [], []>} : vector<16x128xbf16>, vector<128x64xbf16>, vector<16x64xf32> -> vector<16x64xf32>
    %c0_62 = arith.constant 0 : index
    %c1_63 = arith.constant 1 : index
    %c0_64 = arith.constant 0 : index
    %c0_65 = arith.constant 0 : index
    %89 = vector.load %arg10[%c0_62, %c1_63, %c0_64, %c0_65] : memref<2x2x1x64xf32, #tpu.memory_space<vmem>>, vector<1x1x1x64xf32>
    %90 = vector.shape_cast %89 : vector<1x1x1x64xf32> to vector<1x64xf32>
    %91 = vector.broadcast %90 : vector<1x64xf32> to vector<16x64xf32>
    %92 = arith.addf %88, %91 : vector<16x64xf32>
    %c0_66 = arith.constant 0 : index
    %c1_67 = arith.constant 1 : index
    %c0_68 = arith.constant 0 : index
    %c0_69 = arith.constant 0 : index
    %93 = vector.load %arg11[%c0_66, %c1_67, %c0_68, %c0_69] : memref<2x2x128x64xbf16, #tpu.memory_space<vmem>>, vector<1x1x128x64xbf16>
    %94 = vector.shape_cast %93 : vector<1x1x128x64xbf16> to vector<128x64xbf16>
    %cst_70 = arith.constant dense<0.000000e+00> : vector<16x64xf32>
    %95 = tpu.matmul %27, %94, %cst_70 {dimension_numbers = #tpu.dot_dimension_numbers<[1], [0], [0], [1], [0, 0, 1, 1], [], []>} : vector<16x128xbf16>, vector<128x64xbf16>, vector<16x64xf32> -> vector<16x64xf32>
    %c0_71 = arith.constant 0 : index
    %c1_72 = arith.constant 1 : index
    %c0_73 = arith.constant 0 : index
    %c0_74 = arith.constant 0 : index
    %96 = vector.load %arg12[%c0_71, %c1_72, %c0_73, %c0_74] : memref<2x2x1x64xf32, #tpu.memory_space<vmem>>, vector<1x1x1x64xf32>
    %97 = vector.shape_cast %96 : vector<1x1x1x64xf32> to vector<1x64xf32>
    %98 = vector.broadcast %97 : vector<1x64xf32> to vector<16x64xf32>
    %99 = arith.addf %95, %98 : vector<16x64xf32>
    %100 = vector.shape_cast %85 : vector<16x64xf32> to vector<2x8x64xf32>
    %101 = arith.truncf %100 : vector<2x8x64xf32> to vector<2x8x64xbf16>
    %102 = vector.shape_cast %92 : vector<16x64xf32> to vector<2x8x64xf32>
    %103 = arith.truncf %102 : vector<2x8x64xf32> to vector<2x8x64xbf16>
    %104 = vector.shape_cast %99 : vector<16x64xf32> to vector<2x8x64xf32>
    %105 = arith.truncf %104 : vector<2x8x64xf32> to vector<2x8x64xbf16>
    "tpu.trace_start"() <{level = 10 : i32, message = "bqd,bkd->bqk"}> : () -> ()
    %cst_75 = arith.constant dense<0.000000e+00> : vector<2x8x8xf32>
    %106 = tpu.matmul %101, %103, %cst_75 {dimension_numbers = #tpu.dot_dimension_numbers<[2], [2], [1], [1], [0, 0, 0, 1, 1, 1], [0], [0]>} : vector<2x8x64xbf16>, vector<2x8x64xbf16>, vector<2x8x8xf32> -> vector<2x8x8xf32>
    "tpu.trace_stop"() : () -> ()
    %cst_76 = arith.constant 1.250000e-01 : f32
    %107 = vector.broadcast %cst_76 : f32 to vector<2x8x8xf32>
    %108 = arith.mulf %106, %107 : vector<2x8x8xf32>
    %109 = vector.broadcast %1 : vector<2x1x8xf32> to vector<2x8x8xf32>
    %110 = arith.addf %108, %109 : vector<2x8x8xf32>
    %cst_77 = arith.constant dense<0xFF800000> : vector<2x8xf32>
    %111 = vector.multi_reduction <maximumf>, %110, %cst_77 [2] : vector<2x8x8xf32> to vector<2x8xf32>
    %112 = vector.shape_cast %111 : vector<2x8xf32> to vector<2x8x1xf32>
    %113 = vector.broadcast %112 : vector<2x8x1xf32> to vector<2x8x8xf32>
    %114 = arith.subf %110, %113 : vector<2x8x8xf32>
    %115 = math.exp %114 : vector<2x8x8xf32>
    %cst_78 = arith.constant dense<0.000000e+00> : vector<2x8xf32>
    %116 = vector.multi_reduction <add>, %115, %cst_78 [2] : vector<2x8x8xf32> to vector<2x8xf32>
    %117 = vector.shape_cast %116 : vector<2x8xf32> to vector<2x8x1xf32>
    %118 = tpu.reciprocal %117 {approx = true} : vector<2x8x1xf32> -> vector<2x8x1xf32>
    %119 = vector.broadcast %118 : vector<2x8x1xf32> to vector<2x8x8xf32>
    %120 = arith.mulf %115, %119 : vector<2x8x8xf32>
    %121 = arith.truncf %120 : vector<2x8x8xf32> to vector<2x8x8xbf16>
    "tpu.trace_start"() <{level = 10 : i32, message = "bqk,bkd->bqd"}> : () -> ()
    %cst_79 = arith.constant dense<0.000000e+00> : vector<2x8x64xf32>
    %122 = tpu.matmul %121, %105, %cst_79 {dimension_numbers = #tpu.dot_dimension_numbers<[2], [1], [1], [2], [0, 0, 0, 1, 1, 2], [0], [0]>} : vector<2x8x8xbf16>, vector<2x8x64xbf16>, vector<2x8x64xf32> -> vector<2x8x64xf32>
    "tpu.trace_stop"() : () -> ()
    %123 = vector.shape_cast %122 : vector<2x8x64xf32> to vector<16x64xf32>
    %124 = arith.truncf %123 : vector<16x64xf32> to vector<16x64xbf16>
    %c0_80 = arith.constant 0 : index
    %c1_81 = arith.constant 1 : index
    %c0_82 = arith.constant 0 : index
    %c0_83 = arith.constant 0 : index
    %125 = vector.load %arg13[%c0_80, %c1_81, %c0_82, %c0_83] : memref<2x2x64x128xbf16, #tpu.memory_space<vmem>>, vector<1x1x64x128xbf16>
    %126 = vector.shape_cast %125 : vector<1x1x64x128xbf16> to vector<64x128xbf16>
    %cst_84 = arith.constant dense<0.000000e+00> : vector<16x128xf32>
    %127 = tpu.matmul %124, %126, %cst_84 {dimension_numbers = #tpu.dot_dimension_numbers<[1], [0], [0], [1], [0, 0, 1, 1], [], []>} : vector<16x64xbf16>, vector<64x128xbf16>, vector<16x128xf32> -> vector<16x128xf32>
    %128 = arith.addf %78, %127 : vector<16x128xf32>
    %c0_85 = arith.constant 0 : index
    %c0_86 = arith.constant 0 : index
    %c0_87 = arith.constant 0 : index
    %129 = vector.load %arg14[%c0_85, %c0_86, %c0_87] : memref<2x1x128xf32, #tpu.memory_space<vmem>>, vector<1x1x128xf32>
    %130 = vector.shape_cast %129 : vector<1x1x128xf32> to vector<1x128xf32>
    %131 = vector.broadcast %130 : vector<1x128xf32> to vector<16x128xf32>
    %132 = arith.addf %128, %131 : vector<16x128xf32>
    %133 = arith.addf %26, %132 : vector<16x128xf32>
    %c0_88 = arith.constant 0 : index
    %c0_89 = arith.constant 0 : index
    %c0_90 = arith.constant 0 : index
    %134 = vector.load %arg15[%c0_88, %c0_89, %c0_90] : memref<2x1x128xf32, #tpu.memory_space<vmem>>, vector<1x1x128xf32>
    %135 = vector.shape_cast %134 : vector<1x1x128xf32> to vector<1x128xf32>
    %c0_91 = arith.constant 0 : index
    %c0_92 = arith.constant 0 : index
    %c0_93 = arith.constant 0 : index
    %136 = vector.load %arg16[%c0_91, %c0_92, %c0_93] : memref<2x1x128xf32, #tpu.memory_space<vmem>>, vector<1x1x128xf32>
    %137 = vector.shape_cast %136 : vector<1x1x128xf32> to vector<1x128xf32>
    %cst_94 = arith.constant dense<0.000000e+00> : vector<16xf32>
    %138 = vector.multi_reduction <add>, %133, %cst_94 [1] : vector<16x128xf32> to vector<16xf32>
    %139 = vector.shape_cast %138 : vector<16xf32> to vector<16x1xf32>
    %cst_95 = arith.constant 1.280000e+02 : f32
    %140 = vector.broadcast %cst_95 : f32 to vector<16x1xf32>
    %141 = arith.divf %139, %140 : vector<16x1xf32>
    %142 = vector.broadcast %141 : vector<16x1xf32> to vector<16x128xf32>
    %143 = arith.subf %133, %142 : vector<16x128xf32>
    %144 = arith.mulf %143, %143 : vector<16x128xf32>
    %cst_96 = arith.constant dense<0.000000e+00> : vector<16xf32>
    %145 = vector.multi_reduction <add>, %144, %cst_96 [1] : vector<16x128xf32> to vector<16xf32>
    %146 = vector.shape_cast %145 : vector<16xf32> to vector<16x1xf32>
    %cst_97 = arith.constant 1.280000e+02 : f32
    %147 = vector.broadcast %cst_97 : f32 to vector<16x1xf32>
    %148 = arith.divf %146, %147 : vector<16x1xf32>
    %149 = vector.broadcast %141 : vector<16x1xf32> to vector<16x128xf32>
    %150 = arith.subf %133, %149 : vector<16x128xf32>
    %cst_98 = arith.constant 9.99999996E-13 : f32
    %151 = vector.broadcast %cst_98 : f32 to vector<16x1xf32>
    %152 = arith.addf %148, %151 : vector<16x1xf32>
    %153 = math.rsqrt %152 : vector<16x1xf32>
    %154 = vector.broadcast %153 : vector<16x1xf32> to vector<16x128xf32>
    %155 = arith.mulf %150, %154 : vector<16x128xf32>
    %156 = vector.broadcast %135 : vector<1x128xf32> to vector<16x128xf32>
    %157 = arith.mulf %155, %156 : vector<16x128xf32>
    %158 = vector.broadcast %137 : vector<1x128xf32> to vector<16x128xf32>
    %159 = arith.addf %157, %158 : vector<16x128xf32>
    %160 = arith.truncf %159 : vector<16x128xf32> to vector<16x128xbf16>
    %c0_99 = arith.constant 0 : index
    %c0_100 = arith.constant 0 : index
    %c0_101 = arith.constant 0 : index
    %161 = vector.load %arg17[%c0_99, %c0_100, %c0_101] : memref<2x128x256xbf16, #tpu.memory_space<vmem>>, vector<1x128x256xbf16>
    %162 = vector.shape_cast %161 : vector<1x128x256xbf16> to vector<128x256xbf16>
    %cst_102 = arith.constant dense<0.000000e+00> : vector<16x256xf32>
    %163 = tpu.matmul %160, %162, %cst_102 {dimension_numbers = #tpu.dot_dimension_numbers<[1], [0], [0], [1], [0, 0, 1, 1], [], []>} : vector<16x128xbf16>, vector<128x256xbf16>, vector<16x256xf32> -> vector<16x256xf32>
    %c0_103 = arith.constant 0 : index
    %c0_104 = arith.constant 0 : index
    %c0_105 = arith.constant 0 : index
    %164 = vector.load %arg18[%c0_103, %c0_104, %c0_105] : memref<2x1x256xf32, #tpu.memory_space<vmem>>, vector<1x1x256xf32>
    %165 = vector.shape_cast %164 : vector<1x1x256xf32> to vector<1x256xf32>
    %166 = vector.broadcast %165 : vector<1x256xf32> to vector<16x256xf32>
    %167 = arith.addf %163, %166 : vector<16x256xf32>
    %cst_106 = arith.constant 5.000000e-01 : f32
    %168 = vector.broadcast %cst_106 : f32 to vector<16x256xf32>
    %169 = arith.mulf %168, %167 : vector<16x256xf32>
    %cst_107 = arith.constant 4.471500e-02 : f32
    %170 = vector.broadcast %cst_107 : f32 to vector<16x256xf32>
    %171 = arith.mulf %170, %167 : vector<16x256xf32>
    %172 = arith.mulf %171, %167 : vector<16x256xf32>
    %173 = arith.mulf %172, %167 : vector<16x256xf32>
    %174 = arith.addf %167, %173 : vector<16x256xf32>
    %cst_108 = arith.constant 0.797884583 : f32
    %175 = vector.broadcast %cst_108 : f32 to vector<16x256xf32>
    %176 = arith.mulf %175, %174 : vector<16x256xf32>
    %177 = math.tanh %176 : vector<16x256xf32>
    %cst_109 = arith.constant 1.000000e+00 : f32
    %178 = vector.broadcast %cst_109 : f32 to vector<16x256xf32>
    %179 = arith.addf %178, %177 : vector<16x256xf32>
    %180 = arith.mulf %169, %179 : vector<16x256xf32>
    %181 = arith.truncf %180 : vector<16x256xf32> to vector<16x256xbf16>
    %c0_110 = arith.constant 0 : index
    %c0_111 = arith.constant 0 : index
    %c0_112 = arith.constant 0 : index
    %182 = vector.load %arg19[%c0_110, %c0_111, %c0_112] : memref<2x256x128xbf16, #tpu.memory_space<vmem>>, vector<1x256x128xbf16>
    %183 = vector.shape_cast %182 : vector<1x256x128xbf16> to vector<256x128xbf16>
    %cst_113 = arith.constant dense<0.000000e+00> : vector<16x128xf32>
    %184 = tpu.matmul %181, %183, %cst_113 {dimension_numbers = #tpu.dot_dimension_numbers<[1], [0], [0], [1], [0, 0, 1, 1], [], []>} : vector<16x256xbf16>, vector<256x128xbf16>, vector<16x128xf32> -> vector<16x128xf32>
    %c0_114 = arith.constant 0 : index
    %c0_115 = arith.constant 0 : index
    %c0_116 = arith.constant 0 : index
    %185 = vector.load %arg20[%c0_114, %c0_115, %c0_116] : memref<2x1x128xf32, #tpu.memory_space<vmem>>, vector<1x1x128xf32>
    %186 = vector.shape_cast %185 : vector<1x1x128xf32> to vector<1x128xf32>
    %187 = vector.broadcast %186 : vector<1x128xf32> to vector<16x128xf32>
    %188 = arith.addf %184, %187 : vector<16x128xf32>
    %189 = arith.addf %159, %188 : vector<16x128xf32>
    %c0_117 = arith.constant 0 : index
    %c0_118 = arith.constant 0 : index
    %c0_119 = arith.constant 0 : index
    %190 = vector.load %arg21[%c0_117, %c0_118, %c0_119] : memref<2x1x128xf32, #tpu.memory_space<vmem>>, vector<1x1x128xf32>
    %191 = vector.shape_cast %190 : vector<1x1x128xf32> to vector<1x128xf32>
    %c0_120 = arith.constant 0 : index
    %c0_121 = arith.constant 0 : index
    %c0_122 = arith.constant 0 : index
    %192 = vector.load %arg22[%c0_120, %c0_121, %c0_122] : memref<2x1x128xf32, #tpu.memory_space<vmem>>, vector<1x1x128xf32>
    %193 = vector.shape_cast %192 : vector<1x1x128xf32> to vector<1x128xf32>
    %cst_123 = arith.constant dense<0.000000e+00> : vector<16xf32>
    %194 = vector.multi_reduction <add>, %189, %cst_123 [1] : vector<16x128xf32> to vector<16xf32>
    %195 = vector.shape_cast %194 : vector<16xf32> to vector<16x1xf32>
    %cst_124 = arith.constant 1.280000e+02 : f32
    %196 = vector.broadcast %cst_124 : f32 to vector<16x1xf32>
    %197 = arith.divf %195, %196 : vector<16x1xf32>
    %198 = vector.broadcast %197 : vector<16x1xf32> to vector<16x128xf32>
    %199 = arith.subf %189, %198 : vector<16x128xf32>
    %200 = arith.mulf %199, %199 : vector<16x128xf32>
    %cst_125 = arith.constant dense<0.000000e+00> : vector<16xf32>
    %201 = vector.multi_reduction <add>, %200, %cst_125 [1] : vector<16x128xf32> to vector<16xf32>
    %202 = vector.shape_cast %201 : vector<16xf32> to vector<16x1xf32>
    %cst_126 = arith.constant 1.280000e+02 : f32
    %203 = vector.broadcast %cst_126 : f32 to vector<16x1xf32>
    %204 = arith.divf %202, %203 : vector<16x1xf32>
    %205 = vector.broadcast %197 : vector<16x1xf32> to vector<16x128xf32>
    %206 = arith.subf %189, %205 : vector<16x128xf32>
    %cst_127 = arith.constant 9.99999996E-13 : f32
    %207 = vector.broadcast %cst_127 : f32 to vector<16x1xf32>
    %208 = arith.addf %204, %207 : vector<16x1xf32>
    %209 = math.rsqrt %208 : vector<16x1xf32>
    %210 = vector.broadcast %209 : vector<16x1xf32> to vector<16x128xf32>
    %211 = arith.mulf %206, %210 : vector<16x128xf32>
    %212 = vector.broadcast %191 : vector<1x128xf32> to vector<16x128xf32>
    %213 = arith.mulf %211, %212 : vector<16x128xf32>
    %214 = vector.broadcast %193 : vector<1x128xf32> to vector<16x128xf32>
    %215 = arith.addf %213, %214 : vector<16x128xf32>
    %216 = arith.truncf %215 : vector<16x128xf32> to vector<16x128xbf16>
    %cst_128 = arith.constant 0.000000e+00 : f32
    %217 = vector.broadcast %cst_128 : f32 to vector<16x128xf32>
    %c1_129 = arith.constant 1 : index
    %c0_130 = arith.constant 0 : index
    %c0_131 = arith.constant 0 : index
    %c0_132 = arith.constant 0 : index
    %218 = vector.load %arg7[%c1_129, %c0_130, %c0_131, %c0_132] : memref<2x2x128x64xbf16, #tpu.memory_space<vmem>>, vector<1x1x128x64xbf16>
    %219 = vector.shape_cast %218 : vector<1x1x128x64xbf16> to vector<128x64xbf16>
    %cst_133 = arith.constant dense<0.000000e+00> : vector<16x64xf32>
    %220 = tpu.matmul %216, %219, %cst_133 {dimension_numbers = #tpu.dot_dimension_numbers<[1], [0], [0], [1], [0, 0, 1, 1], [], []>} : vector<16x128xbf16>, vector<128x64xbf16>, vector<16x64xf32> -> vector<16x64xf32>
    %c1_134 = arith.constant 1 : index
    %c0_135 = arith.constant 0 : index
    %c0_136 = arith.constant 0 : index
    %c0_137 = arith.constant 0 : index
    %221 = vector.load %arg8[%c1_134, %c0_135, %c0_136, %c0_137] : memref<2x2x1x64xf32, #tpu.memory_space<vmem>>, vector<1x1x1x64xf32>
    %222 = vector.shape_cast %221 : vector<1x1x1x64xf32> to vector<1x64xf32>
    %223 = vector.broadcast %222 : vector<1x64xf32> to vector<16x64xf32>
    %224 = arith.addf %220, %223 : vector<16x64xf32>
    %c1_138 = arith.constant 1 : index
    %c0_139 = arith.constant 0 : index
    %c0_140 = arith.constant 0 : index
    %c0_141 = arith.constant 0 : index
    %225 = vector.load %arg9[%c1_138, %c0_139, %c0_140, %c0_141] : memref<2x2x128x64xbf16, #tpu.memory_space<vmem>>, vector<1x1x128x64xbf16>
    %226 = vector.shape_cast %225 : vector<1x1x128x64xbf16> to vector<128x64xbf16>
    %cst_142 = arith.constant dense<0.000000e+00> : vector<16x64xf32>
    %227 = tpu.matmul %216, %226, %cst_142 {dimension_numbers = #tpu.dot_dimension_numbers<[1], [0], [0], [1], [0, 0, 1, 1], [], []>} : vector<16x128xbf16>, vector<128x64xbf16>, vector<16x64xf32> -> vector<16x64xf32>
    %c1_143 = arith.constant 1 : index
    %c0_144 = arith.constant 0 : index
    %c0_145 = arith.constant 0 : index
    %c0_146 = arith.constant 0 : index
    %228 = vector.load %arg10[%c1_143, %c0_144, %c0_145, %c0_146] : memref<2x2x1x64xf32, #tpu.memory_space<vmem>>, vector<1x1x1x64xf32>
    %229 = vector.shape_cast %228 : vector<1x1x1x64xf32> to vector<1x64xf32>
    %230 = vector.broadcast %229 : vector<1x64xf32> to vector<16x64xf32>
    %231 = arith.addf %227, %230 : vector<16x64xf32>
    %c1_147 = arith.constant 1 : index
    %c0_148 = arith.constant 0 : index
    %c0_149 = arith.constant 0 : index
    %c0_150 = arith.constant 0 : index
    %232 = vector.load %arg11[%c1_147, %c0_148, %c0_149, %c0_150] : memref<2x2x128x64xbf16, #tpu.memory_space<vmem>>, vector<1x1x128x64xbf16>
    %233 = vector.shape_cast %232 : vector<1x1x128x64xbf16> to vector<128x64xbf16>
    %cst_151 = arith.constant dense<0.000000e+00> : vector<16x64xf32>
    %234 = tpu.matmul %216, %233, %cst_151 {dimension_numbers = #tpu.dot_dimension_numbers<[1], [0], [0], [1], [0, 0, 1, 1], [], []>} : vector<16x128xbf16>, vector<128x64xbf16>, vector<16x64xf32> -> vector<16x64xf32>
    %c1_152 = arith.constant 1 : index
    %c0_153 = arith.constant 0 : index
    %c0_154 = arith.constant 0 : index
    %c0_155 = arith.constant 0 : index
    %235 = vector.load %arg12[%c1_152, %c0_153, %c0_154, %c0_155] : memref<2x2x1x64xf32, #tpu.memory_space<vmem>>, vector<1x1x1x64xf32>
    %236 = vector.shape_cast %235 : vector<1x1x1x64xf32> to vector<1x64xf32>
    %237 = vector.broadcast %236 : vector<1x64xf32> to vector<16x64xf32>
    %238 = arith.addf %234, %237 : vector<16x64xf32>
    %239 = vector.shape_cast %224 : vector<16x64xf32> to vector<2x8x64xf32>
    %240 = arith.truncf %239 : vector<2x8x64xf32> to vector<2x8x64xbf16>
    %241 = vector.shape_cast %231 : vector<16x64xf32> to vector<2x8x64xf32>
    %242 = arith.truncf %241 : vector<2x8x64xf32> to vector<2x8x64xbf16>
    %243 = vector.shape_cast %238 : vector<16x64xf32> to vector<2x8x64xf32>
    %244 = arith.truncf %243 : vector<2x8x64xf32> to vector<2x8x64xbf16>
    "tpu.trace_start"() <{level = 10 : i32, message = "bqd,bkd->bqk"}> : () -> ()
    %cst_156 = arith.constant dense<0.000000e+00> : vector<2x8x8xf32>
    %245 = tpu.matmul %240, %242, %cst_156 {dimension_numbers = #tpu.dot_dimension_numbers<[2], [2], [1], [1], [0, 0, 0, 1, 1, 1], [0], [0]>} : vector<2x8x64xbf16>, vector<2x8x64xbf16>, vector<2x8x8xf32> -> vector<2x8x8xf32>
    "tpu.trace_stop"() : () -> ()
    %cst_157 = arith.constant 1.250000e-01 : f32
    %246 = vector.broadcast %cst_157 : f32 to vector<2x8x8xf32>
    %247 = arith.mulf %245, %246 : vector<2x8x8xf32>
    %248 = vector.broadcast %1 : vector<2x1x8xf32> to vector<2x8x8xf32>
    %249 = arith.addf %247, %248 : vector<2x8x8xf32>
    %cst_158 = arith.constant dense<0xFF800000> : vector<2x8xf32>
    %250 = vector.multi_reduction <maximumf>, %249, %cst_158 [2] : vector<2x8x8xf32> to vector<2x8xf32>
    %251 = vector.shape_cast %250 : vector<2x8xf32> to vector<2x8x1xf32>
    %252 = vector.broadcast %251 : vector<2x8x1xf32> to vector<2x8x8xf32>
    %253 = arith.subf %249, %252 : vector<2x8x8xf32>
    %254 = math.exp %253 : vector<2x8x8xf32>
    %cst_159 = arith.constant dense<0.000000e+00> : vector<2x8xf32>
    %255 = vector.multi_reduction <add>, %254, %cst_159 [2] : vector<2x8x8xf32> to vector<2x8xf32>
    %256 = vector.shape_cast %255 : vector<2x8xf32> to vector<2x8x1xf32>
    %257 = tpu.reciprocal %256 {approx = true} : vector<2x8x1xf32> -> vector<2x8x1xf32>
    %258 = vector.broadcast %257 : vector<2x8x1xf32> to vector<2x8x8xf32>
    %259 = arith.mulf %254, %258 : vector<2x8x8xf32>
    %260 = arith.truncf %259 : vector<2x8x8xf32> to vector<2x8x8xbf16>
    "tpu.trace_start"() <{level = 10 : i32, message = "bqk,bkd->bqd"}> : () -> ()
    %cst_160 = arith.constant dense<0.000000e+00> : vector<2x8x64xf32>
    %261 = tpu.matmul %260, %244, %cst_160 {dimension_numbers = #tpu.dot_dimension_numbers<[2], [1], [1], [2], [0, 0, 0, 1, 1, 2], [0], [0]>} : vector<2x8x8xbf16>, vector<2x8x64xbf16>, vector<2x8x64xf32> -> vector<2x8x64xf32>
    "tpu.trace_stop"() : () -> ()
    %262 = vector.shape_cast %261 : vector<2x8x64xf32> to vector<16x64xf32>
    %263 = arith.truncf %262 : vector<16x64xf32> to vector<16x64xbf16>
    %c1_161 = arith.constant 1 : index
    %c0_162 = arith.constant 0 : index
    %c0_163 = arith.constant 0 : index
    %c0_164 = arith.constant 0 : index
    %264 = vector.load %arg13[%c1_161, %c0_162, %c0_163, %c0_164] : memref<2x2x64x128xbf16, #tpu.memory_space<vmem>>, vector<1x1x64x128xbf16>
    %265 = vector.shape_cast %264 : vector<1x1x64x128xbf16> to vector<64x128xbf16>
    %cst_165 = arith.constant dense<0.000000e+00> : vector<16x128xf32>
    %266 = tpu.matmul %263, %265, %cst_165 {dimension_numbers = #tpu.dot_dimension_numbers<[1], [0], [0], [1], [0, 0, 1, 1], [], []>} : vector<16x64xbf16>, vector<64x128xbf16>, vector<16x128xf32> -> vector<16x128xf32>
    %267 = arith.addf %217, %266 : vector<16x128xf32>
    %c1_166 = arith.constant 1 : index
    %c1_167 = arith.constant 1 : index
    %c0_168 = arith.constant 0 : index
    %c0_169 = arith.constant 0 : index
    %268 = vector.load %arg7[%c1_166, %c1_167, %c0_168, %c0_169] : memref<2x2x128x64xbf16, #tpu.memory_space<vmem>>, vector<1x1x128x64xbf16>
    %269 = vector.shape_cast %268 : vector<1x1x128x64xbf16> to vector<128x64xbf16>
    %cst_170 = arith.constant dense<0.000000e+00> : vector<16x64xf32>
    %270 = tpu.matmul %216, %269, %cst_170 {dimension_numbers = #tpu.dot_dimension_numbers<[1], [0], [0], [1], [0, 0, 1, 1], [], []>} : vector<16x128xbf16>, vector<128x64xbf16>, vector<16x64xf32> -> vector<16x64xf32>
    %c1_171 = arith.constant 1 : index
    %c1_172 = arith.constant 1 : index
    %c0_173 = arith.constant 0 : index
    %c0_174 = arith.constant 0 : index
    %271 = vector.load %arg8[%c1_171, %c1_172, %c0_173, %c0_174] : memref<2x2x1x64xf32, #tpu.memory_space<vmem>>, vector<1x1x1x64xf32>
    %272 = vector.shape_cast %271 : vector<1x1x1x64xf32> to vector<1x64xf32>
    %273 = vector.broadcast %272 : vector<1x64xf32> to vector<16x64xf32>
    %274 = arith.addf %270, %273 : vector<16x64xf32>
    %c1_175 = arith.constant 1 : index
    %c1_176 = arith.constant 1 : index
    %c0_177 = arith.constant 0 : index
    %c0_178 = arith.constant 0 : index
    %275 = vector.load %arg9[%c1_175, %c1_176, %c0_177, %c0_178] : memref<2x2x128x64xbf16, #tpu.memory_space<vmem>>, vector<1x1x128x64xbf16>
    %276 = vector.shape_cast %275 : vector<1x1x128x64xbf16> to vector<128x64xbf16>
    %cst_179 = arith.constant dense<0.000000e+00> : vector<16x64xf32>
    %277 = tpu.matmul %216, %276, %cst_179 {dimension_numbers = #tpu.dot_dimension_numbers<[1], [0], [0], [1], [0, 0, 1, 1], [], []>} : vector<16x128xbf16>, vector<128x64xbf16>, vector<16x64xf32> -> vector<16x64xf32>
    %c1_180 = arith.constant 1 : index
    %c1_181 = arith.constant 1 : index
    %c0_182 = arith.constant 0 : index
    %c0_183 = arith.constant 0 : index
    %278 = vector.load %arg10[%c1_180, %c1_181, %c0_182, %c0_183] : memref<2x2x1x64xf32, #tpu.memory_space<vmem>>, vector<1x1x1x64xf32>
    %279 = vector.shape_cast %278 : vector<1x1x1x64xf32> to vector<1x64xf32>
    %280 = vector.broadcast %279 : vector<1x64xf32> to vector<16x64xf32>
    %281 = arith.addf %277, %280 : vector<16x64xf32>
    %c1_184 = arith.constant 1 : index
    %c1_185 = arith.constant 1 : index
    %c0_186 = arith.constant 0 : index
    %c0_187 = arith.constant 0 : index
    %282 = vector.load %arg11[%c1_184, %c1_185, %c0_186, %c0_187] : memref<2x2x128x64xbf16, #tpu.memory_space<vmem>>, vector<1x1x128x64xbf16>
    %283 = vector.shape_cast %282 : vector<1x1x128x64xbf16> to vector<128x64xbf16>
    %cst_188 = arith.constant dense<0.000000e+00> : vector<16x64xf32>
    %284 = tpu.matmul %216, %283, %cst_188 {dimension_numbers = #tpu.dot_dimension_numbers<[1], [0], [0], [1], [0, 0, 1, 1], [], []>} : vector<16x128xbf16>, vector<128x64xbf16>, vector<16x64xf32> -> vector<16x64xf32>
    %c1_189 = arith.constant 1 : index
    %c1_190 = arith.constant 1 : index
    %c0_191 = arith.constant 0 : index
    %c0_192 = arith.constant 0 : index
    %285 = vector.load %arg12[%c1_189, %c1_190, %c0_191, %c0_192] : memref<2x2x1x64xf32, #tpu.memory_space<vmem>>, vector<1x1x1x64xf32>
    %286 = vector.shape_cast %285 : vector<1x1x1x64xf32> to vector<1x64xf32>
    %287 = vector.broadcast %286 : vector<1x64xf32> to vector<16x64xf32>
    %288 = arith.addf %284, %287 : vector<16x64xf32>
    %289 = vector.shape_cast %274 : vector<16x64xf32> to vector<2x8x64xf32>
    %290 = arith.truncf %289 : vector<2x8x64xf32> to vector<2x8x64xbf16>
    %291 = vector.shape_cast %281 : vector<16x64xf32> to vector<2x8x64xf32>
    %292 = arith.truncf %291 : vector<2x8x64xf32> to vector<2x8x64xbf16>
    %293 = vector.shape_cast %288 : vector<16x64xf32> to vector<2x8x64xf32>
    %294 = arith.truncf %293 : vector<2x8x64xf32> to vector<2x8x64xbf16>
    "tpu.trace_start"() <{level = 10 : i32, message = "bqd,bkd->bqk"}> : () -> ()
    %cst_193 = arith.constant dense<0.000000e+00> : vector<2x8x8xf32>
    %295 = tpu.matmul %290, %292, %cst_193 {dimension_numbers = #tpu.dot_dimension_numbers<[2], [2], [1], [1], [0, 0, 0, 1, 1, 1], [0], [0]>} : vector<2x8x64xbf16>, vector<2x8x64xbf16>, vector<2x8x8xf32> -> vector<2x8x8xf32>
    "tpu.trace_stop"() : () -> ()
    %cst_194 = arith.constant 1.250000e-01 : f32
    %296 = vector.broadcast %cst_194 : f32 to vector<2x8x8xf32>
    %297 = arith.mulf %295, %296 : vector<2x8x8xf32>
    %298 = vector.broadcast %1 : vector<2x1x8xf32> to vector<2x8x8xf32>
    %299 = arith.addf %297, %298 : vector<2x8x8xf32>
    %cst_195 = arith.constant dense<0xFF800000> : vector<2x8xf32>
    %300 = vector.multi_reduction <maximumf>, %299, %cst_195 [2] : vector<2x8x8xf32> to vector<2x8xf32>
    %301 = vector.shape_cast %300 : vector<2x8xf32> to vector<2x8x1xf32>
    %302 = vector.broadcast %301 : vector<2x8x1xf32> to vector<2x8x8xf32>
    %303 = arith.subf %299, %302 : vector<2x8x8xf32>
    %304 = math.exp %303 : vector<2x8x8xf32>
    %cst_196 = arith.constant dense<0.000000e+00> : vector<2x8xf32>
    %305 = vector.multi_reduction <add>, %304, %cst_196 [2] : vector<2x8x8xf32> to vector<2x8xf32>
    %306 = vector.shape_cast %305 : vector<2x8xf32> to vector<2x8x1xf32>
    %307 = tpu.reciprocal %306 {approx = true} : vector<2x8x1xf32> -> vector<2x8x1xf32>
    %308 = vector.broadcast %307 : vector<2x8x1xf32> to vector<2x8x8xf32>
    %309 = arith.mulf %304, %308 : vector<2x8x8xf32>
    %310 = arith.truncf %309 : vector<2x8x8xf32> to vector<2x8x8xbf16>
    "tpu.trace_start"() <{level = 10 : i32, message = "bqk,bkd->bqd"}> : () -> ()
    %cst_197 = arith.constant dense<0.000000e+00> : vector<2x8x64xf32>
    %311 = tpu.matmul %310, %294, %cst_197 {dimension_numbers = #tpu.dot_dimension_numbers<[2], [1], [1], [2], [0, 0, 0, 1, 1, 2], [0], [0]>} : vector<2x8x8xbf16>, vector<2x8x64xbf16>, vector<2x8x64xf32> -> vector<2x8x64xf32>
    "tpu.trace_stop"() : () -> ()
    %312 = vector.shape_cast %311 : vector<2x8x64xf32> to vector<16x64xf32>
    %313 = arith.truncf %312 : vector<16x64xf32> to vector<16x64xbf16>
    %c1_198 = arith.constant 1 : index
    %c1_199 = arith.constant 1 : index
    %c0_200 = arith.constant 0 : index
    %c0_201 = arith.constant 0 : index
    %314 = vector.load %arg13[%c1_198, %c1_199, %c0_200, %c0_201] : memref<2x2x64x128xbf16, #tpu.memory_space<vmem>>, vector<1x1x64x128xbf16>
    %315 = vector.shape_cast %314 : vector<1x1x64x128xbf16> to vector<64x128xbf16>
    %cst_202 = arith.constant dense<0.000000e+00> : vector<16x128xf32>
    %316 = tpu.matmul %313, %315, %cst_202 {dimension_numbers = #tpu.dot_dimension_numbers<[1], [0], [0], [1], [0, 0, 1, 1], [], []>} : vector<16x64xbf16>, vector<64x128xbf16>, vector<16x128xf32> -> vector<16x128xf32>
    %317 = arith.addf %267, %316 : vector<16x128xf32>
    %c1_203 = arith.constant 1 : index
    %c0_204 = arith.constant 0 : index
    %c0_205 = arith.constant 0 : index
    %318 = vector.load %arg14[%c1_203, %c0_204, %c0_205] : memref<2x1x128xf32, #tpu.memory_space<vmem>>, vector<1x1x128xf32>
    %319 = vector.shape_cast %318 : vector<1x1x128xf32> to vector<1x128xf32>
    %320 = vector.broadcast %319 : vector<1x128xf32> to vector<16x128xf32>
    %321 = arith.addf %317, %320 : vector<16x128xf32>
    %322 = arith.addf %215, %321 : vector<16x128xf32>
    %c1_206 = arith.constant 1 : index
    %c0_207 = arith.constant 0 : index
    %c0_208 = arith.constant 0 : index
    %323 = vector.load %arg15[%c1_206, %c0_207, %c0_208] : memref<2x1x128xf32, #tpu.memory_space<vmem>>, vector<1x1x128xf32>
    %324 = vector.shape_cast %323 : vector<1x1x128xf32> to vector<1x128xf32>
    %c1_209 = arith.constant 1 : index
    %c0_210 = arith.constant 0 : index
    %c0_211 = arith.constant 0 : index
    %325 = vector.load %arg16[%c1_209, %c0_210, %c0_211] : memref<2x1x128xf32, #tpu.memory_space<vmem>>, vector<1x1x128xf32>
    %326 = vector.shape_cast %325 : vector<1x1x128xf32> to vector<1x128xf32>
    %cst_212 = arith.constant dense<0.000000e+00> : vector<16xf32>
    %327 = vector.multi_reduction <add>, %322, %cst_212 [1] : vector<16x128xf32> to vector<16xf32>
    %328 = vector.shape_cast %327 : vector<16xf32> to vector<16x1xf32>
    %cst_213 = arith.constant 1.280000e+02 : f32
    %329 = vector.broadcast %cst_213 : f32 to vector<16x1xf32>
    %330 = arith.divf %328, %329 : vector<16x1xf32>
    %331 = vector.broadcast %330 : vector<16x1xf32> to vector<16x128xf32>
    %332 = arith.subf %322, %331 : vector<16x128xf32>
    %333 = arith.mulf %332, %332 : vector<16x128xf32>
    %cst_214 = arith.constant dense<0.000000e+00> : vector<16xf32>
    %334 = vector.multi_reduction <add>, %333, %cst_214 [1] : vector<16x128xf32> to vector<16xf32>
    %335 = vector.shape_cast %334 : vector<16xf32> to vector<16x1xf32>
    %cst_215 = arith.constant 1.280000e+02 : f32
    %336 = vector.broadcast %cst_215 : f32 to vector<16x1xf32>
    %337 = arith.divf %335, %336 : vector<16x1xf32>
    %338 = vector.broadcast %330 : vector<16x1xf32> to vector<16x128xf32>
    %339 = arith.subf %322, %338 : vector<16x128xf32>
    %cst_216 = arith.constant 9.99999996E-13 : f32
    %340 = vector.broadcast %cst_216 : f32 to vector<16x1xf32>
    %341 = arith.addf %337, %340 : vector<16x1xf32>
    %342 = math.rsqrt %341 : vector<16x1xf32>
    %343 = vector.broadcast %342 : vector<16x1xf32> to vector<16x128xf32>
    %344 = arith.mulf %339, %343 : vector<16x128xf32>
    %345 = vector.broadcast %324 : vector<1x128xf32> to vector<16x128xf32>
    %346 = arith.mulf %344, %345 : vector<16x128xf32>
    %347 = vector.broadcast %326 : vector<1x128xf32> to vector<16x128xf32>
    %348 = arith.addf %346, %347 : vector<16x128xf32>
    %349 = arith.truncf %348 : vector<16x128xf32> to vector<16x128xbf16>
    %c1_217 = arith.constant 1 : index
    %c0_218 = arith.constant 0 : index
    %c0_219 = arith.constant 0 : index
    %350 = vector.load %arg17[%c1_217, %c0_218, %c0_219] : memref<2x128x256xbf16, #tpu.memory_space<vmem>>, vector<1x128x256xbf16>
    %351 = vector.shape_cast %350 : vector<1x128x256xbf16> to vector<128x256xbf16>
    %cst_220 = arith.constant dense<0.000000e+00> : vector<16x256xf32>
    %352 = tpu.matmul %349, %351, %cst_220 {dimension_numbers = #tpu.dot_dimension_numbers<[1], [0], [0], [1], [0, 0, 1, 1], [], []>} : vector<16x128xbf16>, vector<128x256xbf16>, vector<16x256xf32> -> vector<16x256xf32>
    %c1_221 = arith.constant 1 : index
    %c0_222 = arith.constant 0 : index
    %c0_223 = arith.constant 0 : index
    %353 = vector.load %arg18[%c1_221, %c0_222, %c0_223] : memref<2x1x256xf32, #tpu.memory_space<vmem>>, vector<1x1x256xf32>
    %354 = vector.shape_cast %353 : vector<1x1x256xf32> to vector<1x256xf32>
    %355 = vector.broadcast %354 : vector<1x256xf32> to vector<16x256xf32>
    %356 = arith.addf %352, %355 : vector<16x256xf32>
    %cst_224 = arith.constant 5.000000e-01 : f32
    %357 = vector.broadcast %cst_224 : f32 to vector<16x256xf32>
    %358 = arith.mulf %357, %356 : vector<16x256xf32>
    %cst_225 = arith.constant 4.471500e-02 : f32
    %359 = vector.broadcast %cst_225 : f32 to vector<16x256xf32>
    %360 = arith.mulf %359, %356 : vector<16x256xf32>
    %361 = arith.mulf %360, %356 : vector<16x256xf32>
    %362 = arith.mulf %361, %356 : vector<16x256xf32>
    %363 = arith.addf %356, %362 : vector<16x256xf32>
    %cst_226 = arith.constant 0.797884583 : f32
    %364 = vector.broadcast %cst_226 : f32 to vector<16x256xf32>
    %365 = arith.mulf %364, %363 : vector<16x256xf32>
    %366 = math.tanh %365 : vector<16x256xf32>
    %cst_227 = arith.constant 1.000000e+00 : f32
    %367 = vector.broadcast %cst_227 : f32 to vector<16x256xf32>
    %368 = arith.addf %367, %366 : vector<16x256xf32>
    %369 = arith.mulf %358, %368 : vector<16x256xf32>
    %370 = arith.truncf %369 : vector<16x256xf32> to vector<16x256xbf16>
    %c1_228 = arith.constant 1 : index
    %c0_229 = arith.constant 0 : index
    %c0_230 = arith.constant 0 : index
    %371 = vector.load %arg19[%c1_228, %c0_229, %c0_230] : memref<2x256x128xbf16, #tpu.memory_space<vmem>>, vector<1x256x128xbf16>
    %372 = vector.shape_cast %371 : vector<1x256x128xbf16> to vector<256x128xbf16>
    %cst_231 = arith.constant dense<0.000000e+00> : vector<16x128xf32>
    %373 = tpu.matmul %370, %372, %cst_231 {dimension_numbers = #tpu.dot_dimension_numbers<[1], [0], [0], [1], [0, 0, 1, 1], [], []>} : vector<16x256xbf16>, vector<256x128xbf16>, vector<16x128xf32> -> vector<16x128xf32>
    %c1_232 = arith.constant 1 : index
    %c0_233 = arith.constant 0 : index
    %c0_234 = arith.constant 0 : index
    %374 = vector.load %arg20[%c1_232, %c0_233, %c0_234] : memref<2x1x128xf32, #tpu.memory_space<vmem>>, vector<1x1x128xf32>
    %375 = vector.shape_cast %374 : vector<1x1x128xf32> to vector<1x128xf32>
    %376 = vector.broadcast %375 : vector<1x128xf32> to vector<16x128xf32>
    %377 = arith.addf %373, %376 : vector<16x128xf32>
    %378 = arith.addf %348, %377 : vector<16x128xf32>
    %c1_235 = arith.constant 1 : index
    %c0_236 = arith.constant 0 : index
    %c0_237 = arith.constant 0 : index
    %379 = vector.load %arg21[%c1_235, %c0_236, %c0_237] : memref<2x1x128xf32, #tpu.memory_space<vmem>>, vector<1x1x128xf32>
    %380 = vector.shape_cast %379 : vector<1x1x128xf32> to vector<1x128xf32>
    %c1_238 = arith.constant 1 : index
    %c0_239 = arith.constant 0 : index
    %c0_240 = arith.constant 0 : index
    %381 = vector.load %arg22[%c1_238, %c0_239, %c0_240] : memref<2x1x128xf32, #tpu.memory_space<vmem>>, vector<1x1x128xf32>
    %382 = vector.shape_cast %381 : vector<1x1x128xf32> to vector<1x128xf32>
    %cst_241 = arith.constant dense<0.000000e+00> : vector<16xf32>
    %383 = vector.multi_reduction <add>, %378, %cst_241 [1] : vector<16x128xf32> to vector<16xf32>
    %384 = vector.shape_cast %383 : vector<16xf32> to vector<16x1xf32>
    %cst_242 = arith.constant 1.280000e+02 : f32
    %385 = vector.broadcast %cst_242 : f32 to vector<16x1xf32>
    %386 = arith.divf %384, %385 : vector<16x1xf32>
    %387 = vector.broadcast %386 : vector<16x1xf32> to vector<16x128xf32>
    %388 = arith.subf %378, %387 : vector<16x128xf32>
    %389 = arith.mulf %388, %388 : vector<16x128xf32>
    %cst_243 = arith.constant dense<0.000000e+00> : vector<16xf32>
    %390 = vector.multi_reduction <add>, %389, %cst_243 [1] : vector<16x128xf32> to vector<16xf32>
    %391 = vector.shape_cast %390 : vector<16xf32> to vector<16x1xf32>
    %cst_244 = arith.constant 1.280000e+02 : f32
    %392 = vector.broadcast %cst_244 : f32 to vector<16x1xf32>
    %393 = arith.divf %391, %392 : vector<16x1xf32>
    %394 = vector.broadcast %386 : vector<16x1xf32> to vector<16x128xf32>
    %395 = arith.subf %378, %394 : vector<16x128xf32>
    %cst_245 = arith.constant 9.99999996E-13 : f32
    %396 = vector.broadcast %cst_245 : f32 to vector<16x1xf32>
    %397 = arith.addf %393, %396 : vector<16x1xf32>
    %398 = math.rsqrt %397 : vector<16x1xf32>
    %399 = vector.broadcast %398 : vector<16x1xf32> to vector<16x128xf32>
    %400 = arith.mulf %395, %399 : vector<16x128xf32>
    %401 = vector.broadcast %380 : vector<1x128xf32> to vector<16x128xf32>
    %402 = arith.mulf %400, %401 : vector<16x128xf32>
    %403 = vector.broadcast %382 : vector<1x128xf32> to vector<16x128xf32>
    %404 = arith.addf %402, %403 : vector<16x128xf32>
    %c0_246 = arith.constant 0 : index
    %c0_247 = arith.constant 0 : index
    %405 = vector.load %arg24[%c0_246, %c0_247] : memref<16x128xf32, #tpu.memory_space<vmem>>, vector<16x128xf32>
    tpu.vector_store %arg24[%c0_246, %c0_247], %404 {strides = array<i32>} : memref<16x128xf32, #tpu.memory_space<vmem>>, vector<16x128xf32>,
    %c0_248 = arith.constant 0 : index
    %406 = memref.load %arg1[%c0_248] : memref<2xi32, #tpu.memory_space<smem>>
    %c0_i32 = arith.constant 0 : i32
    %407 = arith.addi %c0_i32, %406 : i32
    %408 = arith.index_cast %407 : i32 to index
    %c0_249 = arith.constant 0 : index
    %409 = vector.load %arg24[%408, %c0_249] : memref<16x128xf32, #tpu.memory_space<vmem>>, vector<1x128xf32>
    %c0_250 = arith.constant 0 : index
    %410 = memref.load %arg2[%c0_250] : memref<2xi32, #tpu.memory_space<smem>>
    %c0_i32_251 = arith.constant 0 : i32
    %411 = arith.addi %c0_i32_251, %410 : i32
    %412 = arith.index_cast %411 : i32 to index
    %c0_252 = arith.constant 0 : index
    %413 = vector.load %arg24[%412, %c0_252] : memref<16x128xf32, #tpu.memory_space<vmem>>, vector<1x128xf32>
    %c0_253 = arith.constant 0 : index
    %c0_254 = arith.constant 0 : index
    %414 = vector.load %arg23[%c0_253, %c0_254] : memref<2x256xf32, #tpu.memory_space<vmem>>, vector<1x128xf32>
    tpu.vector_store %arg23[%c0_253, %c0_254], %409 {strides = array<i32>} : memref<2x256xf32, #tpu.memory_space<vmem>>, vector<1x128xf32>,
    %c0_255 = arith.constant 0 : index
    %c128 = arith.constant 128 : index
    %415 = vector.load %arg23[%c0_255, %c128] : memref<2x256xf32, #tpu.memory_space<vmem>>, vector<1x128xf32>
    tpu.vector_store %arg23[%c0_255, %c128], %413 {strides = array<i32>} : memref<2x256xf32, #tpu.memory_space<vmem>>, vector<1x128xf32>,
    %c1_256 = arith.constant 1 : index
    %416 = memref.load %arg1[%c1_256] : memref<2xi32, #tpu.memory_space<smem>>
    %c8_i32 = arith.constant 8 : i32
    %417 = arith.addi %c8_i32, %416 : i32
    %418 = arith.index_cast %417 : i32 to index
    %c0_257 = arith.constant 0 : index
    %419 = vector.load %arg24[%418, %c0_257] : memref<16x128xf32, #tpu.memory_space<vmem>>, vector<1x128xf32>
    %c1_258 = arith.constant 1 : index
    %420 = memref.load %arg2[%c1_258] : memref<2xi32, #tpu.memory_space<smem>>
    %c8_i32_259 = arith.constant 8 : i32
    %421 = arith.addi %c8_i32_259, %420 : i32
    %422 = arith.index_cast %421 : i32 to index
    %c0_260 = arith.constant 0 : index
    %423 = vector.load %arg24[%422, %c0_260] : memref<16x128xf32, #tpu.memory_space<vmem>>, vector<1x128xf32>
    %c1_261 = arith.constant 1 : index
    %c0_262 = arith.constant 0 : index
    %424 = vector.load %arg23[%c1_261, %c0_262] : memref<2x256xf32, #tpu.memory_space<vmem>>, vector<1x128xf32>
    tpu.vector_store %arg23[%c1_261, %c0_262], %419 {strides = array<i32>} : memref<2x256xf32, #tpu.memory_space<vmem>>, vector<1x128xf32>,
    %c1_263 = arith.constant 1 : index
    %c128_264 = arith.constant 128 : index
    %425 = vector.load %arg23[%c1_263, %c128_264] : memref<2x256xf32, #tpu.memory_space<vmem>>, vector<1x128xf32>
    tpu.vector_store %arg23[%c1_263, %c128_264], %423 {strides = array<i32>} : memref<2x256xf32, #tpu.memory_space<vmem>>, vector<1x128xf32>,
    return
  }
  func.func @transform_0(%arg0: i32, %arg1: memref<2xi32, #tpu.memory_space<smem>>, %arg2: memref<2xi32, #tpu.memory_space<smem>>) -> (i32, i32) {
    %c0_i32 = arith.constant 0 : i32
    %c0_i32_0 = arith.constant 0 : i32
    %c0_i32_1 = arith.constant 0 : i32
    return %c0_i32, %c0_i32_0 : i32, i32
  }
  func.func @transform_1(%arg0: i32, %arg1: memref<2xi32, #tpu.memory_space<smem>>, %arg2: memref<2xi32, #tpu.memory_space<smem>>) -> (i32, i32) {
    %c0_i32 = arith.constant 0 : i32
    %c0_i32_0 = arith.constant 0 : i32
    %c0_i32_1 = arith.constant 0 : i32
    return %c0_i32, %c0_i32_0 : i32, i32
  }
  func.func @transform_2(%arg0: i32, %arg1: memref<2xi32, #tpu.memory_space<smem>>, %arg2: memref<2xi32, #tpu.memory_space<smem>>) -> (i32, i32) {
    %c0_i32 = arith.constant 0 : i32
    %c0_i32_0 = arith.constant 0 : i32
    %c0_i32_1 = arith.constant 0 : i32
    return %c0_i32, %c0_i32_0 : i32, i32
  }
  func.func @transform_3(%arg0: i32, %arg1: memref<2xi32, #tpu.memory_space<smem>>, %arg2: memref<2xi32, #tpu.memory_space<smem>>) -> (i32, i32) {
    %c0_i32 = arith.constant 0 : i32
    %c0_i32_0 = arith.constant 0 : i32
    %c0_i32_1 = arith.constant 0 : i32
    return %c0_i32, %c0_i32_0 : i32, i32
  }
  func.func @transform_4(%arg0: i32, %arg1: memref<2xi32, #tpu.memory_space<smem>>, %arg2: memref<2xi32, #tpu.memory_space<smem>>) -> (i32, i32, i32, i32) {
    %c0_i32 = arith.constant 0 : i32
    %c0_i32_0 = arith.constant 0 : i32
    %c0_i32_1 = arith.constant 0 : i32
    %c0_i32_2 = arith.constant 0 : i32
    %c0_i32_3 = arith.constant 0 : i32
    return %c0_i32, %c0_i32_0, %c0_i32_1, %c0_i32_2 : i32, i32, i32, i32
  }
  func.func @transform_5(%arg0: i32, %arg1: memref<2xi32, #tpu.memory_space<smem>>, %arg2: memref<2xi32, #tpu.memory_space<smem>>) -> (i32, i32, i32, i32) {
    %c0_i32 = arith.constant 0 : i32
    %c0_i32_0 = arith.constant 0 : i32
    %c0_i32_1 = arith.constant 0 : i32
    %c0_i32_2 = arith.constant 0 : i32
    %c0_i32_3 = arith.constant 0 : i32
    return %c0_i32, %c0_i32_0, %c0_i32_1, %c0_i32_2 : i32, i32, i32, i32
  }
  func.func @transform_6(%arg0: i32, %arg1: memref<2xi32, #tpu.memory_space<smem>>, %arg2: memref<2xi32, #tpu.memory_space<smem>>) -> (i32, i32, i32, i32) {
    %c0_i32 = arith.constant 0 : i32
    %c0_i32_0 = arith.constant 0 : i32
    %c0_i32_1 = arith.constant 0 : i32
    %c0_i32_2 = arith.constant 0 : i32
    %c0_i32_3 = arith.constant 0 : i32
    return %c0_i32, %c0_i32_0, %c0_i32_1, %c0_i32_2 : i32, i32, i32, i32
  }
  func.func @transform_7(%arg0: i32, %arg1: memref<2xi32, #tpu.memory_space<smem>>, %arg2: memref<2xi32, #tpu.memory_space<smem>>) -> (i32, i32, i32, i32) {
    %c0_i32 = arith.constant 0 : i32
    %c0_i32_0 = arith.constant 0 : i32
    %c0_i32_1 = arith.constant 0 : i32
    %c0_i32_2 = arith.constant 0 : i32
    %c0_i32_3 = arith.constant 0 : i32
    return %c0_i32, %c0_i32_0, %c0_i32_1, %c0_i32_2 : i32, i32, i32, i32
  }
  func.func @transform_8(%arg0: i32, %arg1: memref<2xi32, #tpu.memory_space<smem>>, %arg2: memref<2xi32, #tpu.memory_space<smem>>) -> (i32, i32, i32, i32) {
    %c0_i32 = arith.constant 0 : i32
    %c0_i32_0 = arith.constant 0 : i32
    %c0_i32_1 = arith.constant 0 : i32
    %c0_i32_2 = arith.constant 0 : i32
    %c0_i32_3 = arith.constant 0 : i32
    return %c0_i32, %c0_i32_0, %c0_i32_1, %c0_i32_2 : i32, i32, i32, i32
  }
  func.func @transform_9(%arg0: i32, %arg1: memref<2xi32, #tpu.memory_space<smem>>, %arg2: memref<2xi32, #tpu.memory_space<smem>>) -> (i32, i32, i32, i32) {
    %c0_i32 = arith.constant 0 : i32
    %c0_i32_0 = arith.constant 0 : i32
    %c0_i32_1 = arith.constant 0 : i32
    %c0_i32_2 = arith.constant 0 : i32
    %c0_i32_3 = arith.constant 0 : i32
    return %c0_i32, %c0_i32_0, %c0_i32_1, %c0_i32_2 : i32, i32, i32, i32
  }
  func.func @transform_10(%arg0: i32, %arg1: memref<2xi32, #tpu.memory_space<smem>>, %arg2: memref<2xi32, #tpu.memory_space<smem>>) -> (i32, i32, i32, i32) {
    %c0_i32 = arith.constant 0 : i32
    %c0_i32_0 = arith.constant 0 : i32
    %c0_i32_1 = arith.constant 0 : i32
    %c0_i32_2 = arith.constant 0 : i32
    %c0_i32_3 = arith.constant 0 : i32
    return %c0_i32, %c0_i32_0, %c0_i32_1, %c0_i32_2 : i32, i32, i32, i32
  }
  func.func @transform_11(%arg0: i32, %arg1: memref<2xi32, #tpu.memory_space<smem>>, %arg2: memref<2xi32, #tpu.memory_space<smem>>) -> (i32, i32, i32) {
    %c0_i32 = arith.constant 0 : i32
    %c0_i32_0 = arith.constant 0 : i32
    %c0_i32_1 = arith.constant 0 : i32
    %c0_i32_2 = arith.constant 0 : i32
    return %c0_i32, %c0_i32_0, %c0_i32_1 : i32, i32, i32
  }
  func.func @transform_12(%arg0: i32, %arg1: memref<2xi32, #tpu.memory_space<smem>>, %arg2: memref<2xi32, #tpu.memory_space<smem>>) -> (i32, i32, i32) {
    %c0_i32 = arith.constant 0 : i32
    %c0_i32_0 = arith.constant 0 : i32
    %c0_i32_1 = arith.constant 0 : i32
    %c0_i32_2 = arith.constant 0 : i32
    return %c0_i32, %c0_i32_0, %c0_i32_1 : i32, i32, i32
  }
  func.func @transform_13(%arg0: i32, %arg1: memref<2xi32, #tpu.memory_space<smem>>, %arg2: memref<2xi32, #tpu.memory_space<smem>>) -> (i32, i32, i32) {
    %c0_i32 = arith.constant 0 : i32
    %c0_i32_0 = arith.constant 0 : i32
    %c0_i32_1 = arith.constant 0 : i32
    %c0_i32_2 = arith.constant 0 : i32
    return %c0_i32, %c0_i32_0, %c0_i32_1 : i32, i32, i32
  }
  func.func @transform_14(%arg0: i32, %arg1: memref<2xi32, #tpu.memory_space<smem>>, %arg2: memref<2xi32, #tpu.memory_space<smem>>) -> (i32, i32, i32) {
    %c0_i32 = arith.constant 0 : i32
    %c0_i32_0 = arith.constant 0 : i32
    %c0_i32_1 = arith.constant 0 : i32
    %c0_i32_2 = arith.constant 0 : i32
    return %c0_i32, %c0_i32_0, %c0_i32_1 : i32, i32, i32
  }
  func.func @transform_15(%arg0: i32, %arg1: memref<2xi32, #tpu.memory_space<smem>>, %arg2: memref<2xi32, #tpu.memory_space<smem>>) -> (i32, i32, i32) {
    %c0_i32 = arith.constant 0 : i32
    %c0_i32_0 = arith.constant 0 : i32
    %c0_i32_1 = arith.constant 0 : i32
    %c0_i32_2 = arith.constant 0 : i32
    return %c0_i32, %c0_i32_0, %c0_i32_1 : i32, i32, i32
  }
  func.func @transform_16(%arg0: i32, %arg1: memref<2xi32, #tpu.memory_space<smem>>, %arg2: memref<2xi32, #tpu.memory_space<smem>>) -> (i32, i32, i32) {
    %c0_i32 = arith.constant 0 : i32
    %c0_i32_0 = arith.constant 0 : i32
    %c0_i32_1 = arith.constant 0 : i32
    %c0_i32_2 = arith.constant 0 : i32
    return %c0_i32, %c0_i32_0, %c0_i32_1 : i32, i32, i32
  }
  func.func @transform_17(%arg0: i32, %arg1: memref<2xi32, #tpu.memory_space<smem>>, %arg2: memref<2xi32, #tpu.memory_space<smem>>) -> (i32, i32, i32) {
    %c0_i32 = arith.constant 0 : i32
    %c0_i32_0 = arith.constant 0 : i32
    %c0_i32_1 = arith.constant 0 : i32
    %c0_i32_2 = arith.constant 0 : i32
    return %c0_i32, %c0_i32_0, %c0_i32_1 : i32, i32, i32
  }
  func.func @transform_18(%arg0: i32, %arg1: memref<2xi32, #tpu.memory_space<smem>>, %arg2: memref<2xi32, #tpu.memory_space<smem>>) -> (i32, i32, i32) {
    %c0_i32 = arith.constant 0 : i32
    %c0_i32_0 = arith.constant 0 : i32
    %c0_i32_1 = arith.constant 0 : i32
    %c0_i32_2 = arith.constant 0 : i32
    return %c0_i32, %c0_i32_0, %c0_i32_1 : i32, i32, i32
  }
  func.func @transform_19(%arg0: i32, %arg1: memref<2xi32, #tpu.memory_space<smem>>, %arg2: memref<2xi32, #tpu.memory_space<smem>>) -> (i32, i32, i32) {
    %c0_i32 = arith.constant 0 : i32
    %c0_i32_0 = arith.constant 0 : i32
    %c0_i32_1 = arith.constant 0 : i32
    %c0_i32_2 = arith.constant 0 : i32
    return %c0_i32, %c0_i32_0, %c0_i32_1 : i32, i32, i32
  }
  func.func @transform_20(%arg0: i32, %arg1: memref<2xi32, #tpu.memory_space<smem>>, %arg2: memref<2xi32, #tpu.memory_space<smem>>) -> (i32, i32) {
    %c0_i32 = arith.constant 0 : i32
    %c0_i32_0 = arith.constant 0 : i32
    %c0_i32_1 = arith.constant 0 : i32
    return %c0_i32, %c0_i32_0 : i32, i32
  }
}

</mosaic_0001>

<bundles_post_ra>
// kernel: feature_extractor.1
= control target key start
LH: loop header
LB: loop body
LE: loop exit
PB: predicated region body
PF: predicated region fallthrough
CT: control target
= control target key end

     0   :  { %s6175_s0 = inlined_call_operand.vmem [shape: s32[2], index: 0, kind: input, shape index: {}]   ;;  %s6176_s2 = inlined_call_operand.vmem [shape: f32[16,128], index: 2, kind: input, shape index: {}]   ;;  %s6177_s3 = inlined_call_operand.vmem [shape: f32[2,8], index: 3, kind: input, shape index: {}]   ;;  %s6178_s4 = inlined_call_operand.vmem [shape: f32[1,128], index: 4, kind: input, shape index: {}]   ;;  %s6179_s5 = inlined_call_operand.vmem [shape: f32[1,128], index: 5, kind: input, shape index: {}]   ;;  %s6180_s6 = inlined_call_operand.vmem [shape: bf16[2,2,128,64], index: 6, kind: input, shape index: {}]   ;;  %s6181_s7 = inlined_call_operand.vmem [shape: f32[2,2,1,64], index: 7, kind: input, shape index: {}]   ;;  %s6182_s8 = inlined_call_operand.vmem [shape: bf16[2,2,128,64], index: 8, kind: input, shape index: {}]   ;;  %s6183_s9 = inlined_call_operand.vmem [shape: f32[2,2,1,64], index: 9, kind: input, shape index: {}]   ;;  %s6184_s10 = inlined_call_operand.vmem [shape: bf16[2,2,128,64], index: 10, kind: input, shape index: {}]   ;;  %s6185_s11 = inlined_call_operand.vmem [shape: f32[2,2,1,64], index: 11, kind: input, shape index: {}]   ;;  %s6186_s12 = inlined_call_operand.vmem [shape: bf16[2,2,64,128], index: 12, kind: input, shape index: {}]   ;;  %s6187_s13 = inlined_call_operand.vmem [shape: f32[2,1,128], index: 13, kind: input, shape index: {}]   ;;  %s6188_s14 = inlined_call_operand.vmem [shape: f32[2,1,128], index: 14, kind: input, shape index: {}]   ;;  %s6189_s15 = inlined_call_operand.vmem [shape: f32[2,1,128], index: 15, kind: input, shape index: {}]   ;;  %s6190_s16 = inlined_call_operand.vmem [shape: bf16[2,128,256], index: 16, kind: input, shape index: {}]   ;;  %s6191_s17 = inlined_call_operand.vmem [shape: f32[2,1,256], index: 17, kind: input, shape index: {}]   ;;  %s6192_s18 = inlined_call_operand.vmem [shape: bf16[2,256,128], index: 18, kind: input, shape index: {}]   ;;  %s6193_s19 = inlined_call_operand.vmem [shape: f32[2,1,128], index: 19, kind: input, shape index: {}]   ;;  %s6194_s20 = inlined_call_operand.vmem [shape: f32[2,1,128], index: 20, kind: input, shape index: {}]   ;;  %s6195_s21 = inlined_call_operand.vmem [shape: f32[2,1,128], index: 21, kind: input, shape index: {}]   ;;  %s6196_s22 = inlined_call_operand.hbm [shape: f32[2,256], index: 22, kind: output, shape index: {}]   ;;  %s6197_s1 = inlined_call_operand.vmem [shape: s32[2], index: 1, kind: input, shape index: {}]  }
   0x1   :  { %6202 = sst [smem:[#allocation10_spill]] %s6175_s0  ;;  %s31_s0 = sshll.u32 %s6197_s1, 4  ;;  %s32_s0 = int_to_ptr.vmem [resolvable:$true] %s31_s0 }
   0x2   :  { %6203 = sst [smem:[#allocation11_spill]] %s6176_s2  ;;  %s6210_s29 = sld [smem:[#allocation10_spill]] }
   0x3   :  { %6204 = sst [smem:[#allocation12_spill]] %s6177_s3 }
   0x4   :  { %6205 = sst [smem:[#allocation13_spill]] %s6178_s4 }
   0x5   :  { %6206 = sst [smem:[#allocation14_spill]] %s6179_s5 }
   0x6   :  { %6207 = sst [smem:[#allocation15_spill]] %s6180_s6 }
   0x7   :  { %6208 = sst [smem:[#allocation16_spill]] %s6181_s7 }
   0x8   :  { %6209 = sst [smem:[#allocation17_spill]] %s6191_s17  ;;  %s27_s17 = sshll.u32 %s6210_s29, 4  ;;  %s28_s17 = int_to_ptr.vmem [resolvable:$true] %s27_s17 }
   0x9   :  { %s4987_s23 = scalar_lea.vmem %s28_s17, 16  ;;  %p4992_p1 = scmp.lt.s32.totalorder %s28_s17, %s28_s17 }
   0xa   :  { %p4988_p0 = scmp.ne.s32.totalorder %s28_s17, %s4987_s23  ;;  %p4993_p2 = scmp.lt.s32.totalorder %s4987_s23, %s4987_s23 }
   0xc   :  { %p4994_p3 = por %p4993_p2, %p4992_p1 }
   0xe   :  { %p4995_p4 = pnand %p4994_p3, %p4988_p0 }
  0x10   :  { %4998 = shalt.err (!%p4995_p4)  }
  0x11   :  { %s5037_s2 = smov [#allocation4]   ;;  %s4999_s6 = scalar_lea.vmem %s32_s0, 16 }
  0x12   :  { %30 = dma.vmem_to_smem %s28_s17, 16, %s5037_s2, [#allocation3] }
  0x13   :  { %p5000_p5 = scmp.ne.s32.totalorder %s32_s0, %s4999_s6  ;;  %p5004_p6 = scmp.lt.s32.totalorder %s32_s0, %s32_s0 }
  0x14   :  { %p5005_p7 = scmp.lt.s32.totalorder %s4999_s6, %s4999_s6 }
  0x16   :  { %p5006_p8 = por %p5005_p7, %p5004_p6 }
  0x18   :  { %p5007_p9 = pnand %p5006_p8, %p5000_p5 }
  0x1a   :  { %5010 = shalt.err (!%p5007_p9)  }
  0x1b   :  { %s5038_s24 = smov [#allocation5]  }
  0x1c   :  { %34 = dma.vmem_to_smem %s32_s0, 16, %s5038_s24, [#allocation3] }
  0x1d   :  { %5033 = dma.done.wait [#allocation3], 32 }
  0x1e   :  { %5034 = vsyncadd [#allocation3], 4294967264 }
  0x1f   :  { %36 = sfence }
  0x20   :  { %s6211_s25 = sld [smem:[#allocation11_spill]]  ;;  %s6212_s4 = sld [smem:[#allocation15_spill]]  ;;  %v4728_v3 = vld [vmem:[%s6182_s8] sm:$0xff]   ;;  %v5039_v4 = vmov 0.0  }
  0x21   :  { %4336 = vmatprep.subr.bf16.mxu0 %v5039_v4  ;;  %4356 = vmatprep.subr.bf16.mxu1 %v5039_v4 }
  0x22   :  { %4357 = vmatpush3.bf16.msra.mxu1 %v4728_v3 }
  0x23   :  { %4358 = vmatprep.subr.bf16.mxu1 %v5039_v4 }
  0x26   :  { %v103_v0 = vld [vmem:[%s6211_s25] sm:$0xff]  ;;  %v104_v1 = vld [vmem:[%s6211_s25 + $0x8] sm:$0xff] }
  0x27   :  { %107 = vadd.xlane.f32.xlu0 %v103_v0  ;;  %v4727_v2 = vld [vmem:[%s6212_s4] sm:$0xff]   ;;  %v4729_v5 = vld [vmem:[%s6212_s4 + $0x8] sm:$0xff]  }
  0x28   :  { %4337 = vmatpush3.bf16.msra.mxu0 %v4727_v2 }
  0x29   :  { %4338 = vmatprep.subr.bf16.mxu0 %v5039_v4 }
  0x2b   :  { %109 = vadd.xlane.f32.xlu0 %v104_v1 }
  0x2c   :  { %4339 = vmatpush3.bf16.msra.mxu0 %v4729_v5 }
  0x2d   :  { %4340 = vmatprep.subr.bf16.mxu0 %v5039_v4 }
  0x2e   :  { %37 = vsyncpa [#allocation7], 0  ;;  %v4730_v14 = vld [vmem:[%s6182_s8 + $0x8] sm:$0xff]   ;;  %v4731_v15 = vld [vmem:[%s6212_s4 + $0x10] sm:$0xff]   ;;  %vm5040_vm0 = vmmov 0   ;;  %s6213_s28 = sld [smem:[#allocation13_spill]] }
  0x2f   :  { %4359 = vmatpush3.bf16.msra.mxu1 %v4730_v14  ;;  %v4732_v16 = vld [vmem:[%s6182_s8 + $0x10] sm:$0xff]   ;;  %v4733_v17 = vld [vmem:[%s6212_s4 + $0x18] sm:$0xff]   ;;  %v4735_v19 = vld [vmem:[%s6212_s4 + $0x20] sm:$0xff]   ;;  %4352 = vmatprep.mubr.msk.bf16.mxu0 %vm5040_vm0, %v5039_v4  ;;  %s6214_s5 = sld [smem:[#allocation14_spill]]  ;;  %vm489_vm1 = vcmask 523264   ;;  %s6215_s24 = sld [smem:[#allocation16_spill]] }
  0x30   :  { %4360 = vmatprep.subr.bf16.mxu1 %v5039_v4  ;;  %4341 = vmatpush3.bf16.msra.mxu0 %v4731_v15  ;;  %v4734_v18 = vld [vmem:[%s6182_s8 + $0x18] sm:$0xff]   ;;  %v4736_v20 = vld [vmem:[%s6182_s8 + $0x20] sm:$0xff]   ;;  %v4737_v21 = vld [vmem:[%s6212_s4 + $0x28] sm:$0xff]   ;;  %vm624_vm2 = vcmask 1043456   ;;  %s6216_s27 = sld [smem:[#allocation12_spill]]  ;;  %vm596_vm3 = vcmask 64512  }
  0x31   :  { %4342 = vmatprep.subr.bf16.mxu0 %v5039_v4  ;;  %v4738_v22 = vld [vmem:[%s6182_s8 + $0x28] sm:$0xff]   ;;  %v4739_v23 = vld [vmem:[%s6212_s4 + $0x30] sm:$0xff]   ;;  %v4741_v25 = vld [vmem:[%s6212_s4 + $0x38] sm:$0xff]   ;;  %4372 = vmatprep.mubr.msk.bf16.mxu1 %vm5040_vm0, %v5039_v4  ;;  %s3638_s26 = sld [smem:[#allocation5]] }
  0x32   :  { %v4740_v24 = vld [vmem:[%s6182_s8 + $0x30] sm:$0xff]   ;;  %v4742_v26 = vld [vmem:[%s6182_s8 + $0x38] sm:$0xff]   ;;  %v4743_v43 = vld [vmem:[%s6184_s10] sm:$0xff]  }
  0x33   :  { %4361 = vmatpush3.bf16.msra.mxu1 %v4732_v16  ;;  %v4744_v45 = vld [vmem:[%s6184_s10 + $0x8] sm:$0xff]   ;;  %v4745_v46 = vld [vmem:[%s6184_s10 + $0x10] sm:$0xff]   ;;  %v4746_v47 = vld [vmem:[%s6184_s10 + $0x18] sm:$0xff]  }
  0x34   :  { %4362 = vmatprep.subr.bf16.mxu1 %v5039_v4  ;;  %4343 = vmatpush3.bf16.msra.mxu0 %v4733_v17  ;;  %v3674_v35 = vld [vmem:[%s6213_s28] ss:$0 sm:$0xff]  ;;  %v4748_v49 = vld [vmem:[%s6184_s10 + $0x28] sm:$0xff]   ;;  %v4749_v50 = vld [vmem:[%s6184_s10 + $0x30] sm:$0xff]  }
  0x35   :  { %4344 = vmatprep.subr.bf16.mxu0 %v5039_v4  ;;  %v3675_v39 = vld [vmem:[%s6214_s5] ss:$0 sm:$0xff]  ;;  %v4750_v51 = vld [vmem:[%s6184_s10 + $0x38] sm:$0xff]   ;;  %v4752_v53 = vld [vmem:[%s6212_s4 + $0x48] sm:$0xff]   ;;  %s6217_s5 = sld [smem:[#allocation17_spill]] }
  0x36   :  { %v4747_v48 = vld [vmem:[%s6184_s10 + $0x20] sm:$0xff]   ;;  %v4753_v54 = vld [vmem:[%s6212_s4 + $0x50] sm:$0xff]   ;;  %v4754_v55 = vld [vmem:[%s6212_s4 + $0x58] sm:$0xff]  }
  0x37   :  { %4363 = vmatpush3.bf16.msra.mxu1 %v4734_v18  ;;  %v4751_v52 = vld [vmem:[%s6212_s4 + $0x40] sm:$0xff]   ;;  %v4756_v57 = vld [vmem:[%s6212_s4 + $0x68] sm:$0xff]   ;;  %v4757_v58 = vld [vmem:[%s6212_s4 + $0x70] sm:$0xff]   ;;  %s3639_s17 = scalar_lea.vmem [#allocation2], %s3638_s26 }
  0x38   :  { %4364 = vmatprep.subr.bf16.mxu1 %v5039_v4  ;;  %4345 = vmatpush3.bf16.msra.mxu0 %v4735_v19  ;;  %v4755_v56 = vld [vmem:[%s6212_s4 + $0x60] sm:$0xff]   ;;  %v4758_v59 = vld [vmem:[%s6212_s4 + $0x78] sm:$0xff]   ;;  %v4760_v61 = vld [vmem:[%s6184_s10 + $0x48] sm:$0xff]  }
  0x39   :  { %4346 = vmatprep.subr.bf16.mxu0 %v5039_v4  ;;  %v4759_v60 = vld [vmem:[%s6184_s10 + $0x40] sm:$0xff]   ;;  %v4761_v62 = vld [vmem:[%s6184_s10 + $0x50] sm:$0xff]   ;;  %v4762_v63 = vld [vmem:[%s6184_s10 + $0x58] sm:$0xff]  }
  0x3a   :  { %v4765_v2 = vld [vmem:[%s6184_s10 + $0x70] sm:$0xff]   ;;  %v4766_v3 = vld [vmem:[%s6184_s10 + $0x78] sm:$0xff]   ;;  %v3685_v5 = vld [vmem:[%s6183_s9] ss:$0 sm:$0xff] }
  0x3b   :  { %4365 = vmatpush3.bf16.msra.mxu1 %v4736_v20  ;;  %v3676_v16 = vld [vmem:[%s6215_s24] ss:$0 sm:$0xff] }
  0x3c   :  { %4366 = vmatprep.subr.bf16.mxu1 %v5039_v4  ;;  %4347 = vmatpush3.bf16.msra.mxu0 %v4737_v21 }
  0x3d   :  { %4348 = vmatprep.subr.bf16.mxu0 %v5039_v4 }
  0x3f   :  { %4367 = vmatpush3.bf16.msra.mxu1 %v4738_v22 }
  0x40   :  { %4368 = vmatprep.subr.bf16.mxu1 %v5039_v4  ;;  %4349 = vmatpush3.bf16.msra.mxu0 %v4739_v23 }
  0x41   :  { %4350 = vmatprep.subr.bf16.mxu0 %v5039_v4 }
  0x43   :  { %4369 = vmatpush3.bf16.msra.mxu1 %v4740_v24 }
  0x44   :  { %4370 = vmatprep.subr.bf16.mxu1 %v5039_v4  ;;  %4351 = vmatpush3.bf16.msra.mxu0 %v4741_v25  ;;  %v3694_v25 = vld [vmem:[%s6185_s11] ss:$0 sm:$0xff] }
  0x45   :  { %4376 = vmatprep.subr.bf16.mxu0 %v5039_v4 }
  0x47   :  { %4371 = vmatpush3.bf16.msra.mxu1 %v4742_v26 }
  0x48   :  { %4396 = vmatprep.subr.bf16.mxu1 %v5039_v4 }
  0xb4   :  { %v108_v6 = vpop.xlane.xlu0 %107 }
  0xb5   :  { %v112_v7 = vmul.f32 0.0078125, %v108_v6 }
  0xb7   :  { %v114_v8 = vsub.f32 %v103_v0, %v112_v7  ;;  %v4763_v0 = vld [vmem:[%s6184_s10 + $0x60] sm:$0xff]  }
  0xb8   :  { %v110_v9 = vpop.xlane.xlu0 %109 }
  0xb9   :  { %v113_v10 = vmul.f32 0.0078125, %v110_v9  ;;  %v116_v11 = vmul.f32 %v114_v8, %v114_v8 }
  0xbb   :  { %v115_v12 = vsub.f32 %v104_v1, %v113_v10  ;;  %118 = vadd.xlane.f32.xlu1 %v116_v11  ;;  %v4764_v1 = vld [vmem:[%s6184_s10 + $0x68] sm:$0xff]  }
  0xbd   :  { %v117_v13 = vmul.f32 %v115_v12, %v115_v12 }
  0xbf   :  { %120 = vadd.xlane.f32.xlu1 %v117_v13 }
 0x148   :  { %v119_v27 = vpop.xlane.xlu1 %118 }
 0x149   :  { %v122_v28 = vmul.f32 0.0078125, %v119_v27 }
 0x14b   :  { %v124_v29 = vadd.f32 1e-12, %v122_v28 }
 0x14c   :  { %v121_v30 = vpop.xlane.xlu1 %120 }
 0x14d   :  { %4919 = vrsqrt.f32 %v124_v29  ;;  %v123_v31 = vmul.f32 0.0078125, %v121_v30 }
 0x14f   :  { %v125_v32 = vadd.f32 1e-12, %v123_v31 }
 0x151   :  { %4921 = vrsqrt.f32 %v125_v32 }
 0x157   :  { %v4920_v33 = vpop.eup %4919 }
 0x158   :  { %v128_v34 = vmul.f32 %v4920_v33, %v114_v8 }
 0x15a   :  { %v136_v37 = vmul.f32 %v3674_v35, %v128_v34 }
 0x15b   :  { %v4922_v36 = vpop.eup %4921 }
 0x15c   :  { %v129_v38 = vmul.f32 %v4922_v36, %v115_v12  ;;  %v5247_v41 = vadd.f32 %v3675_v39, %v136_v37 }
 0x15e   :  { %v137_v40 = vmul.f32 %v3674_v35, %v129_v38 }
 0x160   :  { %v5249_v42 = vadd.f32 %v3675_v39, %v137_v40  ;;  %v5398_v40 = vld [vmem:[%s6185_s11 + $0x1] ss:$0 sm:$0xff] }
 0x162   :  { %v5256_v44 = vpack.c.bf16 %v5249_v42, %v5247_v41 }
 0x164   :  { %4353 = vmatmul.mubr.bf16.vlgmr.msra.gmra.mrb[0].mxu0 %v5256_v44  ;;  %4373 = vmatmul.mubr.bf16.vlgmr.msra.gmra.mrb[0].mxu1 %v5256_v44 }
 0x165   :  { %4377 = vmatpush3.bf16.msra.mxu0 %v4743_v43  ;;  %4392 = vmatprep.mubr.msk.bf16.mxu0 %vm5040_vm0, %v5039_v4 }
 0x166   :  { %4378 = vmatprep.subr.bf16.mxu0 %v5039_v4  ;;  %4398 = vmatprep.mubr.msk.bf16.mxu1 %vm5040_vm0, %v5039_v4 }
 0x169   :  { %4379 = vmatpush3.bf16.msra.mxu0 %v4744_v45 }
 0x16a   :  { %4380 = vmatprep.subr.bf16.mxu0 %v5039_v4 }
 0x16d   :  { %4381 = vmatpush3.bf16.msra.mxu0 %v4745_v46 }
 0x16e   :  { %4382 = vmatprep.subr.bf16.mxu0 %v5039_v4 }
 0x171   :  { %4383 = vmatpush3.bf16.msra.mxu0 %v4746_v47  ;;  %v5041_v47 = vmov 1966171168  }
 0x172   :  { %4384 = vmatprep.subr.bf16.mxu0 %v5039_v4 }
 0x175   :  { %4385 = vmatpush3.bf16.msra.mxu0 %v4747_v48  ;;  %v90_v48 = vunpack.c.l.s4 %v5041_v47 }
 0x176   :  { %4386 = vmatprep.subr.bf16.mxu0 %v5039_v4 }
 0x179   :  { %4387 = vmatpush3.bf16.msra.mxu0 %v4748_v49  ;;  %v92_v49 = vlaneseq }
 0x17a   :  { %4388 = vmatprep.subr.bf16.mxu0 %v5039_v4 }
 0x17d   :  { %4389 = vmatpush3.bf16.msra.mxu0 %v4749_v50  ;;  %v91_v50 = vunpack.c.0.s8 %v90_v48 }
 0x17e   :  { %4390 = vmatprep.subr.bf16.mxu0 %v5039_v4 }
 0x181   :  { %4391 = vmatpush3.bf16.msra.mxu0 %v4750_v51  ;;  %v5403_v51 = vshrl.u32 %v92_v49, 7 }
 0x182   :  { %4420 = vmatprep.subr.bf16.mxu0 %v5039_v4 }
 0x184   :  { %4393 = vmatmul.mubr.bf16.vlgmr.msra.gmra.mrb[4].mxu0 %v5256_v44 }
 0x185   :  { %4421 = vmatpush3.bf16.msra.mxu0 %v4751_v52  ;;  %4436 = vmatprep.mubr.msk.bf16.mxu0 %vm5040_vm0, %v5039_v4  ;;  %v94_v52 = vsub.s32 %v91_v50, %v5403_v51 }
 0x186   :  { %4422 = vmatprep.subr.bf16.mxu0 %v5039_v4 }
 0x189   :  { %4423 = vmatpush3.bf16.msra.mxu0 %v4752_v53  ;;  %v3673_v53 = vld.sshfl [vmem:[%s6216_s27] sm:$0x11 pattern:$0x75316420] }
 0x18a   :  { %4424 = vmatprep.subr.bf16.mxu0 %v5039_v4 }
 0x18d   :  { %4425 = vmatpush3.bf16.msra.mxu0 %v4753_v54  ;;  %v95_v54 = vrot.slane %v3673_v53, %v94_v52 }
 0x18e   :  { %4426 = vmatprep.subr.bf16.mxu0 %v5039_v4 }
 0x191   :  { %4427 = vmatpush3.bf16.msra.mxu0 %v4754_v55  ;;  %v5410_v55 = vsub.s32 0, %v5403_v51 }
 0x192   :  { %4428 = vmatprep.subr.bf16.mxu0 %v5039_v4 }
 0x195   :  { %4429 = vmatpush3.bf16.msra.mxu0 %v4755_v56  ;;  %v5413_v56 = vrot.slane %v95_v54, %v5410_v55 }
 0x196   :  { %4430 = vmatprep.subr.bf16.mxu0 %v5039_v4 }
 0x199   :  { %4431 = vmatpush3.bf16.msra.mxu0 %v4756_v57  ;;  %v88_v57 = vcombine.high %v3673_v53, %v3673_v53 }
 0x19a   :  { %4432 = vmatprep.subr.bf16.mxu0 %v5039_v4 }
 0x19d   :  { %4433 = vmatpush3.bf16.msra.mxu0 %v4757_v58 }
 0x19e   :  { %4434 = vmatprep.subr.bf16.mxu0 %v5039_v4 }
 0x1a1   :  { %4435 = vmatpush3.bf16.msra.mxu0 %v4758_v59 }
 0x1a2   :  { %4460 = vmatprep.subr.bf16.mxu0 %v5039_v4 }
 0x1a4   :  { %4437 = vmatmul.mubr.bf16.vlgmr.msra.gmra.mrb[8].mxu0 %v5256_v44 }
 0x1a5   :  { %4461 = vmatpush3.bf16.msra.mxu0 %v4759_v60  ;;  %4476 = vmatprep.mubr.msk.bf16.mxu0 %vm5040_vm0, %v5039_v4 }
 0x1a6   :  { %4462 = vmatprep.subr.bf16.mxu0 %v5039_v4 }
 0x1a9   :  { %4463 = vmatpush3.bf16.msra.mxu0 %v4760_v61 }
 0x1aa   :  { %4464 = vmatprep.subr.bf16.mxu0 %v5039_v4 }
 0x1ad   :  { %4465 = vmatpush3.bf16.msra.mxu0 %v4761_v62 }
 0x1ae   :  { %4466 = vmatprep.subr.bf16.mxu0 %v5039_v4 }
 0x1b1   :  { %4467 = vmatpush3.bf16.msra.mxu0 %v4762_v63 }
 0x1b2   :  { %4468 = vmatprep.subr.bf16.mxu0 %v5039_v4 }
 0x1b5   :  { %4469 = vmatpush3.bf16.msra.mxu0 %v4763_v0  ;;  %v102_v0 = vrot.slane %v88_v57, %v94_v52 }
 0x1b6   :  { %4470 = vmatprep.subr.bf16.mxu0 %v5039_v4 }
 0x1b9   :  { %4471 = vmatpush3.bf16.msra.mxu0 %v4764_v1 }
 0x1ba   :  { %4472 = vmatprep.subr.bf16.mxu0 %v5039_v4 }
 0x1bd   :  { %4473 = vmatpush3.bf16.msra.mxu0 %v4765_v2  ;;  %v5418_v2 = vrot.slane %v102_v0, %v5410_v55 }
 0x1be   :  { %4474 = vmatprep.subr.bf16.mxu0 %v5039_v4 }
 0x1c1   :  { %4475 = vmatpush3.bf16.msra.mxu0 %v4766_v3 }
 0x1c2   :  { %4504 = vmatprep.subr.bf16.mxu0 %v5039_v4 }
 0x1c4   :  { %4477 = vmatmul.mubr.bf16.vlgmr.msra.gmra.mrb[12].mxu0 %v5256_v44 }
 0x1c5   :  { %4512 = vmatprep.mubr.msk.bf16.mxu0 %vm5040_vm0, %v5039_v4 }
 0x237   :  { %v252_v6 = vpop.f32.mrb[0].mxu0  ;;  %v364_v7 = vpop.f32.mrb[0].mxu1 }
 0x238   :  { %v365_v8 = vadd.f32 %v3685_v5, %v364_v7  ;;  %v4354_v9 = vpop.f32.mrb[1].mxu0  ;;  %v4374_v10 = vpop.f32.mrb[1].mxu1  ;;  %v253_v19 = vadd.f32 %v3676_v16, %v252_v6 }
 0x239   :  { %v255_v11 = vpop.f32.mrb[2].mxu0  ;;  %v367_v12 = vpop.f32.mrb[2].mxu1 }
 0x23a   :  { %v485_v13 = vpack.c.bf16 %v365_v8, %v365_v8  ;;  %v4355_v14 = vpop.f32.mrb[3].mxu0  ;;  %v4375_v15 = vpop.f32.mrb[3].mxu1  ;;  %v368_v18 = vadd.f32 %v3685_v5, %v367_v12  ;;  %v483_v21 = vpack.c.bf16 %v253_v19, %v253_v19  ;;  %v256_v23 = vadd.f32 %v3676_v16, %v255_v11 }
 0x23c   :  { %v494_v17 = vsel %vm489_vm1, %v485_v13, 0  ;;  %v486_v20 = vpack.c.bf16 %v368_v18, %v368_v18  ;;  %v484_v24 = vpack.c.bf16 %v256_v23, %v256_v23 }
 0x23d   :  { %4397 = vmatpush3.bf16.xpose.msra.mxu1 %v494_v17 }
 0x23e   :  { %4402 = vmatprep.subr.bf16.mxu1 %v5039_v4  ;;  %v540_v22 = vsel %vm489_vm1, %v486_v20, 0 }
 0x244   :  { %4399 = vmatmul.mubr.msk.bf16.vlgmr.msra.gmra.mrb[4].mxu1 %vm489_vm1, %v483_v21 }
 0x245   :  { %4403 = vmatpush3.bf16.xpose.msra.mxu1 %v540_v22  ;;  %4404 = vmatprep.mubr.msk.bf16.mxu1 %vm5040_vm0, %v5039_v4 }
 0x246   :  { %4408 = vmatprep.subr.bf16.mxu1 %v5039_v4 }
 0x24c   :  { %4405 = vmatmul.mubr.msk.bf16.vlgmr.msra.gmra.mrb[8].mxu1 %vm489_vm1, %v484_v24 }
 0x24d   :  { %4410 = vmatprep.mubr.msk.bf16.mxu1 %vm5040_vm0, %v5039_v4 }
 0x257   :  { %v476_v26 = vpop.f32.mrb[4].mxu0 }
 0x258   :  { %v477_v27 = vadd.f32 %v3694_v25, %v476_v26  ;;  %v4394_v28 = vpop.f32.mrb[5].mxu0 }
 0x259   :  { %v479_v29 = vpop.f32.mrb[6].mxu0 }
 0x25a   :  { %v487_v30 = vpack.c.bf16 %v477_v27, %v477_v27  ;;  %v5385_v31 = vadd.f32 %v3694_v25, %v479_v29  ;;  %v4395_v32 = vpop.f32.mrb[7].mxu0 }
 0x25c   :  { %v626_v33 = vsel %vm624_vm2, %v487_v30, 0  ;;  %v488_v24 = vpack.c.bf16 %v5385_v31, %v5385_v31  ;;  %v4767_v30 = vld [vmem:[%s6182_s8 + $0x40] sm:$0xff]   ;;  %v4768_v31 = vld [vmem:[%s6182_s8 + $0x48] sm:$0xff]  }
 0x25d   :  { %4409 = vmatpush3.bf16.msra.mxu1 %v626_v33  ;;  %v4769_v33 = vld [vmem:[%s6182_s8 + $0x50] sm:$0xff]  }
 0x25e   :  { %4414 = vmatprep.subr.bf16.mxu1 %v5039_v4  ;;  %v672_v27 = vsel %vm624_vm2, %v488_v24, 0 }
 0x277   :  { %v5389_v34 = vpop.f32.mrb[8].mxu0 }
 0x278   :  { %v4438_v35 = vpop.f32.mrb[9].mxu0 }
 0x279   :  { %v5391_v36 = vpop.f32.mrb[10].mxu0  ;;  %v4770_v35 = vld [vmem:[%s6182_s8 + $0x58] sm:$0xff]  }
 0x27a   :  { %v4439_v37 = vpop.f32.mrb[11].mxu0 }
 0x27b   :  { %v4771_v37 = vld [vmem:[%s6182_s8 + $0x60] sm:$0xff]  }
 0x297   :  { %v5393_v38 = vpop.f32.mrb[12].mxu0 }
 0x298   :  { %v4478_v39 = vpop.f32.mrb[13].mxu0 }
 0x299   :  { %v1061_v43 = vpop.f32.mrb[14].mxu0  ;;  %v4772_v39 = vld [vmem:[%s6182_s8 + $0x68] sm:$0xff]  }
 0x29a   :  { %v5401_v45 = vadd.f32 %v5398_v40, %v1061_v43  ;;  %v4479_v46 = vpop.f32.mrb[15].mxu0  ;;  %v4773_v43 = vld [vmem:[%s6182_s8 + $0x70] sm:$0xff]  }
 0x29b   :  { %v4774_v46 = vld [vmem:[%s6182_s8 + $0x78] sm:$0xff]  }
 0x317   :  { %v530_v58 = vpop.f32.mrb[4].mxu1 }
 0x318   :  { %v582_v59 = vmul.f32 0.125, %v530_v58  ;;  %v4400_v60 = vpop.f32.mrb[5].mxu1 }
 0x319   :  { %v533_v61 = vpop.f32.mrb[6].mxu1 }
 0x31a   :  { %v4401_v62 = vpop.f32.mrb[7].mxu1  ;;  %v594_v63 = vadd.f32 %v5413_v56, %v582_v59 }
 0x31c   :  { %v597_v1 = vsel %vm596_vm3, %v594_v63, -inf }
 0x31d   :  { %598 = vmax.xlane.f32.xlu0 %v597_v1  ;;  %v3724_v1 = vld [vmem:[%s6215_s24 + $0x1] ss:$0 sm:$0xff] }
 0x31f   :  { %v576_v3 = vpop.f32.mrb[8].mxu1 }
 0x320   :  { %v583_v5 = vmul.f32 0.125, %v576_v3  ;;  %v4406_v6 = vpop.f32.mrb[9].mxu1 }
 0x321   :  { %v579_v7 = vpop.f32.mrb[10].mxu1  ;;  %v831_v6 = vadd.f32 %v3724_v1, %v5389_v34 }
 0x322   :  { %v4407_v8 = vpop.f32.mrb[11].mxu1  ;;  %v595_v9 = vadd.f32 %v5418_v2, %v583_v5 }
 0x323   :  { %v1065_v8 = vpack.c.bf16 %v831_v6, %v831_v6 }
 0x324   :  { %v600_v10 = vsel %vm596_vm3, %v595_v9, -inf }
 0x325   :  { %601 = vmax.xlane.f32.xlu1 %v600_v10 }
 0x3aa   :  { %v599_v11 = vpop.xlane.xlu0 %598 }
 0x3ab   :  { %v603_v12 = vsub.f32 %v594_v63, %v599_v11  ;;  %v834_v11 = vadd.f32 %v3724_v1, %v5391_v36 }
 0x3ad   :  { %v605_v13 = vmul.f32 1.442695, %v603_v12  ;;  %v1066_v12 = vpack.c.bf16 %v834_v11, %v834_v11 }
 0x3af   :  { %4923 = vpow2.f32 %v605_v13 }
 0x3b2   :  { %v602_v14 = vpop.xlane.xlu1 %601 }
 0x3b3   :  { %v604_v15 = vsub.f32 %v595_v9, %v602_v14  ;;  %v1059_v9 = vadd.f32 %v5398_v40, %v5393_v38 }
 0x3b5   :  { %v607_v16 = vmul.f32 1.442695, %v604_v15  ;;  %v1069_v34 = vpack.c.bf16 %v1059_v9, %v1059_v9 }
 0x3b7   :  { %4925 = vpow2.f32 %v607_v16  ;;  %v1195_v13 = vsel %vm624_vm2, %v1069_v34, 0 }
 0x3b9   :  { %v4924_v17 = vpop.eup %4923 }
 0x3ba   :  { %v609_v18 = vsel %vm596_vm3, %v4924_v17, 0.0 }
 0x3bb   :  { %610 = vadd.xlane.f32.xlu0 %v609_v18 }
 0x3c1   :  { %v4926_v19 = vpop.eup %4925 }
 0x3c2   :  { %v612_v20 = vsel %vm596_vm3, %v4926_v19, 0.0 }
 0x3c3   :  { %613 = vadd.xlane.f32.xlu1 %v612_v20 }
 0x448   :  { %v611_v21 = vpop.xlane.xlu0 %610 }
 0x449   :  { %4927 = vrcp.f32 %v611_v21 }
 0x450   :  { %v614_v22 = vpop.xlane.xlu1 %613 }
 0x451   :  { %4929 = vrcp.f32 %v614_v22 }
 0x453   :  { %v4928_v23 = vpop.eup %4927 }
 0x454   :  { %v617_v25 = vmul.f32 %v4928_v23, %v4924_v17 }
 0x456   :  { %v619_v26 = vpack.c.bf16 %v617_v25, %v617_v25 }
 0x458   :  { %4411 = vmatmul.mubr.msk.bf16.vlgmr.msra.gmra.mrb[12].mxu1 %vm596_vm3, %v619_v26 }
 0x459   :  { %4415 = vmatpush3.bf16.msra.mxu1 %v672_v27  ;;  %4416 = vmatprep.mubr.msk.bf16.mxu1 %vm5040_vm0, %v5039_v4 }
 0x45a   :  { %4440 = vmatprep.subr.bf16.mxu1 %v5039_v4 }
 0x45b   :  { %v4930_v28 = vpop.eup %4929 }
 0x45c   :  { %v618_v29 = vmul.f32 %v4930_v28, %v4926_v19 }
 0x45e   :  { %v620_v32 = vpack.c.bf16 %v618_v29, %v618_v29 }
 0x460   :  { %4417 = vmatmul.mubr.msk.bf16.vlgmr.msra.gmra.mrb[16].mxu1 %vm596_vm3, %v620_v32 }
 0x461   :  { %4441 = vmatpush3.bf16.msra.mxu1 %v4767_v30  ;;  %4456 = vmatprep.mubr.msk.bf16.mxu1 %vm5040_vm0, %v5039_v4 }
 0x462   :  { %4442 = vmatprep.subr.bf16.mxu1 %v5039_v4 }
 0x465   :  { %4443 = vmatpush3.bf16.msra.mxu1 %v4768_v31 }
 0x466   :  { %4444 = vmatprep.subr.bf16.mxu1 %v5039_v4 }
 0x469   :  { %4445 = vmatpush3.bf16.msra.mxu1 %v4769_v33 }
 0x46a   :  { %4446 = vmatprep.subr.bf16.mxu1 %v5039_v4 }
 0x46d   :  { %4447 = vmatpush3.bf16.msra.mxu1 %v4770_v35 }
 0x46e   :  { %4448 = vmatprep.subr.bf16.mxu1 %v5039_v4 }
 0x471   :  { %4449 = vmatpush3.bf16.msra.mxu1 %v4771_v37  ;;  %v4779_v37 = vld [vmem:[%s6186_s12 + $0x20] sm:$0xff]  }
 0x472   :  { %4450 = vmatprep.subr.bf16.mxu1 %v5039_v4  ;;  %4505 = vmatpush3.bf16.msra.mxu0 %v4779_v37  ;;  %v4795_v37 = vld [vmem:[%s6190_s16 + $0x40] ss:$8 sps:$4 sm:$0xff]  }
 0x473   :  { %4506 = vmatprep.subr.bf16.mxu0 %v5039_v4 }
 0x475   :  { %4451 = vmatpush3.bf16.msra.mxu1 %v4772_v39 }
 0x476   :  { %4452 = vmatprep.subr.bf16.mxu1 %v5039_v4 }
 0x479   :  { %4453 = vmatpush3.bf16.msra.mxu1 %v4773_v43 }
 0x47a   :  { %4454 = vmatprep.subr.bf16.mxu1 %v5039_v4 }
 0x47d   :  { %4455 = vmatpush3.bf16.msra.mxu1 %v4774_v46 }
 0x47e   :  { %4480 = vmatprep.subr.bf16.mxu1 %v5039_v4 }
 0x480   :  { %4457 = vmatmul.mubr.bf16.vlgmr.msra.gmra.mrb[20].mxu1 %v5256_v44  ;;  %v3750_v44 = vld [vmem:[%s6183_s9 + $0x1] ss:$0 sm:$0xff] }
 0x481   :  { %4482 = vmatprep.mubr.msk.bf16.mxu1 %vm5040_vm0, %v5039_v4 }
 0x52b   :  { %v5469_v47 = vpop.f32.mrb[12].mxu1 }
 0x52c   :  { %v4412_v48 = vpop.f32.mrb[13].mxu1 }
 0x52d   :  { %v665_v49 = vpop.f32.mrb[14].mxu1  ;;  %v1070_v48 = vpack.c.bf16 %v5401_v45, %v5401_v45  ;;  %v4776_v45 = vld [vmem:[%s6186_s12 + $0x8] sm:$0xff]  }
 0x52e   :  { %v4413_v50 = vpop.f32.mrb[15].mxu1 }
 0x533   :  { %v5471_v52 = vpop.f32.mrb[16].mxu1 }
 0x534   :  { %v714_v53 = vpack.c.bf16 %v5471_v52, %v5469_v47  ;;  %v4418_v54 = vpop.f32.mrb[17].mxu1  ;;  %v4782_v47 = vld [vmem:[%s6186_s12 + $0x38] sm:$0xff]  }
 0x535   :  { %v711_v57 = vpop.f32.mrb[18].mxu1  ;;  %v1241_v54 = vsel %vm624_vm2, %v1070_v48, 0  ;;  %v4801_v48 = vld [vmem:[%s6190_s16 + $0x60] ss:$8 sps:$4 sm:$0xff]  }
 0x536   :  { %v4419_v58 = vpop.f32.mrb[19].mxu1 }
 0x553   :  { %v944_v59 = vpop.f32.mrb[20].mxu1 }
 0x554   :  { %v945_v60 = vadd.f32 %v3750_v44, %v944_v59  ;;  %v4458_v61 = vpop.f32.mrb[21].mxu1 }
 0x555   :  { %v947_v62 = vpop.f32.mrb[22].mxu1  ;;  %v4778_v61 = vld [vmem:[%s6186_s12 + $0x18] sm:$0xff]  }
 0x556   :  { %v1067_v63 = vpack.c.bf16 %v945_v60, %v945_v60  ;;  %v4459_v0 = vpop.f32.mrb[23].mxu1  ;;  %v948_v5 = vadd.f32 %v3750_v44, %v947_v62  ;;  %v4775_v44 = vld [vmem:[%s6186_s12] sm:$0xff]   ;;  %v4777_v60 = vld [vmem:[%s6186_s12 + $0x10] sm:$0xff]   ;;  %v4780_v62 = vld [vmem:[%s6186_s12 + $0x28] sm:$0xff]  }
 0x557   :  { %4507 = vmatpush3.bf16.msra.mxu0 %v4780_v62  ;;  %v3808_v62 = vld [vmem:[%s6188_s14] ss:$0 sm:$0xff] }
 0x558   :  { %v1075_v3 = vsel %vm489_vm1, %v1067_v63, 0  ;;  %v1068_v7 = vpack.c.bf16 %v948_v5, %v948_v5  ;;  %4508 = vmatprep.subr.bf16.mxu0 %v5039_v4  ;;  %v4781_v63 = vld [vmem:[%s6186_s12 + $0x30] sm:$0xff]  }
 0x559   :  { %4481 = vmatpush3.bf16.xpose.msra.mxu1 %v1075_v3 }
 0x55a   :  { %4486 = vmatprep.subr.bf16.mxu1 %v5039_v4  ;;  %v1121_v10 = vsel %vm489_vm1, %v1068_v7, 0 }
 0x55b   :  { %4509 = vmatpush3.bf16.msra.mxu0 %v4781_v63 }
 0x55c   :  { %4510 = vmatprep.subr.bf16.mxu0 %v5039_v4 }
 0x55f   :  { %4511 = vmatpush3.bf16.msra.mxu0 %v4782_v47 }
 0x560   :  { %4483 = vmatmul.mubr.msk.bf16.vlgmr.msra.gmra.mrb[24].mxu1 %vm489_vm1, %v1065_v8 }
 0x561   :  { %4487 = vmatpush3.bf16.xpose.msra.mxu1 %v1121_v10  ;;  %4488 = vmatprep.mubr.msk.bf16.mxu1 %vm5040_vm0, %v5039_v4 }
 0x562   :  { %4492 = vmatprep.subr.bf16.mxu1 %v5039_v4 }
 0x568   :  { %4489 = vmatmul.mubr.msk.bf16.vlgmr.msra.gmra.mrb[28].mxu1 %vm489_vm1, %v1066_v12 }
 0x569   :  { %4493 = vmatpush3.bf16.msra.mxu1 %v1195_v13  ;;  %4494 = vmatprep.mubr.msk.bf16.mxu1 %vm5040_vm0, %v5039_v4  ;;  %v3807_v13 = vld [vmem:[%s6187_s13] ss:$0 sm:$0xff] }
 0x56a   :  { %4498 = vmatprep.subr.bf16.mxu1 %v5039_v4 }
 0x633   :  { %v1111_v38 = vpop.f32.mrb[24].mxu1 }
 0x634   :  { %v1163_v40 = vmul.f32 0.125, %v1111_v38  ;;  %v4484_v14 = vpop.f32.mrb[25].mxu1 }
 0x635   :  { %v1114_v15 = vpop.f32.mrb[26].mxu1 }
 0x636   :  { %v4485_v16 = vpop.f32.mrb[27].mxu1  ;;  %v1165_v36 = vadd.f32 %v1163_v40, %v5413_v56 }
 0x638   :  { %v1167_v17 = vsel %vm596_vm3, %v1165_v36, -inf }
 0x639   :  { %1168 = vmax.xlane.f32.xlu0 %v1167_v17 }
 0x63b   :  { %v1157_v18 = vpop.f32.mrb[28].mxu1 }
 0x63c   :  { %v1164_v19 = vmul.f32 0.125, %v1157_v18  ;;  %v4490_v20 = vpop.f32.mrb[29].mxu1 }
 0x63d   :  { %v1160_v21 = vpop.f32.mrb[30].mxu1  ;;  %v4783_v20 = vld [vmem:[%s6190_s16] ss:$8 sps:$4 sm:$0xff]  }
 0x63e   :  { %v4491_v22 = vpop.f32.mrb[31].mxu1  ;;  %v1166_v23 = vadd.f32 %v1164_v19, %v5418_v2  ;;  %v4785_v21 = vld [vmem:[%s6190_s16 + $0x4] ss:$8 sps:$4 sm:$0xff]  }
 0x63f   :  { %v4788_v22 = vld [vmem:[%s6190_s16 + $0x14] ss:$8 sps:$4 sm:$0xff]   ;;  %1589 = vmatprep.subr.bf16.mxu0 %v4785_v21 }
 0x640   :  { %v1170_v24 = vsel %vm596_vm3, %v1166_v23, -inf }
 0x641   :  { %1171 = vmax.xlane.f32.xlu1 %v1170_v24 }
 0x6c6   :  { %v1169_v25 = vpop.xlane.xlu0 %1168 }
 0x6c7   :  { %v1173_v26 = vsub.f32 %v1165_v36, %v1169_v25 }
 0x6c9   :  { %v1175_v27 = vmul.f32 1.442695, %v1173_v26 }
 0x6cb   :  { %4931 = vpow2.f32 %v1175_v27 }
 0x6ce   :  { %v1172_v28 = vpop.xlane.xlu1 %1171 }
 0x6cf   :  { %v1174_v29 = vsub.f32 %v1166_v23, %v1172_v28 }
 0x6d1   :  { %v1177_v30 = vmul.f32 1.442695, %v1174_v29 }
 0x6d3   :  { %4933 = vpow2.f32 %v1177_v30  ;;  %v4791_v30 = vld [vmem:[%s6190_s16 + $0x24] ss:$8 sps:$4 sm:$0xff]  }
 0x6d5   :  { %v4932_v32 = vpop.eup %4931 }
 0x6d6   :  { %v1179_v31 = vsel %vm596_vm3, %v4932_v32, 0.0 }
 0x6d7   :  { %1180 = vadd.xlane.f32.xlu0 %v1179_v31  ;;  %v4794_v31 = vld [vmem:[%s6190_s16 + $0x34] ss:$8 sps:$4 sm:$0xff]  }
 0x6dd   :  { %v4934_v33 = vpop.eup %4933 }
 0x6de   :  { %v1182_v35 = vsel %vm596_vm3, %v4934_v33, 0.0 }
 0x6df   :  { %1183 = vadd.xlane.f32.xlu1 %v1182_v35  ;;  %v4797_v35 = vld [vmem:[%s6190_s16 + $0x44] ss:$8 sps:$4 sm:$0xff]  }
 0x764   :  { %v1181_v39 = vpop.xlane.xlu0 %1180 }
 0x765   :  { %4935 = vrcp.f32 %v1181_v39  ;;  %v4800_v39 = vld [vmem:[%s6190_s16 + $0x54] ss:$8 sps:$4 sm:$0xff]  }
 0x76c   :  { %v1184_v43 = vpop.xlane.xlu1 %1183 }
 0x76d   :  { %4937 = vrcp.f32 %v1184_v43  ;;  %v4798_v43 = vld [vmem:[%s6190_s16 + $0x50] ss:$8 sps:$4 sm:$0xff]  }
 0x76f   :  { %v4936_v46 = vpop.eup %4935 }
 0x770   :  { %v1187_v49 = vmul.f32 %v4936_v46, %v4932_v32  ;;  %v4789_v32 = vld [vmem:[%s6190_s16 + $0x20] ss:$8 sps:$4 sm:$0xff]   ;;  %v4803_v46 = vld [vmem:[%s6190_s16 + $0x64] ss:$8 sps:$4 sm:$0xff]  }
 0x772   :  { %v1189_v50 = vpack.c.bf16 %v1187_v49, %v1187_v49  ;;  %v4806_v49 = vld [vmem:[%s6190_s16 + $0x74] ss:$8 sps:$4 sm:$0xff]  }
 0x774   :  { %4495 = vmatmul.mubr.msk.bf16.vlgmr.msra.gmra.mrb[32].mxu1 %vm596_vm3, %v1189_v50  ;;  %v4804_v50 = vld [vmem:[%s6190_s16 + $0x70] ss:$8 sps:$4 sm:$0xff]  }
 0x775   :  { %4499 = vmatpush3.bf16.msra.mxu1 %v1241_v54  ;;  %4500 = vmatprep.mubr.msk.bf16.mxu1 %vm5040_vm0, %v5039_v4  ;;  %v5042_v54 = vmov 0  }
 0x776   :  { %4516 = vmatprep.subr.bf16.mxu1 %v5039_v4 }
 0x777   :  { %v4938_v57 = vpop.eup %4937 }
 0x778   :  { %v1188_v58 = vmul.f32 %v4938_v57, %v4934_v33  ;;  %v4792_v33 = vld [vmem:[%s6190_s16 + $0x30] ss:$8 sps:$4 sm:$0xff]  }
 0x77a   :  { %v1190_v59 = vpack.c.bf16 %v1188_v58, %v1188_v58 }
 0x77c   :  { %4501 = vmatmul.mubr.msk.bf16.vlgmr.msra.gmra.mrb[36].mxu1 %vm596_vm3, %v1190_v59 }
 0x77d   :  { %4517 = vmatpush3.bf16.msra.mxu1 %v4775_v44  ;;  %4524 = vmatprep.mubr.msk.bf16.mxu1 %vm5040_vm0, %v5039_v4 }
 0x77e   :  { %4518 = vmatprep.subr.bf16.mxu1 %v5039_v4 }
 0x781   :  { %4519 = vmatpush3.bf16.msra.mxu1 %v4776_v45 }
 0x782   :  { %4520 = vmatprep.subr.bf16.mxu1 %v5039_v4 }
 0x785   :  { %4521 = vmatpush3.bf16.msra.mxu1 %v4777_v60 }
 0x786   :  { %4522 = vmatprep.subr.bf16.mxu1 %v5039_v4 }
 0x789   :  { %4523 = vmatpush3.bf16.msra.mxu1 %v4778_v61 }
 0x78c   :  { %4525 = vmatmul.mubr.msk.bf16.vlgmr.msra.gmra.mrb[40].mxu1 %vm489_vm1, %v714_v53 }
 0x847   :  { %v1231_v52 = vpop.f32.mrb[32].mxu1 }
 0x848   :  { %v4496_v53 = vpop.f32.mrb[33].mxu1 }
 0x849   :  { %v1234_v0 = vpop.f32.mrb[34].mxu1 }
 0x84a   :  { %v4497_v1 = vpop.f32.mrb[35].mxu1  ;;  %v3809_v0 = vld [vmem:[%s6189_s15] ss:$0 sm:$0xff] }
 0x84f   :  { %v1277_v3 = vpop.f32.mrb[36].mxu1 }
 0x850   :  { %v1283_v5 = vpack.c.bf16 %v1277_v3, %v1231_v52  ;;  %v4502_v6 = vpop.f32.mrb[37].mxu1 }
 0x851   :  { %v1280_v7 = vpop.f32.mrb[38].mxu1 }
 0x852   :  { %v4503_v8 = vpop.f32.mrb[39].mxu1  ;;  %4513 = vmatmul.mubr.msk.bf16.vlgmr.msra.gmra.mrb[16].mxu0 %vm489_vm1, %v1283_v5  ;;  %v4807_v7 = vld [vmem:[%s6192_s18 + $0x40] sm:$0xff]  }
 0x853   :  { %1590 = vmatpush1.bf16.msra.mxu0 %v4783_v20  ;;  %1621 = vmatprep.mubr.bf16.mxu0 %v5042_v54  ;;  %v4808_v8 = vld [vmem:[%s6192_s18] sm:$0xff]   ;;  %v1505_v20 = vsub.s32 1, %v5403_v51 }
 0x854   :  { %1591 = vmatprep.subr.bf16.mxu0 %v4788_v22  ;;  %4212 = vmatprep.subr.bf16.mxu1 %v4807_v7 }
 0x855   :  { %4213 = vmatpush3.bf16.msra.mxu1 %v4808_v8 }
 0x85f   :  { %v1422_v9 = vpop.f32.mrb[40].mxu1 }
 0x860   :  { %v4526_v10 = vpop.f32.mrb[41].mxu1 }
 0x861   :  { %v1425_v11 = vpop.f32.mrb[42].mxu1  ;;  %v4810_v10 = vld [vmem:[%s6192_s18 + $0x8] sm:$0xff]  }
 0x862   :  { %v4527_v34 = vpop.f32.mrb[43].mxu1 }
 0x863   :  { %v4812_v34 = vld [vmem:[%s6192_s18 + $0x10] sm:$0xff]  }
 0x925   :  { %v1354_v12 = vpop.f32.mrb[16].mxu0 }
 0x926   :  { %v1423_v38 = vadd.f32 %v1422_v9, %v1354_v12  ;;  %v4514_v40 = vpop.f32.mrb[17].mxu0  ;;  %v4809_v9 = vld [vmem:[%s6192_s18 + $0x48] sm:$0xff]   ;;  %v4813_v12 = vld [vmem:[%s6192_s18 + $0x58] sm:$0xff]  }
 0x927   :  { %v1357_v14 = vpop.f32.mrb[18].mxu0  ;;  %4214 = vmatprep.subr.bf16.mxu1 %v4809_v9  ;;  %v4816_v40 = vld [vmem:[%s6192_s18 + $0x20] sm:$0xff]  }
 0x928   :  { %v1436_v15 = vadd.f32 %v3807_v13, %v1423_v38  ;;  %v1426_v16 = vadd.f32 %v1425_v11, %v1357_v14  ;;  %v4515_v36 = vpop.f32.mrb[19].mxu0  ;;  %4215 = vmatpush3.bf16.msra.mxu1 %v4810_v10  ;;  %v4811_v11 = vld [vmem:[%s6192_s18 + $0x50] sm:$0xff]   ;;  %v4815_v38 = vld [vmem:[%s6192_s18 + $0x60] sm:$0xff]   ;;  %v4817_v14 = vld [vmem:[%s6192_s18 + $0x68] sm:$0xff]  }
 0x929   :  { %4216 = vmatprep.subr.bf16.mxu1 %v4811_v11  ;;  %v4820_v36 = vld [vmem:[%s6192_s18 + $0x30] sm:$0xff]  }
 0x92a   :  { %v1437_v17 = vadd.f32 %v3807_v13, %v1426_v16  ;;  %v1438_v18 = vadd.f32 %v1436_v15, %v5247_v41  ;;  %v4786_v41 = vld [vmem:[%s6190_s16 + $0x10] ss:$8 sps:$4 sm:$0xff]   ;;  %v4818_v15 = vld [vmem:[%s6192_s18 + $0x28] sm:$0xff]  }
 0x92b   :  { %1592 = vmatpush1.bf16.msra.mxu0 %v4786_v41  ;;  %v4814_v13 = vld [vmem:[%s6192_s18 + $0x18] sm:$0xff]   ;;  %v4819_v16 = vld [vmem:[%s6192_s18 + $0x70] sm:$0xff]  }
 0x92c   :  { %1442 = vadd.xlane.f32.xlu0 %v1438_v18  ;;  %v1439_v19 = vadd.f32 %v1437_v17, %v5249_v42  ;;  %1593 = vmatprep.subr.bf16.mxu0 %v4791_v30  ;;  %v4821_v17 = vld [vmem:[%s6192_s18 + $0x78] sm:$0xff]  }
 0x92d   :  { %4217 = vmatpush3.bf16.msra.mxu1 %v4812_v34 }
 0x92e   :  { %1444 = vadd.xlane.f32.xlu1 %v1439_v19  ;;  %4218 = vmatprep.subr.bf16.mxu1 %v4813_v12 }
 0x92f   :  { %1594 = vmatpush1.bf16.msra.mxu0 %v4789_v32 }
 0x930   :  { %1595 = vmatprep.subr.bf16.mxu0 %v4794_v31 }
 0x931   :  { %4219 = vmatpush3.bf16.msra.mxu1 %v4814_v13 }
 0x932   :  { %4220 = vmatprep.subr.bf16.mxu1 %v4815_v38 }
 0x933   :  { %1596 = vmatpush1.bf16.msra.mxu0 %v4792_v33 }
 0x934   :  { %1597 = vmatprep.subr.bf16.mxu0 %v4797_v35 }
 0x935   :  { %4221 = vmatpush3.bf16.msra.mxu1 %v4816_v40 }
 0x936   :  { %4222 = vmatprep.subr.bf16.mxu1 %v4817_v14 }
 0x937   :  { %1598 = vmatpush1.bf16.msra.mxu0 %v4795_v37 }
 0x938   :  { %1599 = vmatprep.subr.bf16.mxu0 %v4800_v39 }
 0x939   :  { %4223 = vmatpush3.bf16.msra.mxu1 %v4818_v15  ;;  %v3826_v15 = vld [vmem:[%s6193_s19] ss:$0 sm:$0xff] }
 0x93a   :  { %4224 = vmatprep.subr.bf16.mxu1 %v4819_v16 }
 0x93b   :  { %1600 = vmatpush1.bf16.msra.mxu0 %v4798_v43 }
 0x93c   :  { %1601 = vmatprep.subr.bf16.mxu0 %v4803_v46 }
 0x93d   :  { %4225 = vmatpush3.bf16.msra.mxu1 %v4820_v36 }
 0x93e   :  { %4226 = vmatprep.subr.bf16.mxu1 %v4821_v17 }
 0x93f   :  { %1602 = vmatpush1.bf16.msra.mxu0 %v4801_v48 }
 0x940   :  { %1603 = vmatprep.subr.bf16.mxu0 %v4806_v49 }
 0x943   :  { %1604 = vmatpush1.bf16.msra.mxu0 %v4804_v50 }
 0x944   :  { %4528 = vmatprep.subr.bf16.mxu0 %v5039_v4 }
 0x9b9   :  { %v1443_v42 = vpop.xlane.xlu0 %1442 }
 0x9ba   :  { %v1446_v23 = vmul.f32 0.0078125, %v1443_v42 }
 0x9bb   :  { %v1445_v24 = vpop.xlane.xlu1 %1444 }
 0x9bc   :  { %v1448_v25 = vsub.f32 %v1438_v18, %v1446_v23  ;;  %v1447_v26 = vmul.f32 0.0078125, %v1445_v24  ;;  %v4822_v18 = vld [vmem:[%s6192_s18 + $0x38] sm:$0xff]  }
 0x9bd   :  { %4227 = vmatpush3.bf16.msra.mxu1 %v4822_v18 }
 0x9be   :  { %v1449_v27 = vsub.f32 %v1439_v19, %v1447_v26  ;;  %v1450_v28 = vmul.f32 %v1448_v25, %v1448_v25  ;;  %4548 = vmatprep.subr.bf16.mxu1 %v5039_v4  ;;  %v1497_v19 = vld [vmem:[%s6217_s5] sm:$0x3] }
 0x9bf   :  { %v1502_v21 = vrot.slane %v1497_v19, %v5410_v55  ;;  %v1506_v22 = vrot.slane %v1497_v19, %v1505_v20 }
 0x9c0   :  { %1452 = vadd.xlane.f32.xlu0 %v1450_v28  ;;  %v1451_v29 = vmul.f32 %v1449_v27, %v1449_v27 }
 0x9c2   :  { %1454 = vadd.xlane.f32.xlu1 %v1451_v29 }
 0xa4d   :  { %v1453_v57 = vpop.xlane.xlu0 %1452 }
 0xa4e   :  { %v1456_v58 = vmul.f32 0.0078125, %v1453_v57 }
 0xa4f   :  { %v1455_v44 = vpop.xlane.xlu1 %1454 }
 0xa50   :  { %v1458_v59 = vadd.f32 1e-12, %v1456_v58  ;;  %v1457_v45 = vmul.f32 0.0078125, %v1455_v44 }
 0xa52   :  { %4939 = vrsqrt.f32 %v1458_v59  ;;  %v1459_v60 = vadd.f32 1e-12, %v1457_v45 }
 0xa54   :  { %4941 = vrsqrt.f32 %v1459_v60 }
 0xa5c   :  { %v4940_v61 = vpop.eup %4939 }
 0xa5d   :  { %v1462_v63 = vmul.f32 %v4940_v61, %v1448_v25 }
 0xa5e   :  { %v4942_v47 = vpop.eup %4941 }
 0xa5f   :  { %v1463_v52 = vmul.f32 %v4942_v47, %v1449_v27  ;;  %v1470_v53 = vmul.f32 %v3808_v62, %v1462_v63 }
 0xa61   :  { %v1471_v1 = vmul.f32 %v3808_v62, %v1463_v52  ;;  %v5609_v3 = vadd.f32 %v3809_v0, %v1470_v53 }
 0xa63   :  { %v5611_v5 = vadd.f32 %v3809_v0, %v1471_v1 }
 0xa65   :  { %v1480_v6 = vpack.c.bf16 %v5611_v5, %v5609_v3 }
 0xa67   :  { %1622 = vmatmul.mubr.bf16.vlgmr.msra.gmra.mrb[20].mxu0 %v1480_v6 }
 0xa68   :  { %4544 = vmatprep.mubr.msk.bf16.mxu0 %vm5040_vm0, %v5039_v4 }
 0xb3a   :  { %v1623_v41 = vpop.f32.mrb[20].mxu0 }
 0xb3b   :  { %v1624_v42 = vadd.f32 %v1623_v41, %v1502_v21  ;;  %v1625_v23 = vpop.f32.mrb[21].mxu0 }
 0xb3c   :  { %v1626_v24 = vadd.f32 %v1625_v23, %v1506_v22  ;;  %v1627_v25 = vpop.f32.mrb[22].mxu0  ;;  %v4823_v23 = vld [vmem:[%s6212_s4 + $0x80] sm:$0xff]  }
 0xb3d   :  { %v1636_v26 = vmul.f32 0.044715, %v1624_v42  ;;  %v1628_v27 = vadd.f32 %v1627_v25, %v1502_v21  ;;  %v1629_v28 = vpop.f32.mrb[23].mxu0  ;;  %v1632_v1 = vmul.f32 0.5, %v1624_v42  ;;  %4529 = vmatpush3.bf16.msra.mxu0 %v4823_v23  ;;  %v4825_v25 = vld [vmem:[%s6212_s4 + $0x88] sm:$0xff]   ;;  %v4855_v23 = vld [vmem:[%s6184_s10 + $0xc0] sm:$0xff]  }
 0xb3e   :  { %v1637_v29 = vmul.f32 0.044715, %v1626_v24  ;;  %v1630_v30 = vadd.f32 %v1629_v28, %v1506_v22  ;;  %v1633_v8 = vmul.f32 0.5, %v1626_v24  ;;  %4530 = vmatprep.subr.bf16.mxu0 %v5039_v4 }
 0xb3f   :  { %v1640_v32 = vmul.f32 %v1636_v26, %v1624_v42  ;;  %v1638_v31 = vmul.f32 0.044715, %v1628_v27  ;;  %v1634_v6 = vmul.f32 0.5, %v1628_v27 }
 0xb40   :  { %v1641_v33 = vmul.f32 %v1637_v29, %v1626_v24  ;;  %v1639_v35 = vmul.f32 0.044715, %v1630_v30  ;;  %v1635_v9 = vmul.f32 0.5, %v1630_v30 }
 0xb41   :  { %v1644_v37 = vmul.f32 %v1640_v32, %v1624_v42  ;;  %v1642_v39 = vmul.f32 %v1638_v31, %v1628_v27  ;;  %4531 = vmatpush3.bf16.msra.mxu0 %v4825_v25  ;;  %v4857_v25 = vld [vmem:[%s6184_s10 + $0xd0] sm:$0xff]  }
 0xb42   :  { %v1645_v43 = vmul.f32 %v1641_v33, %v1626_v24  ;;  %v1643_v46 = vmul.f32 %v1639_v35, %v1630_v30  ;;  %4532 = vmatprep.subr.bf16.mxu0 %v5039_v4  ;;  %v4827_v33 = vld [vmem:[%s6212_s4 + $0x90] sm:$0xff]  }
 0xb43   :  { %v1648_v48 = vadd.f32 %v1644_v37, %v1624_v42  ;;  %v1646_v49 = vmul.f32 %v1642_v39, %v1628_v27  ;;  %v4828_v35 = vld [vmem:[%s6182_s8 + $0x90] sm:$0xff]   ;;  %v4829_v37 = vld [vmem:[%s6212_s4 + $0x98] sm:$0xff]  }
 0xb44   :  { %v1647_v50 = vmul.f32 %v1643_v46, %v1630_v30  ;;  %v1649_v57 = vadd.f32 %v1645_v43, %v1626_v24  ;;  %v4824_v24 = vld [vmem:[%s6182_s8 + $0x80] sm:$0xff]   ;;  %v4830_v39 = vld [vmem:[%s6182_s8 + $0x98] sm:$0xff]  }
 0xb45   :  { %v1652_v58 = vmul.f32 0.7978846, %v1648_v48  ;;  %v1650_v44 = vadd.f32 %v1646_v49, %v1628_v27  ;;  %4533 = vmatpush3.bf16.msra.mxu0 %v4827_v33  ;;  %v4831_v43 = vld [vmem:[%s6212_s4 + $0xa0] sm:$0xff]   ;;  %v4833_v48 = vld [vmem:[%s6212_s4 + $0xa8] sm:$0xff]  }
 0xb46   :  { %v1651_v59 = vadd.f32 %v1647_v50, %v1630_v30  ;;  %v1653_v45 = vmul.f32 0.7978846, %v1649_v57  ;;  %4534 = vmatprep.subr.bf16.mxu0 %v5039_v4  ;;  %v4832_v46 = vld [vmem:[%s6182_s8 + $0xa0] sm:$0xff]   ;;  %v4834_v49 = vld [vmem:[%s6182_s8 + $0xa8] sm:$0xff]   ;;  %v4835_v50 = vld [vmem:[%s6212_s4 + $0xb0] sm:$0xff]  }
 0xb47   :  { %4943 = vtanh.f32 %v1652_v58  ;;  %v1654_v60 = vmul.f32 0.7978846, %v1650_v44  ;;  %v4836_v57 = vld [vmem:[%s6182_s8 + $0xb0] sm:$0xff]   ;;  %v4837_v58 = vld [vmem:[%s6212_s4 + $0xb8] sm:$0xff]  }
 0xb48   :  { %v1655_v61 = vmul.f32 0.7978846, %v1651_v59  ;;  %4945 = vtanh.f32 %v1653_v45  ;;  %v4838_v44 = vld [vmem:[%s6182_s8 + $0xb8] sm:$0xff]  }
 0xb49   :  { %4947 = vtanh.f32 %v1654_v60  ;;  %4535 = vmatpush3.bf16.msra.mxu0 %v4829_v37 }
 0xb4a   :  { %4949 = vtanh.f32 %v1655_v61  ;;  %4536 = vmatprep.subr.bf16.mxu0 %v5039_v4 }
 0xb4d   :  { %4537 = vmatpush3.bf16.msra.mxu0 %v4831_v43 }
 0xb4e   :  { %4538 = vmatprep.subr.bf16.mxu0 %v5039_v4 }
 0xb51   :  { %v4944_v62 = vpop.eup %4943  ;;  %4539 = vmatpush3.bf16.msra.mxu0 %v4833_v48 }
 0xb52   :  { %v4946_v63 = vpop.eup %4945  ;;  %v1660_v47 = vadd.f32 1.0, %v4944_v62  ;;  %4540 = vmatprep.subr.bf16.mxu0 %v5039_v4 }
 0xb53   :  { %v4948_v52 = vpop.eup %4947  ;;  %v1661_v53 = vadd.f32 1.0, %v4946_v63 }
 0xb54   :  { %v4950_v0 = vpop.eup %4949  ;;  %v1662_v7 = vadd.f32 1.0, %v4948_v52  ;;  %v1664_v11 = vmul.f32 %v1660_v47, %v1632_v1  ;;  %v3843_v52 = vld [vmem:[%s6194_s20] ss:$0 sm:$0xff] }
 0xb55   :  { %v1663_v10 = vadd.f32 1.0, %v4950_v0  ;;  %v1665_v12 = vmul.f32 %v1661_v53, %v1633_v8  ;;  %4541 = vmatpush3.bf16.msra.mxu0 %v4835_v50 }
 0xb56   :  { %v1666_v34 = vmul.f32 %v1662_v7, %v1634_v6  ;;  %4542 = vmatprep.subr.bf16.mxu0 %v5039_v4  ;;  %v3844_v7 = vld [vmem:[%s6195_s21] ss:$0 sm:$0xff] }
 0xb57   :  { %v1667_v13 = vmul.f32 %v1663_v10, %v1635_v9 }
 0xb58   :  { %v1668_v38 = vpack.c.bf16 %v1666_v34, %v1664_v11  ;;  %v4839_v11 = vld [vmem:[%s6184_s10 + $0x80] sm:$0xff]  }
 0xb59   :  { %v1669_v40 = vpack.c.bf16 %v1667_v13, %v1665_v12  ;;  %4543 = vmatpush3.bf16.msra.mxu0 %v4837_v58  ;;  %v4840_v12 = vld [vmem:[%s6184_s10 + $0x88] sm:$0xff]   ;;  %v4841_v13 = vld [vmem:[%s6184_s10 + $0x90] sm:$0xff]  }
 0xb5a   :  { %4568 = vmatprep.subr.bf16.mxu0 %v5039_v4 }
 0xb5b   :  { %1837 = vmatprep.mubr.bf16.mxu1 %v1669_v40  ;;  %v4843_v40 = vld [vmem:[%s6184_s10 + $0xa0] sm:$0xff]  }
 0xb5c   :  { %1838 = vmatmul.mubr.bf16.vlgmr.msra.gmra.mrb[44].mxu1 %v1668_v38  ;;  %v4842_v38 = vld [vmem:[%s6184_s10 + $0x98] sm:$0xff]  }
 0xb5d   :  { %4564 = vmatprep.mubr.msk.bf16.mxu1 %vm5040_vm0, %v5039_v4  ;;  %4549 = vmatpush3.bf16.msra.mxu1 %v4824_v24  ;;  %v4856_v24 = vld [vmem:[%s6184_s10 + $0xc8] sm:$0xff]  }
 0xb5e   :  { %4550 = vmatprep.subr.bf16.mxu1 %v5039_v4 }
 0xc2f   :  { %v4228_v14 = vpop.f32.mrb[44].mxu1 }
 0xc30   :  { %v4229_v16 = vpop.f32.mrb[45].mxu1 }
 0xc31   :  { %v4230_v36 = vadd.f32 %v4229_v16, %v4228_v14  ;;  %v4231_v17 = vpop.f32.mrb[46].mxu1  ;;  %v4844_v14 = vld [vmem:[%s6184_s10 + $0xa8] sm:$0xff]   ;;  %v4846_v16 = vld [vmem:[%s6184_s10 + $0xb8] sm:$0xff]  }
 0xc32   :  { %v4232_v18 = vpop.f32.mrb[47].mxu1 }
 0xc33   :  { %v1840_v19 = vadd.f32 %v4230_v36, %v3826_v15  ;;  %v4233_v21 = vadd.f32 %v4232_v18, %v4231_v17  ;;  %v4847_v36 = vld [vmem:[%s6212_s4 + $0xc0] sm:$0xff]   ;;  %v4848_v17 = vld [vmem:[%s6212_s4 + $0xc8] sm:$0xff]   ;;  %v4849_v18 = vld [vmem:[%s6212_s4 + $0xd0] sm:$0xff]  }
 0xc35   :  { %v1843_v22 = vadd.f32 %v4233_v21, %v3826_v15  ;;  %v1846_v41 = vadd.f32 %v1840_v19, %v5609_v3  ;;  %v4826_v3 = vld [vmem:[%s6182_s8 + $0x88] sm:$0xff]   ;;  %v4845_v15 = vld [vmem:[%s6184_s10 + $0xb0] sm:$0xff]   ;;  %v4850_v19 = vld [vmem:[%s6212_s4 + $0xd8] sm:$0xff]  }
 0xc36   :  { %4551 = vmatpush3.bf16.msra.mxu1 %v4826_v3  ;;  %v4851_v21 = vld [vmem:[%s6212_s4 + $0xe0] sm:$0xff]   ;;  %v4858_v3 = vld [vmem:[%s6184_s10 + $0xd8] sm:$0xff]  }
 0xc37   :  { %1850 = vadd.xlane.f32.xlu0 %v1846_v41  ;;  %v1847_v42 = vadd.f32 %v1843_v22, %v5611_v5  ;;  %4552 = vmatprep.subr.bf16.mxu1 %v5039_v4  ;;  %v4852_v22 = vld [vmem:[%s6212_s4 + $0xe8] sm:$0xff]  }
 0xc39   :  { %1852 = vadd.xlane.f32.xlu1 %v1847_v42 }
 0xc3a   :  { %4553 = vmatpush3.bf16.msra.mxu1 %v4828_v35 }
 0xc3b   :  { %4554 = vmatprep.subr.bf16.mxu1 %v5039_v4 }
 0xc3e   :  { %4555 = vmatpush3.bf16.msra.mxu1 %v4830_v39 }
 0xc3f   :  { %4556 = vmatprep.subr.bf16.mxu1 %v5039_v4 }
 0xc42   :  { %4557 = vmatpush3.bf16.msra.mxu1 %v4832_v46 }
 0xc43   :  { %4558 = vmatprep.subr.bf16.mxu1 %v5039_v4 }
 0xc46   :  { %4559 = vmatpush3.bf16.msra.mxu1 %v4834_v49  ;;  %v3862_v49 = vld [vmem:[%s6215_s24 + $0x2] ss:$0 sm:$0xff] }
 0xc47   :  { %4560 = vmatprep.subr.bf16.mxu1 %v5039_v4 }
 0xc4a   :  { %4561 = vmatpush3.bf16.msra.mxu1 %v4836_v57 }
 0xc4b   :  { %4562 = vmatprep.subr.bf16.mxu1 %v5039_v4 }
 0xc4e   :  { %4563 = vmatpush3.bf16.msra.mxu1 %v4838_v44 }
 0xc4f   :  { %4588 = vmatprep.subr.bf16.mxu1 %v5039_v4 }
 0xcc4   :  { %v1851_v5 = vpop.xlane.xlu0 %1850 }
 0xcc5   :  { %v1854_v26 = vmul.f32 0.0078125, %v1851_v5  ;;  %v4859_v5 = vld [vmem:[%s6184_s10 + $0xe0] sm:$0xff]  }
 0xcc6   :  { %v1853_v27 = vpop.xlane.xlu1 %1852 }
 0xcc7   :  { %v1856_v28 = vsub.f32 %v1846_v41, %v1854_v26  ;;  %v1855_v29 = vmul.f32 0.0078125, %v1853_v27  ;;  %v4853_v41 = vld [vmem:[%s6212_s4 + $0xf0] sm:$0xff]   ;;  %v4860_v26 = vld [vmem:[%s6184_s10 + $0xe8] sm:$0xff]  }
 0xcc8   :  { %v4861_v27 = vld [vmem:[%s6184_s10 + $0xf0] sm:$0xff]  }
 0xcc9   :  { %v1857_v30 = vsub.f32 %v1847_v42, %v1855_v29  ;;  %v1858_v32 = vmul.f32 %v1856_v28, %v1856_v28  ;;  %v4854_v42 = vld [vmem:[%s6212_s4 + $0xf8] sm:$0xff]   ;;  %v3888_v29 = vld [vmem:[%s6183_s9 + $0x2] ss:$0 sm:$0xff] }
 0xccb   :  { %1860 = vadd.xlane.f32.xlu0 %v1858_v32  ;;  %v1859_v31 = vmul.f32 %v1857_v30, %v1857_v30 }
 0xccd   :  { %1862 = vadd.xlane.f32.xlu1 %v1859_v31 }
 0xd58   :  { %v1861_v59 = vpop.xlane.xlu0 %1860 }
 0xd59   :  { %v1864_v45 = vmul.f32 0.0078125, %v1861_v59 }
 0xd5a   :  { %v1863_v60 = vpop.xlane.xlu1 %1862 }
 0xd5b   :  { %v1866_v61 = vadd.f32 1e-12, %v1864_v45  ;;  %v1865_v62 = vmul.f32 0.0078125, %v1863_v60 }
 0xd5d   :  { %4951 = vrsqrt.f32 %v1866_v61  ;;  %v1867_v63 = vadd.f32 1e-12, %v1865_v62  ;;  %v3914_v62 = vld [vmem:[%s6185_s11 + $0x2] ss:$0 sm:$0xff] }
 0xd5f   :  { %4953 = vrsqrt.f32 %v1867_v63 }
 0xd67   :  { %v4952_v47 = vpop.eup %4951 }
 0xd68   :  { %v1870_v53 = vmul.f32 %v4952_v47, %v1856_v28  ;;  %v4862_v28 = vld [vmem:[%s6184_s10 + $0xf8] sm:$0xff]  }
 0xd69   :  { %v4954_v0 = vpop.eup %4953 }
 0xd6a   :  { %v1878_v1 = vmul.f32 %v3843_v52, %v1870_v53  ;;  %v1871_v6 = vmul.f32 %v4954_v0, %v1857_v30 }
 0xd6c   :  { %v1879_v8 = vmul.f32 %v3843_v52, %v1871_v6  ;;  %v5750_v9 = vadd.f32 %v3844_v7, %v1878_v1 }
 0xd6e   :  { %v5752_v10 = vadd.f32 %v3844_v7, %v1879_v8 }
 0xd70   :  { %v5759_v34 = vpack.c.bf16 %v5752_v10, %v5750_v9 }
 0xd72   :  { %4545 = vmatmul.mubr.bf16.vlgmr.msra.gmra.mrb[24].mxu0 %v5759_v34  ;;  %4565 = vmatmul.mubr.bf16.vlgmr.msra.gmra.mrb[48].mxu1 %v5759_v34 }
 0xd73   :  { %4569 = vmatpush3.bf16.msra.mxu0 %v4839_v11  ;;  %4584 = vmatprep.mubr.msk.bf16.mxu0 %vm5040_vm0, %v5039_v4 }
 0xd74   :  { %4570 = vmatprep.subr.bf16.mxu0 %v5039_v4  ;;  %4590 = vmatprep.mubr.msk.bf16.mxu1 %vm5040_vm0, %v5039_v4 }
 0xd77   :  { %4571 = vmatpush3.bf16.msra.mxu0 %v4840_v12 }
 0xd78   :  { %4572 = vmatprep.subr.bf16.mxu0 %v5039_v4 }
 0xd7b   :  { %4573 = vmatpush3.bf16.msra.mxu0 %v4841_v13 }
 0xd7c   :  { %4574 = vmatprep.subr.bf16.mxu0 %v5039_v4 }
 0xd7f   :  { %4575 = vmatpush3.bf16.msra.mxu0 %v4842_v38 }
 0xd80   :  { %4576 = vmatprep.subr.bf16.mxu0 %v5039_v4 }
 0xd83   :  { %4577 = vmatpush3.bf16.msra.mxu0 %v4843_v40 }
 0xd84   :  { %4578 = vmatprep.subr.bf16.mxu0 %v5039_v4 }
 0xd87   :  { %4579 = vmatpush3.bf16.msra.mxu0 %v4844_v14  ;;  %v5899_v14 = vld [vmem:[%s6185_s11 + $0x3] ss:$0 sm:$0xff]  ;;  %s3635_s11 = sld [smem:[#allocation4]] }
 0xd88   :  { %4580 = vmatprep.subr.bf16.mxu0 %v5039_v4 }
 0xd8b   :  { %4581 = vmatpush3.bf16.msra.mxu0 %v4845_v15 }
 0xd8c   :  { %4582 = vmatprep.subr.bf16.mxu0 %v5039_v4 }
 0xd8f   :  { %4583 = vmatpush3.bf16.msra.mxu0 %v4846_v16 }
 0xd90   :  { %4612 = vmatprep.subr.bf16.mxu0 %v5039_v4 }
 0xd92   :  { %4585 = vmatmul.mubr.bf16.vlgmr.msra.gmra.mrb[28].mxu0 %v5759_v34 }
 0xd93   :  { %4613 = vmatpush3.bf16.msra.mxu0 %v4847_v36  ;;  %4628 = vmatprep.mubr.msk.bf16.mxu0 %vm5040_vm0, %v5039_v4 }
 0xd94   :  { %4614 = vmatprep.subr.bf16.mxu0 %v5039_v4 }
 0xd97   :  { %4615 = vmatpush3.bf16.msra.mxu0 %v4848_v17 }
 0xd98   :  { %4616 = vmatprep.subr.bf16.mxu0 %v5039_v4 }
 0xd9b   :  { %4617 = vmatpush3.bf16.msra.mxu0 %v4849_v18 }
 0xd9c   :  { %4618 = vmatprep.subr.bf16.mxu0 %v5039_v4 }
 0xd9f   :  { %4619 = vmatpush3.bf16.msra.mxu0 %v4850_v19 }
 0xda0   :  { %4620 = vmatprep.subr.bf16.mxu0 %v5039_v4 }
 0xda3   :  { %4621 = vmatpush3.bf16.msra.mxu0 %v4851_v21 }
 0xda4   :  { %4622 = vmatprep.subr.bf16.mxu0 %v5039_v4 }
 0xda7   :  { %4623 = vmatpush3.bf16.msra.mxu0 %v4852_v22 }
 0xda8   :  { %4624 = vmatprep.subr.bf16.mxu0 %v5039_v4 }
 0xdab   :  { %4625 = vmatpush3.bf16.msra.mxu0 %v4853_v41 }
 0xdac   :  { %4626 = vmatprep.subr.bf16.mxu0 %v5039_v4 }
 0xdaf   :  { %4627 = vmatpush3.bf16.msra.mxu0 %v4854_v42 }
 0xdb0   :  { %4652 = vmatprep.subr.bf16.mxu0 %v5039_v4 }
 0xdb2   :  { %4629 = vmatmul.mubr.bf16.vlgmr.msra.gmra.mrb[32].mxu0 %v5759_v34 }
 0xdb3   :  { %4653 = vmatpush3.bf16.msra.mxu0 %v4855_v23  ;;  %4668 = vmatprep.mubr.msk.bf16.mxu0 %vm5040_vm0, %v5039_v4 }
 0xdb4   :  { %4654 = vmatprep.subr.bf16.mxu0 %v5039_v4 }
 0xdb7   :  { %4655 = vmatpush3.bf16.msra.mxu0 %v4856_v24 }
 0xdb8   :  { %4656 = vmatprep.subr.bf16.mxu0 %v5039_v4 }
 0xdbb   :  { %4657 = vmatpush3.bf16.msra.mxu0 %v4857_v25 }
 0xdbc   :  { %4658 = vmatprep.subr.bf16.mxu0 %v5039_v4 }
 0xdbf   :  { %4659 = vmatpush3.bf16.msra.mxu0 %v4858_v3 }
 0xdc0   :  { %4660 = vmatprep.subr.bf16.mxu0 %v5039_v4 }
 0xdc3   :  { %4661 = vmatpush3.bf16.msra.mxu0 %v4859_v5 }
 0xdc4   :  { %4662 = vmatprep.subr.bf16.mxu0 %v5039_v4 }
 0xdc7   :  { %4663 = vmatpush3.bf16.msra.mxu0 %v4860_v26 }
 0xdc8   :  { %4664 = vmatprep.subr.bf16.mxu0 %v5039_v4 }
 0xdcb   :  { %4665 = vmatpush3.bf16.msra.mxu0 %v4861_v27 }
 0xdcc   :  { %4666 = vmatprep.subr.bf16.mxu0 %v5039_v4 }
 0xdcf   :  { %4667 = vmatpush3.bf16.msra.mxu0 %v4862_v28 }
 0xdd0   :  { %4696 = vmatprep.subr.bf16.mxu0 %v5039_v4 }
 0xdd2   :  { %4669 = vmatmul.mubr.bf16.vlgmr.msra.gmra.mrb[36].mxu0 %v5759_v34 }
 0xdd3   :  { %4704 = vmatprep.mubr.msk.bf16.mxu0 %vm5040_vm0, %v5039_v4 }
 0xe45   :  { %v1996_v30 = vpop.f32.mrb[24].mxu0  ;;  %v2110_v32 = vpop.f32.mrb[48].mxu1 }
 0xe46   :  { %v2111_v31 = vadd.f32 %v3888_v29, %v2110_v32  ;;  %v4546_v33 = vpop.f32.mrb[25].mxu0  ;;  %v4566_v35 = vpop.f32.mrb[49].mxu1  ;;  %v1997_v58 = vadd.f32 %v3862_v49, %v1996_v30 }
 0xe47   :  { %v1999_v37 = vpop.f32.mrb[26].mxu0  ;;  %v2113_v39 = vpop.f32.mrb[50].mxu1 }
 0xe48   :  { %v2233_v43 = vpack.c.bf16 %v2111_v31, %v2111_v31  ;;  %v4547_v46 = vpop.f32.mrb[27].mxu0  ;;  %v4567_v48 = vpop.f32.mrb[51].mxu1  ;;  %v2114_v57 = vadd.f32 %v3888_v29, %v2113_v39  ;;  %v2231_v59 = vpack.c.bf16 %v1997_v58, %v1997_v58  ;;  %v2000_v60 = vadd.f32 %v3862_v49, %v1999_v37 }
 0xe4a   :  { %v2241_v50 = vsel %vm489_vm1, %v2233_v43, 0  ;;  %v2234_v44 = vpack.c.bf16 %v2114_v57, %v2114_v57  ;;  %v2232_v61 = vpack.c.bf16 %v2000_v60, %v2000_v60  ;;  %v4863_v60 = vld [vmem:[%s6182_s8 + $0xc0] sm:$0xff]  }
 0xe4b   :  { %4589 = vmatpush3.bf16.xpose.msra.mxu1 %v2241_v50 }
 0xe4c   :  { %4594 = vmatprep.subr.bf16.mxu1 %v5039_v4  ;;  %v2287_v45 = vsel %vm489_vm1, %v2234_v44, 0 }
 0xe52   :  { %4591 = vmatmul.mubr.msk.bf16.vlgmr.msra.gmra.mrb[52].mxu1 %vm489_vm1, %v2231_v59 }
 0xe53   :  { %4595 = vmatpush3.bf16.xpose.msra.mxu1 %v2287_v45  ;;  %4596 = vmatprep.mubr.msk.bf16.mxu1 %vm5040_vm0, %v5039_v4 }
 0xe54   :  { %4600 = vmatprep.subr.bf16.mxu1 %v5039_v4 }
 0xe5a   :  { %4597 = vmatmul.mubr.msk.bf16.vlgmr.msra.gmra.mrb[56].mxu1 %vm489_vm1, %v2232_v61 }
 0xe5b   :  { %4602 = vmatprep.mubr.msk.bf16.mxu1 %vm5040_vm0, %v5039_v4 }
 0xe65   :  { %v2224_v63 = vpop.f32.mrb[28].mxu0 }
 0xe66   :  { %v2225_v47 = vadd.f32 %v3914_v62, %v2224_v63  ;;  %v4586_v52 = vpop.f32.mrb[29].mxu0  ;;  %v4865_v63 = vld [vmem:[%s6182_s8 + $0xd0] sm:$0xff]  }
 0xe67   :  { %v2227_v53 = vpop.f32.mrb[30].mxu0  ;;  %v4867_v52 = vld [vmem:[%s6182_s8 + $0xe0] sm:$0xff]  }
 0xe68   :  { %v2235_v0 = vpack.c.bf16 %v2225_v47, %v2225_v47  ;;  %v2228_v1 = vadd.f32 %v3914_v62, %v2227_v53  ;;  %v4587_v6 = vpop.f32.mrb[31].mxu0  ;;  %v4864_v62 = vld [vmem:[%s6182_s8 + $0xc8] sm:$0xff]   ;;  %v4866_v47 = vld [vmem:[%s6182_s8 + $0xd8] sm:$0xff]  }
 0xe69   :  { %v4868_v53 = vld [vmem:[%s6182_s8 + $0xe8] sm:$0xff]  }
 0xe6a   :  { %v2361_v7 = vsel %vm624_vm2, %v2235_v0, 0  ;;  %v2236_v50 = vpack.c.bf16 %v2228_v1, %v2228_v1  ;;  %v4869_v0 = vld [vmem:[%s6182_s8 + $0xf0] sm:$0xff]   ;;  %v4870_v1 = vld [vmem:[%s6182_s8 + $0xf8] sm:$0xff]  }
 0xe6b   :  { %4601 = vmatpush3.bf16.msra.mxu1 %v2361_v7 }
 0xe6c   :  { %4606 = vmatprep.subr.bf16.mxu1 %v5039_v4  ;;  %v2407_v44 = vsel %vm624_vm2, %v2236_v50, 0 }
 0xe85   :  { %v5890_v8 = vpop.f32.mrb[32].mxu0 }
 0xe86   :  { %v4630_v11 = vpop.f32.mrb[33].mxu0 }
 0xe87   :  { %v5892_v12 = vpop.f32.mrb[34].mxu0 }
 0xe88   :  { %v4631_v13 = vpop.f32.mrb[35].mxu0 }
 0xea5   :  { %v5894_v38 = vpop.f32.mrb[36].mxu0 }
 0xea6   :  { %v4670_v40 = vpop.f32.mrb[37].mxu0 }
 0xea7   :  { %v2797_v15 = vpop.f32.mrb[38].mxu0 }
 0xea8   :  { %v5902_v16 = vadd.f32 %v5899_v14, %v2797_v15  ;;  %v4671_v36 = vpop.f32.mrb[39].mxu0 }
 0xf25   :  { %v2277_v17 = vpop.f32.mrb[52].mxu1 }
 0xf26   :  { %v2329_v18 = vmul.f32 0.125, %v2277_v17  ;;  %v4592_v19 = vpop.f32.mrb[53].mxu1 }
 0xf27   :  { %v2280_v21 = vpop.f32.mrb[54].mxu1 }
 0xf28   :  { %v4593_v22 = vpop.f32.mrb[55].mxu1  ;;  %v2331_v41 = vadd.f32 %v2329_v18, %v5413_v56 }
 0xf2a   :  { %v2333_v42 = vsel %vm596_vm3, %v2331_v41, -inf }
 0xf2b   :  { %2334 = vmax.xlane.f32.xlu0 %v2333_v42 }
 0xf2d   :  { %v2323_v23 = vpop.f32.mrb[56].mxu1 }
 0xf2e   :  { %v2330_v24 = vmul.f32 0.125, %v2323_v23  ;;  %v4598_v25 = vpop.f32.mrb[57].mxu1 }
 0xf2f   :  { %v2326_v3 = vpop.f32.mrb[58].mxu1 }
 0xf30   :  { %v4599_v5 = vpop.f32.mrb[59].mxu1  ;;  %v2332_v26 = vadd.f32 %v2330_v24, %v5418_v2  ;;  %v3952_v24 = vld [vmem:[%s6215_s24 + $0x3] ss:$0 sm:$0xff]  ;;  %s5043_s24 = smov [#allocation6]  }
 0xf31   :  { %v2567_v5 = vadd.f32 %v3952_v24, %v5890_v8  ;;  %s3659_s3 = sshll.u32 %s5043_s24, 4  ;;  %s3660_s3 = int_to_ptr.vmem [resolvable:$true] %s3659_s3 }
 0xf32   :  { %v2336_v27 = vsel %vm596_vm3, %v2332_v26, -inf  ;;  %s5011_s28 = scalar_lea.vmem %s3660_s3, 64  ;;  %p5016_p11 = scmp.lt.s32.totalorder %s3660_s3, %s3660_s3 }
 0xf33   :  { %2337 = vmax.xlane.f32.xlu1 %v2336_v27  ;;  %v2801_v27 = vpack.c.bf16 %v2567_v5, %v2567_v5  ;;  %p5012_p10 = scmp.ne.s32.totalorder %s3660_s3, %s5011_s28  ;;  %p5017_p12 = scmp.lt.s32.totalorder %s5011_s28, %s5011_s28 }
 0xf35   :  { %p5018_p13 = por %p5017_p12, %p5016_p11 }
 0xf37   :  { %p5019_p0 = pnand %p5018_p13, %p5012_p10 }
 0xfb8   :  { %v2335_v28 = vpop.xlane.xlu0 %2334 }
 0xfb9   :  { %v2339_v29 = vsub.f32 %v2331_v41, %v2335_v28  ;;  %v2795_v28 = vadd.f32 %v5899_v14, %v5894_v38 }
 0xfbb   :  { %v2341_v30 = vmul.f32 1.442695, %v2339_v29  ;;  %v2805_v8 = vpack.c.bf16 %v2795_v28, %v2795_v28 }
 0xfbd   :  { %4955 = vpow2.f32 %v2341_v30  ;;  %v2570_v30 = vadd.f32 %v3952_v24, %v5892_v12 }
 0xfc0   :  { %v2338_v32 = vpop.xlane.xlu1 %2337 }
 0xfc1   :  { %v2340_v31 = vsub.f32 %v2332_v26, %v2338_v32  ;;  %v2802_v32 = vpack.c.bf16 %v2570_v30, %v2570_v30 }
 0xfc3   :  { %v2343_v33 = vmul.f32 1.442695, %v2340_v31  ;;  %v2931_v31 = vsel %vm624_vm2, %v2805_v8, 0 }
 0xfc5   :  { %4957 = vpow2.f32 %v2343_v33 }
 0xfc7   :  { %v4956_v35 = vpop.eup %4955 }
 0xfc8   :  { %v2345_v37 = vsel %vm596_vm3, %v4956_v35, 0.0 }
 0xfc9   :  { %2346 = vadd.xlane.f32.xlu0 %v2345_v37 }
 0xfcf   :  { %v4958_v39 = vpop.eup %4957 }
 0xfd0   :  { %v2348_v43 = vsel %vm596_vm3, %v4958_v39, 0.0 }
 0xfd1   :  { %2349 = vadd.xlane.f32.xlu1 %v2348_v43 }
0x1056   :  { %v2347_v46 = vpop.xlane.xlu0 %2346 }
0x1057   :  { %4959 = vrcp.f32 %v2347_v46 }
0x105e   :  { %v2350_v48 = vpop.xlane.xlu1 %2349 }
0x105f   :  { %4961 = vrcp.f32 %v2350_v48 }
0x1061   :  { %v4960_v49 = vpop.eup %4959 }
0x1062   :  { %v2353_v57 = vmul.f32 %v4960_v49, %v4956_v35 }
0x1064   :  { %v2355_v58 = vpack.c.bf16 %v2353_v57, %v2353_v57 }
0x1066   :  { %4603 = vmatmul.mubr.msk.bf16.vlgmr.msra.gmra.mrb[60].mxu1 %vm596_vm3, %v2355_v58 }
0x1067   :  { %4607 = vmatpush3.bf16.msra.mxu1 %v2407_v44  ;;  %4608 = vmatprep.mubr.msk.bf16.mxu1 %vm5040_vm0, %v5039_v4 }
0x1068   :  { %4632 = vmatprep.subr.bf16.mxu1 %v5039_v4 }
0x1069   :  { %v4962_v59 = vpop.eup %4961 }
0x106a   :  { %v2354_v45 = vmul.f32 %v4962_v59, %v4958_v39 }
0x106c   :  { %v2356_v61 = vpack.c.bf16 %v2354_v45, %v2354_v45 }
0x106e   :  { %4609 = vmatmul.mubr.msk.bf16.vlgmr.msra.gmra.mrb[64].mxu1 %vm596_vm3, %v2356_v61 }
0x106f   :  { %4633 = vmatpush3.bf16.msra.mxu1 %v4863_v60  ;;  %4648 = vmatprep.mubr.msk.bf16.mxu1 %vm5040_vm0, %v5039_v4 }
0x1070   :  { %4634 = vmatprep.subr.bf16.mxu1 %v5039_v4 }
0x1073   :  { %4635 = vmatpush3.bf16.msra.mxu1 %v4864_v62 }
0x1074   :  { %4636 = vmatprep.subr.bf16.mxu1 %v5039_v4 }
0x1077   :  { %4637 = vmatpush3.bf16.msra.mxu1 %v4865_v63 }
0x1078   :  { %4638 = vmatprep.subr.bf16.mxu1 %v5039_v4 }
0x107b   :  { %4639 = vmatpush3.bf16.msra.mxu1 %v4866_v47 }
0x107c   :  { %4640 = vmatprep.subr.bf16.mxu1 %v5039_v4 }
0x107f   :  { %4641 = vmatpush3.bf16.msra.mxu1 %v4867_v52 }
0x1080   :  { %4642 = vmatprep.subr.bf16.mxu1 %v5039_v4 }
0x1083   :  { %4643 = vmatpush3.bf16.msra.mxu1 %v4868_v53 }
0x1084   :  { %4644 = vmatprep.subr.bf16.mxu1 %v5039_v4 }
0x1087   :  { %4645 = vmatpush3.bf16.msra.mxu1 %v4869_v0 }
0x1088   :  { %4646 = vmatprep.subr.bf16.mxu1 %v5039_v4 }
0x108b   :  { %4647 = vmatpush3.bf16.msra.mxu1 %v4870_v1 }
0x108c   :  { %4672 = vmatprep.subr.bf16.mxu1 %v5039_v4 }
0x108e   :  { %4649 = vmatmul.mubr.bf16.vlgmr.msra.gmra.mrb[68].mxu1 %v5759_v34  ;;  %v3978_v34 = vld [vmem:[%s6183_s9 + $0x3] ss:$0 sm:$0xff]  ;;  %s4128_s9 = sld [smem:[#allocation4 + $0x1]] }
0x108f   :  { %4674 = vmatprep.mubr.msk.bf16.mxu1 %vm5040_vm0, %v5039_v4 }
0x1094   :  { %s3669_s27 = scalar_lea.vmem [#allocation2], %s4128_s9 }
0x1139   :  { %v5953_v6 = vpop.f32.mrb[60].mxu1 }
0x113a   :  { %v4604_v7 = vpop.f32.mrb[61].mxu1 }
0x113b   :  { %v2400_v11 = vpop.f32.mrb[62].mxu1  ;;  %v2806_v7 = vpack.c.bf16 %v5902_v16, %v5902_v16  ;;  %v4872_v16 = vld [vmem:[%s6186_s12 + $0x48] sm:$0xff]  }
0x113c   :  { %v4605_v13 = vpop.f32.mrb[63].mxu1 }
0x1141   :  { %v5955_v40 = vpop.f32.mrb[64].mxu1 }
0x1142   :  { %v2449_v15 = vpack.c.bf16 %v5955_v40, %v5953_v6  ;;  %v4610_v36 = vpop.f32.mrb[65].mxu1  ;;  %v4878_v6 = vld [vmem:[%s6186_s12 + $0x78] sm:$0xff]  }
0x1143   :  { %v2446_v17 = vpop.f32.mrb[66].mxu1  ;;  %v2977_v36 = vsel %vm624_vm2, %v2806_v7, 0  ;;  %v4900_v7 = vld [vmem:[%s6190_s16 + $0xf0] ss:$8 sps:$4 sm:$0xff]  }
0x1144   :  { %v4611_v18 = vpop.f32.mrb[67].mxu1 }
0x1161   :  { %v2680_v19 = vpop.f32.mrb[68].mxu1 }
0x1162   :  { %v2681_v21 = vadd.f32 %v3978_v34, %v2680_v19  ;;  %v4650_v22 = vpop.f32.mrb[69].mxu1 }
0x1163   :  { %v2683_v41 = vpop.f32.mrb[70].mxu1  ;;  %v4874_v22 = vld [vmem:[%s6186_s12 + $0x58] sm:$0xff]  }
0x1164   :  { %v2803_v42 = vpack.c.bf16 %v2681_v21, %v2681_v21  ;;  %v4651_v23 = vpop.f32.mrb[71].mxu1  ;;  %v2684_v3 = vadd.f32 %v3978_v34, %v2683_v41  ;;  %v4871_v34 = vld [vmem:[%s6186_s12 + $0x40] sm:$0xff]   ;;  %v4873_v21 = vld [vmem:[%s6186_s12 + $0x50] sm:$0xff]   ;;  %v4876_v41 = vld [vmem:[%s6186_s12 + $0x68] sm:$0xff]  }
0x1166   :  { %v2811_v25 = vsel %vm489_vm1, %v2803_v42, 0  ;;  %v2804_v26 = vpack.c.bf16 %v2684_v3, %v2684_v3  ;;  %v4877_v42 = vld [vmem:[%s6186_s12 + $0x70] sm:$0xff]  }
0x1167   :  { %4673 = vmatpush3.bf16.xpose.msra.mxu1 %v2811_v25 }
0x1168   :  { %4678 = vmatprep.subr.bf16.mxu1 %v5039_v4  ;;  %v2857_v29 = vsel %vm489_vm1, %v2804_v26, 0 }
0x116e   :  { %4675 = vmatmul.mubr.msk.bf16.vlgmr.msra.gmra.mrb[72].mxu1 %vm489_vm1, %v2801_v27 }
0x116f   :  { %4679 = vmatpush3.bf16.xpose.msra.mxu1 %v2857_v29  ;;  %4680 = vmatprep.mubr.msk.bf16.mxu1 %vm5040_vm0, %v5039_v4 }
0x1170   :  { %4684 = vmatprep.subr.bf16.mxu1 %v5039_v4 }
0x1176   :  { %4681 = vmatmul.mubr.msk.bf16.vlgmr.msra.gmra.mrb[76].mxu1 %vm489_vm1, %v2802_v32  ;;  %v4036_v32 = vld [vmem:[%s6187_s13 + $0x1] ss:$0 sm:$0xff]  ;;  %s4130_s13 = sld [smem:[#allocation5 + $0x1]] }
0x1177   :  { %4685 = vmatpush3.bf16.msra.mxu1 %v2931_v31  ;;  %4686 = vmatprep.mubr.msk.bf16.mxu1 %vm5040_vm0, %v5039_v4 }
0x1178   :  { %4690 = vmatprep.subr.bf16.mxu1 %v5039_v4 }
0x1241   :  { %v2847_v38 = vpop.f32.mrb[72].mxu1 }
0x1242   :  { %v2899_v14 = vmul.f32 0.125, %v2847_v38  ;;  %v4676_v33 = vpop.f32.mrb[73].mxu1 }
0x1243   :  { %v2850_v35 = vpop.f32.mrb[74].mxu1 }
0x1244   :  { %v4677_v37 = vpop.f32.mrb[75].mxu1  ;;  %v2901_v12 = vadd.f32 %v2899_v14, %v5413_v56 }
0x1246   :  { %v2903_v39 = vsel %vm596_vm3, %v2901_v12, -inf }
0x1247   :  { %2904 = vmax.xlane.f32.xlu0 %v2903_v39 }
0x1249   :  { %v2893_v43 = vpop.f32.mrb[76].mxu1 }
0x124a   :  { %v2900_v46 = vmul.f32 0.125, %v2893_v43  ;;  %v4682_v48 = vpop.f32.mrb[77].mxu1  ;;  %v4879_v43 = vld [vmem:[%s6190_s16 + $0x80] ss:$8 sps:$4 sm:$0xff]  }
0x124b   :  { %v2896_v49 = vpop.f32.mrb[78].mxu1  ;;  %v4884_v48 = vld [vmem:[%s6190_s16 + $0x94] ss:$8 sps:$4 sm:$0xff]  }
0x124c   :  { %v4683_v50 = vpop.f32.mrb[79].mxu1  ;;  %v2902_v57 = vadd.f32 %v2900_v46, %v5418_v2  ;;  %v4875_v2 = vld [vmem:[%s6186_s12 + $0x60] sm:$0xff]  }
0x124d   :  { %4697 = vmatpush3.bf16.msra.mxu0 %v4875_v2  ;;  %v4881_v46 = vld [vmem:[%s6190_s16 + $0x84] ss:$8 sps:$4 sm:$0xff]   ;;  %v4894_v2 = vld [vmem:[%s6190_s16 + $0xd0] ss:$8 sps:$4 sm:$0xff]  }
0x124e   :  { %v2906_v58 = vsel %vm596_vm3, %v2902_v57, -inf  ;;  %4698 = vmatprep.subr.bf16.mxu0 %v5039_v4 }
0x124f   :  { %2907 = vmax.xlane.f32.xlu1 %v2906_v58 }
0x1251   :  { %4699 = vmatpush3.bf16.msra.mxu0 %v4876_v41 }
0x1252   :  { %4700 = vmatprep.subr.bf16.mxu0 %v5039_v4 }
0x1255   :  { %4701 = vmatpush3.bf16.msra.mxu0 %v4877_v42 }
0x1256   :  { %4702 = vmatprep.subr.bf16.mxu0 %v5039_v4 }
0x1259   :  { %4703 = vmatpush3.bf16.msra.mxu0 %v4878_v6  ;;  %v4040_v6 = vld [vmem:[%s6189_s15 + $0x1] ss:$0 sm:$0xff] }
0x125a   :  { %3330 = vmatprep.subr.bf16.mxu0 %v4881_v46 }
0x12d4   :  { %v2905_v44 = vpop.xlane.xlu0 %2904 }
0x12d5   :  { %v2909_v59 = vsub.f32 %v2901_v12, %v2905_v44 }
0x12d7   :  { %v2911_v45 = vmul.f32 1.442695, %v2909_v59 }
0x12d9   :  { %4963 = vpow2.f32 %v2911_v45 }
0x12dc   :  { %v2908_v60 = vpop.xlane.xlu1 %2907 }
0x12dd   :  { %v2910_v61 = vsub.f32 %v2902_v57, %v2908_v60  ;;  %v4887_v60 = vld [vmem:[%s6190_s16 + $0xa4] ss:$8 sps:$4 sm:$0xff]  }
0x12df   :  { %v2913_v56 = vmul.f32 1.442695, %v2910_v61  ;;  %v4885_v61 = vld [vmem:[%s6190_s16 + $0xa0] ss:$8 sps:$4 sm:$0xff]  }
0x12e1   :  { %4965 = vpow2.f32 %v2913_v56  ;;  %v4890_v56 = vld [vmem:[%s6190_s16 + $0xb4] ss:$8 sps:$4 sm:$0xff]  }
0x12e3   :  { %v4964_v62 = vpop.eup %4963 }
0x12e4   :  { %v2915_v63 = vsel %vm596_vm3, %v4964_v62, 0.0 }
0x12e5   :  { %2916 = vadd.xlane.f32.xlu0 %v2915_v63  ;;  %v4893_v63 = vld [vmem:[%s6190_s16 + $0xc4] ss:$8 sps:$4 sm:$0xff]  }
0x12eb   :  { %v4966_v47 = vpop.eup %4965 }
0x12ec   :  { %v2918_v52 = vsel %vm596_vm3, %v4966_v47, 0.0 }
0x12ed   :  { %2919 = vadd.xlane.f32.xlu1 %v2918_v52  ;;  %v4896_v52 = vld [vmem:[%s6190_s16 + $0xd4] ss:$8 sps:$4 sm:$0xff]  }
0x1372   :  { %v2917_v53 = vpop.xlane.xlu0 %2916 }
0x1373   :  { %4967 = vrcp.f32 %v2917_v53  ;;  %v4899_v53 = vld [vmem:[%s6190_s16 + $0xe4] ss:$8 sps:$4 sm:$0xff]  }
0x137a   :  { %v2920_v0 = vpop.xlane.xlu1 %2919 }
0x137b   :  { %4969 = vrcp.f32 %v2920_v0  ;;  %v4897_v0 = vld [vmem:[%s6190_s16 + $0xe0] ss:$8 sps:$4 sm:$0xff]  }
0x137d   :  { %v4968_v1 = vpop.eup %4967 }
0x137e   :  { %v2923_v11 = vmul.f32 %v4968_v1, %v4964_v62  ;;  %v4888_v62 = vld [vmem:[%s6190_s16 + $0xb0] ss:$8 sps:$4 sm:$0xff]   ;;  %v4902_v1 = vld [vmem:[%s6190_s16 + $0xf4] ss:$8 sps:$4 sm:$0xff]  }
0x1380   :  { %v2925_v13 = vpack.c.bf16 %v2923_v11, %v2923_v11 }
0x1382   :  { %4687 = vmatmul.mubr.msk.bf16.vlgmr.msra.gmra.mrb[80].mxu1 %vm596_vm3, %v2925_v13 }
0x1383   :  { %4691 = vmatpush3.bf16.msra.mxu1 %v2977_v36  ;;  %4692 = vmatprep.mubr.msk.bf16.mxu1 %vm5040_vm0, %v5039_v4 }
0x1384   :  { %4708 = vmatprep.subr.bf16.mxu1 %v5039_v4 }
0x1385   :  { %v4970_v17 = vpop.eup %4969 }
0x1386   :  { %v2924_v18 = vmul.f32 %v4970_v17, %v4966_v47  ;;  %v4891_v47 = vld [vmem:[%s6190_s16 + $0xc0] ss:$8 sps:$4 sm:$0xff]  }
0x1388   :  { %v2926_v19 = vpack.c.bf16 %v2924_v18, %v2924_v18 }
0x138a   :  { %4693 = vmatmul.mubr.msk.bf16.vlgmr.msra.gmra.mrb[84].mxu1 %vm596_vm3, %v2926_v19 }
0x138b   :  { %4709 = vmatpush3.bf16.msra.mxu1 %v4871_v34  ;;  %4716 = vmatprep.mubr.msk.bf16.mxu1 %vm5040_vm0, %v5039_v4 }
0x138c   :  { %4710 = vmatprep.subr.bf16.mxu1 %v5039_v4 }
0x138f   :  { %4711 = vmatpush3.bf16.msra.mxu1 %v4872_v16  ;;  %v4039_v16 = vld [vmem:[%s6188_s14 + $0x1] ss:$0 sm:$0xff] }
0x1390   :  { %4712 = vmatprep.subr.bf16.mxu1 %v5039_v4 }
0x1393   :  { %4713 = vmatpush3.bf16.msra.mxu1 %v4873_v21 }
0x1394   :  { %4714 = vmatprep.subr.bf16.mxu1 %v5039_v4 }
0x1397   :  { %4715 = vmatpush3.bf16.msra.mxu1 %v4874_v22 }
0x139a   :  { %4717 = vmatmul.mubr.msk.bf16.vlgmr.msra.gmra.mrb[88].mxu1 %vm489_vm1, %v2449_v15 }
0x1455   :  { %v2967_v40 = vpop.f32.mrb[80].mxu1 }
0x1456   :  { %v4688_v15 = vpop.f32.mrb[81].mxu1 }
0x1457   :  { %v2970_v23 = vpop.f32.mrb[82].mxu1 }
0x1458   :  { %v4689_v24 = vpop.f32.mrb[83].mxu1 }
0x145d   :  { %v3013_v25 = vpop.f32.mrb[84].mxu1 }
0x145e   :  { %v3019_v3 = vpack.c.bf16 %v3013_v25, %v2967_v40  ;;  %v4694_v5 = vpop.f32.mrb[85].mxu1  ;;  %v4903_v25 = vld [vmem:[%s6192_s18 + $0xc0] sm:$0xff]  }
0x145f   :  { %v3016_v26 = vpop.f32.mrb[86].mxu1  ;;  %4314 = vmatprep.subr.bf16.mxu1 %v4903_v25  ;;  %v4905_v5 = vld [vmem:[%s6192_s18 + $0xc8] sm:$0xff]  }
0x1460   :  { %v4695_v27 = vpop.f32.mrb[87].mxu1  ;;  %4705 = vmatmul.mubr.msk.bf16.vlgmr.msra.gmra.mrb[40].mxu0 %vm489_vm1, %v3019_v3  ;;  %v4904_v3 = vld [vmem:[%s6192_s18 + $0x80] sm:$0xff]   ;;  %v4906_v26 = vld [vmem:[%s6192_s18 + $0x88] sm:$0xff]  }
0x1461   :  { %3362 = vmatprep.mubr.bf16.mxu0 %v5042_v54  ;;  %3331 = vmatpush1.bf16.msra.mxu0 %v4879_v43  ;;  %v4907_v27 = vld [vmem:[%s6192_s18 + $0xd0] sm:$0xff]  }
0x1462   :  { %3332 = vmatprep.subr.bf16.mxu0 %v4884_v48  ;;  %4315 = vmatpush3.bf16.msra.mxu1 %v4904_v3 }
0x1463   :  { %4316 = vmatprep.subr.bf16.mxu1 %v4905_v5 }
0x1466   :  { %4317 = vmatpush3.bf16.msra.mxu1 %v4906_v26 }
0x1467   :  { %4318 = vmatprep.subr.bf16.mxu1 %v4907_v27  ;;  %v4107_v27 = vld [vmem:[%s6193_s19 + $0x1] ss:$0 sm:$0xff] }
0x146d   :  { %v3158_v28 = vpop.f32.mrb[88].mxu1 }
0x146e   :  { %v4718_v4 = vpop.f32.mrb[89].mxu1 }
0x146f   :  { %v3161_v29 = vpop.f32.mrb[90].mxu1  ;;  %v4909_v4 = vld [vmem:[%s6192_s18 + $0xd8] sm:$0xff]  }
0x1470   :  { %v4719_v30 = vpop.f32.mrb[91].mxu1 }
0x1471   :  { %v4911_v30 = vld [vmem:[%s6192_s18 + $0xe0] sm:$0xff]  }
0x1533   :  { %v3090_v8 = vpop.f32.mrb[40].mxu0 }
0x1534   :  { %v3159_v31 = vadd.f32 %v3158_v28, %v3090_v8  ;;  %v4706_v38 = vpop.f32.mrb[41].mxu0  ;;  %v4908_v28 = vld [vmem:[%s6192_s18 + $0x90] sm:$0xff]   ;;  %v4912_v8 = vld [vmem:[%s6192_s18 + $0xa0] sm:$0xff]  }
0x1535   :  { %v3093_v14 = vpop.f32.mrb[42].mxu0  ;;  %4319 = vmatpush3.bf16.msra.mxu1 %v4908_v28  ;;  %v4915_v38 = vld [vmem:[%s6192_s18 + $0xf0] sm:$0xff]  }
0x1536   :  { %v3173_v33 = vadd.f32 %v4036_v32, %v3159_v31  ;;  %v3162_v35 = vadd.f32 %v3161_v29, %v3093_v14  ;;  %v4707_v37 = vpop.f32.mrb[43].mxu0  ;;  %v4910_v29 = vld [vmem:[%s6192_s18 + $0x98] sm:$0xff]   ;;  %4320 = vmatprep.subr.bf16.mxu1 %v4909_v4  ;;  %v4914_v31 = vld [vmem:[%s6192_s18 + $0xa8] sm:$0xff]   ;;  %v4916_v14 = vld [vmem:[%s6192_s18 + $0xb0] sm:$0xff]  }
0x1537   :  { %v4057_v37 = vld [vmem:[%s6217_s5 + $0x2] sm:$0x3] }
0x1538   :  { %v3174_v12 = vadd.f32 %v4036_v32, %v3162_v35  ;;  %v3175_v39 = vadd.f32 %v3173_v33, %v5750_v9  ;;  %v4882_v9 = vld [vmem:[%s6190_s16 + $0x90] ss:$8 sps:$4 sm:$0xff]   ;;  %v4913_v32 = vld [vmem:[%s6192_s18 + $0xe8] sm:$0xff]  }
0x1539   :  { %3333 = vmatpush1.bf16.msra.mxu0 %v4882_v9  ;;  %4321 = vmatpush3.bf16.msra.mxu1 %v4910_v29  ;;  %v4917_v33 = vld [vmem:[%s6192_s18 + $0xf8] sm:$0xff]  }
0x153a   :  { %3181 = vadd.xlane.f32.xlu0 %v3175_v39  ;;  %v3176_v54 = vadd.f32 %v3174_v12, %v5752_v10  ;;  %3334 = vmatprep.subr.bf16.mxu0 %v4887_v60  ;;  %v4918_v35 = vld [vmem:[%s6192_s18 + $0xb8] sm:$0xff]   ;;  %v3243_v12 = vrot.slane %v4057_v37, %v5410_v55 }
0x153b   :  { %4322 = vmatprep.subr.bf16.mxu1 %v4911_v30 }
0x153c   :  { %3183 = vadd.xlane.f32.xlu1 %v3176_v54 }
0x153d   :  { %3335 = vmatpush1.bf16.msra.mxu0 %v4885_v61  ;;  %4323 = vmatpush3.bf16.msra.mxu1 %v4912_v8 }
0x153e   :  { %3336 = vmatprep.subr.bf16.mxu0 %v4890_v56  ;;  %4324 = vmatprep.subr.bf16.mxu1 %v4913_v32 }
0x1541   :  { %3337 = vmatpush1.bf16.msra.mxu0 %v4888_v62  ;;  %4325 = vmatpush3.bf16.msra.mxu1 %v4914_v31 }
0x1542   :  { %3338 = vmatprep.subr.bf16.mxu0 %v4893_v63  ;;  %4326 = vmatprep.subr.bf16.mxu1 %v4915_v38 }
0x1545   :  { %3339 = vmatpush1.bf16.msra.mxu0 %v4891_v47  ;;  %4327 = vmatpush3.bf16.msra.mxu1 %v4916_v14 }
0x1546   :  { %3340 = vmatprep.subr.bf16.mxu0 %v4896_v52  ;;  %4328 = vmatprep.subr.bf16.mxu1 %v4917_v33 }
0x1549   :  { %3341 = vmatpush1.bf16.msra.mxu0 %v4894_v2  ;;  %4329 = vmatpush3.bf16.msra.mxu1 %v4918_v35 }
0x154a   :  { %3342 = vmatprep.subr.bf16.mxu0 %v4899_v53 }
0x154d   :  { %3343 = vmatpush1.bf16.msra.mxu0 %v4897_v0 }
0x154e   :  { %3344 = vmatprep.subr.bf16.mxu0 %v4902_v1 }
0x1551   :  { %3345 = vmatpush1.bf16.msra.mxu0 %v4900_v7 }
0x15c7   :  { %v3182_v10 = vpop.xlane.xlu0 %3181 }
0x15c8   :  { %v3185_v49 = vmul.f32 0.0078125, %v3182_v10 }
0x15c9   :  { %v3184_v50 = vpop.xlane.xlu1 %3183 }
0x15ca   :  { %v3187_v57 = vsub.f32 %v3175_v39, %v3185_v49  ;;  %v3186_v58 = vmul.f32 0.0078125, %v3184_v50  ;;  %v3247_v39 = vrot.slane %v4057_v37, %v1505_v20 }
0x15cc   :  { %v3188_v44 = vsub.f32 %v3176_v54, %v3186_v58  ;;  %v3189_v59 = vmul.f32 %v3187_v57, %v3187_v57 }
0x15ce   :  { %3191 = vadd.xlane.f32.xlu0 %v3189_v59  ;;  %v3190_v45 = vmul.f32 %v3188_v44, %v3188_v44 }
0x15d0   :  { %3193 = vadd.xlane.f32.xlu1 %v3190_v45 }
0x165b   :  { %v3192_v11 = vpop.xlane.xlu0 %3191 }
0x165c   :  { %v3195_v13 = vmul.f32 0.0078125, %v3192_v11 }
0x165d   :  { %v3194_v36 = vpop.xlane.xlu1 %3193 }
0x165e   :  { %v3197_v17 = vadd.f32 1e-12, %v3195_v13  ;;  %v3196_v18 = vmul.f32 0.0078125, %v3194_v36 }
0x1660   :  { %4971 = vrsqrt.f32 %v3197_v17  ;;  %v3198_v34 = vadd.f32 1e-12, %v3196_v18 }
0x1662   :  { %4973 = vrsqrt.f32 %v3198_v34 }
0x166a   :  { %v4972_v19 = vpop.eup %4971 }
0x166b   :  { %v3201_v21 = vmul.f32 %v4972_v19, %v3187_v57 }
0x166c   :  { %v4974_v22 = vpop.eup %4973 }
0x166d   :  { %v3202_v41 = vmul.f32 %v4974_v22, %v3188_v44  ;;  %v3209_v42 = vmul.f32 %v4039_v16, %v3201_v21 }
0x166f   :  { %v3210_v40 = vmul.f32 %v4039_v16, %v3202_v41  ;;  %v6092_v15 = vadd.f32 %v4040_v6, %v3209_v42 }
0x1671   :  { %v6094_v23 = vadd.f32 %v4040_v6, %v3210_v40 }
0x1673   :  { %v3219_v24 = vpack.c.bf16 %v6094_v23, %v6092_v15 }
0x1675   :  { %3363 = vmatmul.mubr.bf16.vlgmr.msra.gmra.mrb[44].mxu0 %v3219_v24 }
0x1748   :  { %v3364_v54 = vpop.f32.mrb[44].mxu0 }
0x1749   :  { %v3365_v43 = vadd.f32 %v3364_v54, %v3243_v12  ;;  %v3366_v46 = vpop.f32.mrb[45].mxu0 }
0x174a   :  { %v3367_v48 = vadd.f32 %v3366_v46, %v3247_v39  ;;  %v3368_v9 = vpop.f32.mrb[46].mxu0 }
0x174b   :  { %v3377_v10 = vmul.f32 0.044715, %v3365_v43  ;;  %v3369_v49 = vadd.f32 %v3368_v9, %v3243_v12  ;;  %v3370_v50 = vpop.f32.mrb[47].mxu0  ;;  %v3373_v19 = vmul.f32 0.5, %v3365_v43 }
0x174c   :  { %v3378_v57 = vmul.f32 0.044715, %v3367_v48  ;;  %v3371_v58 = vadd.f32 %v3370_v50, %v3247_v39  ;;  %v3374_v22 = vmul.f32 0.5, %v3367_v48 }
0x174d   :  { %v3381_v44 = vmul.f32 %v3377_v10, %v3365_v43  ;;  %v3379_v59 = vmul.f32 0.044715, %v3369_v49  ;;  %v3375_v16 = vmul.f32 0.5, %v3369_v49 }
0x174e   :  { %v3382_v45 = vmul.f32 %v3378_v57, %v3367_v48  ;;  %v3380_v60 = vmul.f32 0.044715, %v3371_v58  ;;  %v3376_v41 = vmul.f32 0.5, %v3371_v58  ;;  %v4126_v57 = vld [vmem:[%s6194_s20 + $0x1] ss:$0 sm:$0xff]  ;;  %s3636_s20 = scalar_lea.vmem [#allocation2], %s3635_s11 }
0x174f   :  { %v3385_v61 = vmul.f32 %v3381_v44, %v3365_v43  ;;  %v3383_v56 = vmul.f32 %v3379_v59, %v3369_v49  ;;  %v4127_v59 = vld [vmem:[%s6195_s21 + $0x1] ss:$0 sm:$0xff]  ;;  %s3671_s21 = scalar_lea.vmem [#allocation2], %s4130_s13 }
0x1750   :  { %v3386_v55 = vmul.f32 %v3382_v45, %v3367_v48  ;;  %v3384_v62 = vmul.f32 %v3380_v60, %v3371_v58 }
0x1751   :  { %v3389_v51 = vadd.f32 %v3385_v61, %v3365_v43  ;;  %v3387_v20 = vmul.f32 %v3383_v56, %v3369_v49 }
0x1752   :  { %v3388_v63 = vmul.f32 %v3384_v62, %v3371_v58  ;;  %v3390_v47 = vadd.f32 %v3386_v55, %v3367_v48 }
0x1753   :  { %v3393_v52 = vmul.f32 0.7978846, %v3389_v51  ;;  %v3391_v2 = vadd.f32 %v3387_v20, %v3369_v49 }
0x1754   :  { %v3392_v53 = vadd.f32 %v3388_v63, %v3371_v58  ;;  %v3394_v0 = vmul.f32 0.7978846, %v3390_v47 }
0x1755   :  { %4975 = vtanh.f32 %v3393_v52  ;;  %v3395_v1 = vmul.f32 0.7978846, %v3391_v2 }
0x1756   :  { %v3396_v7 = vmul.f32 0.7978846, %v3392_v53  ;;  %4977 = vtanh.f32 %v3394_v0 }
0x1757   :  { %4979 = vtanh.f32 %v3395_v1 }
0x1758   :  { %4981 = vtanh.f32 %v3396_v7 }
0x175f   :  { %v4976_v11 = vpop.eup %4975 }
0x1760   :  { %v4978_v13 = vpop.eup %4977  ;;  %v3401_v36 = vadd.f32 1.0, %v4976_v11 }
0x1761   :  { %v4980_v17 = vpop.eup %4979  ;;  %v3402_v18 = vadd.f32 1.0, %v4978_v13 }
0x1762   :  { %v4982_v34 = vpop.eup %4981  ;;  %v3403_v21 = vadd.f32 1.0, %v4980_v17  ;;  %v3405_v6 = vmul.f32 %v3401_v36, %v3373_v19 }
0x1763   :  { %v3404_v42 = vadd.f32 1.0, %v4982_v34  ;;  %v3406_v24 = vmul.f32 %v3402_v18, %v3374_v22 }
0x1764   :  { %v3407_v40 = vmul.f32 %v3403_v21, %v3375_v16 }
0x1765   :  { %v3408_v25 = vmul.f32 %v3404_v42, %v3376_v41 }
0x1766   :  { %v3409_v3 = vpack.c.bf16 %v3407_v40, %v3405_v6 }
0x1767   :  { %v3410_v5 = vpack.c.bf16 %v3408_v25, %v3406_v24 }
0x1769   :  { %3580 = vmatprep.mubr.bf16.mxu1 %v3410_v5 }
0x176a   :  { %3581 = vmatmul.mubr.bf16.vlgmr.msra.gmra.mrb[92].mxu1 %v3409_v3 }
0x183d   :  { %v4330_v26 = vpop.f32.mrb[92].mxu1 }
0x183e   :  { %v4331_v28 = vpop.f32.mrb[93].mxu1 }
0x183f   :  { %v4332_v4 = vadd.f32 %v4331_v28, %v4330_v26  ;;  %v4333_v29 = vpop.f32.mrb[94].mxu1 }
0x1840   :  { %v4334_v30 = vpop.f32.mrb[95].mxu1 }
0x1841   :  { %v3583_v8 = vadd.f32 %v4332_v4, %v4107_v27  ;;  %v4335_v32 = vadd.f32 %v4334_v30, %v4333_v29 }
0x1843   :  { %v3586_v31 = vadd.f32 %v4335_v32, %v4107_v27  ;;  %v3589_v38 = vadd.f32 %v3583_v8, %v6092_v15 }
0x1845   :  { %3595 = vadd.xlane.f32.xlu0 %v3589_v38  ;;  %v3590_v14 = vadd.f32 %v3586_v31, %v6094_v23 }
0x1847   :  { %3597 = vadd.xlane.f32.xlu1 %v3590_v14 }
0x18d2   :  { %v3596_v33 = vpop.xlane.xlu0 %3595 }
0x18d3   :  { %v3599_v35 = vmul.f32 0.0078125, %v3596_v33 }
0x18d4   :  { %v3598_v37 = vpop.xlane.xlu1 %3597 }
0x18d5   :  { %v3601_v12 = vsub.f32 %v3589_v38, %v3599_v35  ;;  %v3600_v39 = vmul.f32 0.0078125, %v3598_v37 }
0x18d7   :  { %v3602_v54 = vsub.f32 %v3590_v14, %v3600_v39  ;;  %v3603_v43 = vmul.f32 %v3601_v12, %v3601_v12 }
0x18d9   :  { %3605 = vadd.xlane.f32.xlu0 %v3603_v43  ;;  %v3604_v46 = vmul.f32 %v3602_v54, %v3602_v54 }
0x18db   :  { %3607 = vadd.xlane.f32.xlu1 %v3604_v46 }
0x1966   :  { %v3606_v48 = vpop.xlane.xlu0 %3605 }
0x1967   :  { %v3609_v9 = vmul.f32 0.0078125, %v3606_v48 }
0x1968   :  { %v3608_v10 = vpop.xlane.xlu1 %3607 }
0x1969   :  { %v3611_v49 = vadd.f32 1e-12, %v3609_v9  ;;  %v3610_v50 = vmul.f32 0.0078125, %v3608_v10 }
0x196b   :  { %4983 = vrsqrt.f32 %v3611_v49  ;;  %v3612_v15 = vadd.f32 1e-12, %v3610_v50 }
0x196d   :  { %4985 = vrsqrt.f32 %v3612_v15 }
0x1975   :  { %v4984_v23 = vpop.eup %4983 }
0x1976   :  { %v3615_v58 = vmul.f32 %v4984_v23, %v3601_v12 }
0x1977   :  { %v4986_v44 = vpop.eup %4985 }
0x1978   :  { %v3623_v45 = vmul.f32 %v4126_v57, %v3615_v58  ;;  %v3616_v60 = vmul.f32 %v4986_v44, %v3602_v54 }
0x197a   :  { %v3631_v61 = vadd.f32 %v4127_v59, %v3623_v45  ;;  %v3624_v56 = vmul.f32 %v4126_v57, %v3616_v60 }
0x197c   :  { %3633 = vst [vmem:[#allocation2] sm:$0xff] %v3631_v61  ;;  %v3632_v55 = vadd.f32 %v4127_v59, %v3624_v56 }
0x197e   :  { %3634 = vst [vmem:[#allocation2 + $0x8] sm:$0xff] %v3632_v55 }
0x1985   :  { %v3637_v62 = vld [vmem:[%s3636_s20] sm:$0x1]  ;;  %v4129_v20 = vld [vmem:[%s3669_s27 + $0x8] sm:$0x1] }
0x1986   :  { %v3640_v51 = vld [vmem:[%s3639_s17] sm:$0x1]  ;;  %3641 = vst [vmem:[#allocation6] sm:$0x1] %v3637_v62  ;;  %v4131_v63 = vld [vmem:[%s3671_s21 + $0x8] sm:$0x1] }
0x1987   :  { %3642 = vst [vmem:[#allocation6 + $0x2] sm:$0x1] %v3640_v51  ;;  %3651 = vst [vmem:[#allocation6 + $0x1] sm:$0x1] %v4129_v20 }
0x1988   :  { %3652 = vst [vmem:[#allocation6 + $0x3] sm:$0x1] %v4131_v63 }
0x1989   :  { %5022 = shalt.err (!%p5019_p0)
}
0x198a   :  { %s5023_s16 = scalar_lea.hbm %s6196_s22, 64 }
0x198b   :  { %p5024_p1 = scmp.ne.s32.totalorder %s6196_s22, %s5023_s16  ;;  %p5027_p2 = scmp.lt.u32.totalorder %s5023_s16, %s6196_s22 }
0x198d   :  { %p5029_p3 = pnand %p5027_p2, %p5024_p1 }
0x198f   :  { %5032 = shalt.err (!%p5029_p3)
}
0x1990   :  { %3662 = dma.vmem_to_hbm [thread:$0]  %s3660_s3, 64, %s6196_s22, [#allocation7]  }
0x1991   :  { %5035 = dma.done.wait [#allocation7], 64  }
0x1992   :  { %5036 = vsyncadd [#allocation7], 4294967232 }
0x1993   :  { %3666 = vsyncpa [#allocation7], 1 }

</bundles_post_ra>
